<compile_context>
chip_gen: v6e
topology: v6e:2x2x1
jax: 0.10.0
libtpu: 0.0.40
codegen_flags: <defaults>
</compile_context>

<pallas_src>
import jax
import jax.numpy as jnp
import numpy as np
from jax import lax
from jax.experimental import pallas as pl
from jax.experimental.pallas import tpu as pltpu


# ConvTranspose2d(3,3,k=4,s=2,p=1) tap table.
# For output row/col parity p (= oh % 2) the contributing kernel taps are
# (k, off): tap k reads fea row/col (i + off - 1), i.e. row/col (off + i) of the
# 1-pixel zero-halo fea scratch (i = in-tile fea row/col index).
_TAPS = {
    0: ((1, 1), (3, 0)),
    1: ((0, 2), (2, 1)),
}


def _make_kernel(c_in, c_out, th, w, top_row, bot_row):
    """Fused 1x1-conv + ConvTranspose2d kernel (all sizes are Python ints)."""
    # 8-row chunks keep the stage-2 working set (~12 live (8,W) tiles) in vregs.
    chunks = [(rr, min(8, th - rr)) for rr in range(0, th, 8)]

    def kernel(x_ref, xt_ref, xb_ref, w1_ref, b1_ref, wt_ref, bt_ref,
               o_ref, fea_ref):
        # x_ref  : (1, c_in, th, w)     input rows [h0, h0+th)
        # xt_ref : (1, c_in, 8, w)      block holding input row h0-1 (at top_row)
        # xb_ref : (1, c_in, 8, w)      block holding input row h0+th (at bot_row)
        # w1_ref : (c_out*c_in,)  SMEM  1x1 conv weight, flat [co*c_in + ci]
        # b1_ref : (c_out,)       SMEM
        # wt_ref : (c_out*c_out*16,) SMEM  convT weight, flat [((ci*3+co)*4+kh)*4+kw]
        # bt_ref : (c_out,)       SMEM
        # o_ref  : (1, c_out, 4, th, w) phase-major output [n, co, 2*ph+pw, i, j]
        # fea_ref: (c_out, th+2, w+2)   VMEM scratch: fea1 tile with zero halo
        h = pl.program_id(1)
        nh = pl.num_programs(1)

        # ---- stage 1: 1x1 conv into the halo'd scratch -----------------------
        # Zero ONLY the halo ring; the interior is fully overwritten below.
        fea_ref[:, :, 0:1] = jnp.zeros((c_out, th + 2, 1), jnp.float32)
        fea_ref[:, :, w + 1:w + 2] = jnp.zeros((c_out, th + 2, 1), jnp.float32)

        b1_t = [jnp.full((8, w), b1_ref[co], dtype=jnp.float32)   # hoisted splats
                for co in range(c_out)]
        for rr, ch in chunks:
            for co in range(c_out):
                acc = b1_t[co][:ch]
                for ci in range(c_in):
                    acc = acc + x_ref[0, ci, rr:rr + ch, :] * w1_ref[co * c_in + ci]
                fea_ref[co, 1 + rr:1 + rr + ch, 1:w + 1] = acc

        # top halo row: fea row h0-1 (or image-border zeros)
        @pl.when(h == 0)
        def _():
            fea_ref[:, 0:1, 1:w + 1] = jnp.zeros((c_out, 1, w), jnp.float32)

        @pl.when(h > 0)
        def _():
            for co in range(c_out):
                acc = jnp.full((1, w), b1_ref[co], dtype=jnp.float32)
                for ci in range(c_in):
                    acc = acc + (xt_ref[0, ci, top_row:top_row + 1, :] *
                                 w1_ref[co * c_in + ci])
                fea_ref[co, 0:1, 1:w + 1] = acc

        # bottom halo row: fea row h0+th (or image-border zeros)
        @pl.when(h == nh - 1)
        def _():
            fea_ref[:, th + 1:th + 2, 1:w + 1] = jnp.zeros((c_out, 1, w), jnp.float32)

        @pl.when(h < nh - 1)
        def _():
            for co in range(c_out):
                acc = jnp.full((1, w), b1_ref[co], dtype=jnp.float32)
                for ci in range(c_in):
                    acc = acc + (xb_ref[0, ci, bot_row:bot_row + 1, :] *
                                 w1_ref[co * c_in + ci])
                fea_ref[co, th + 1:th + 2, 1:w + 1] = acc

        # ---- stage 2: ConvTranspose2d(3,3,4,2,1), phase-tapped, deduped ------
        bt_t = [jnp.full((8, w), bt_ref[co], dtype=jnp.float32)    # hoisted splats
                for co in range(c_out)]

        for rr, ch in chunks:                     # register-sized 8-row chunks
            for ph in range(2):                   # output row parity
                acc = [[bt_t[co][:ch] for _ in range(2)] for co in range(c_out)]
                for ci in range(c_out):
                    # ONE aligned full-width load per (ph, ci, row-tap); the three
                    # column taps are in-register lane slices of the same value and
                    # are reused across all 3 output channels and both col parities.
                    slabs = {}
                    for _, r0 in _TAPS[ph]:
                        row = fea_ref[ci, r0 + rr:r0 + rr + ch, :]     # (ch, w+2)
                        for c0 in range(3):
                            slabs[(r0, c0)] = row[:, c0:c0 + w]
                    for co in range(c_out):
                        for pw in range(2):       # output col parity
                            a = acc[co][pw]
                            for kh, r0 in _TAPS[ph]:
                                for kw, c0 in _TAPS[pw]:
                                    wgt = wt_ref[((ci * c_out + co) * 4 + kh) * 4 + kw]
                                    a = a + slabs[(r0, c0)] * wgt
                            acc[co][pw] = a
                for co in range(c_out):
                    for pw in range(2):           # dense (ch, w) unmasked stores
                        o_ref[0, co, 2 * ph + pw, rr:rr + ch, :] = acc[co][pw]

    return kernel


def _pick_tile_h(H, W, c_in, tile_budget_bytes):
    """Largest H-tile (multiple of 8 dividing H) fitting the per-row VMEM budget."""
    # bytes per tile row: out block 2*3*4*W*4 + in block 2*c_in*W*4 + fea ~12*W
    per_row = (96 + 12 + 8 * c_in) * max(W, 1)
    cap = max(8, tile_budget_bytes // per_row)
    cap = min(cap, 128)                      # bound the unrolled 8-row chunk count
    if H % 8 != 0 or H <= cap:               # H not 8-divisible -> single tile
        return H
    best = 8
    for d in range(8, cap + 1, 8):
        if H % d == 0:
            best = d
    return best


def sideoutput2_forward(x, w1, b1, wt, bt, *, tile_h=None):
    """x: (N, Cin, H, W); w1: (3, Cin); b1: (3,); wt: (3, 3, 4, 4); bt: (3,)."""
    N, c_in, H, W = x.shape
    C = w1.shape[0]
    assert C == 3 and wt.shape == (3, 3, 4, 4), "ConvTranspose2d(3,3,...) requires 3 channels"

    # ---- per-generation VMEM budget (96 MiB limit on 128-MiB parts, 48 on v7x) ---
    try:
        vmem_cap = int(pltpu.get_tpu_info().vmem_capacity_bytes)
    except Exception:
        vmem_cap = 64 * 1024 * 1024
    vmem_limit = min((vmem_cap * 3) // 4, 96 * 1024 * 1024)
    tile_budget = vmem_limit // 2

    TH = tile_h if tile_h is not None else _pick_tile_h(H, W, c_in, tile_budget)
    assert H % TH == 0, (H, TH)
    nh = H // TH

    # ---- 1-row halo views of the input (8-row blocks, clamped index maps) -------
    if H % 8 == 0:
        thb, nblk8 = TH // 8, H // 8
        halo_shape = (1, c_in, 8, W)
        top_map = lambda n, h: (n, 0, jnp.maximum(h * thb - 1, 0), 0)
        bot_map = lambda n, h: (n, 0, jnp.minimum(h * thb + thb, nblk8 - 1), 0)
        top_row, bot_row = 7, 0
    else:                       # single H tile -> halos never used, alias interior
        halo_shape = (1, c_in, TH, W)
        top_map = lambda n, h: (n, 0, h, 0)
        bot_map = lambda n, h: (n, 0, h, 0)
        top_row, bot_row = TH - 1, 0

    kernel = _make_kernel(c_in, C, TH, W, top_row, bot_row)
    smem = pl.BlockSpec(memory_space=pltpu.MemorySpace.SMEM)

    out5 = pl.pallas_call(
        kernel,
        out_shape=jax.ShapeDtypeStruct((N, C, 4, H, W), jnp.float32),
        grid=(N, nh),
        in_specs=[
            pl.BlockSpec((1, c_in, TH, W), lambda n, h: (n, 0, h, 0)),
            pl.BlockSpec(halo_shape, top_map),
            pl.BlockSpec(halo_shape, bot_map),
            smem, smem, smem, smem,
        ],
        out_specs=pl.BlockSpec((1, C, 4, TH, W),
                               lambda n, h: (n, 0, 0, h, 0)),
        scratch_shapes=[pltpu.VMEM((C, TH + 2, W + 2), jnp.float32)],
        compiler_params=pltpu.CompilerParams(
            dimension_semantics=("parallel", "parallel"),
            vmem_limit_bytes=vmem_limit),
    )(x, x, x, w1.reshape(-1), b1.reshape(-1), wt.reshape(-1), bt.reshape(-1))

    # Phase interleave: out5[n, co, 2*ph+pw, i, j] -> out[n, co, 2i+ph, 2j+pw].
    # TODO(synk): move this interleave in-kernel once (W,2)->(2W) lane-interleave
    # stores lower cleanly; it is the one remaining extra HBM pass over the output.
    out = (out5.reshape(N, C, 2, 2, H, W)
               .transpose(0, 1, 4, 2, 5, 3)
               .reshape(N, C, 2 * H, 2 * W))
    return out


# ------------------------------ pure-JAX reference ---------------------------
def reference(x, w1, b1, wt, bt):
    fea = jnp.einsum('nchw,oc->nohw', x, w1) + b1.reshape(1, -1, 1, 1)
    # transposed conv = lhs-dilated conv with flipped, axis-swapped kernel
    wflip = jnp.transpose(wt, (1, 0, 2, 3))[:, :, ::-1, ::-1]
    out = lax.conv_general_dilated(fea, wflip, window_strides=(1, 1),
                                   padding=[(2, 2), (2, 2)],
                                   lhs_dilation=(2, 2),
                                   dimension_numbers=('NCHW', 'OIHW', 'NCHW'))
    return out + bt.reshape(1, -1, 1, 1)


if __name__ == "__main__":
    in_channel, out_channel = 4, 3    # out_channel must be 3 (feeds ConvTranspose2d(3,3,...))
    N, H, W = 2, 16, 16

    key = jax.random.PRNGKey(0)
    k1, k2, k3, k4, k5 = jax.random.split(key, 5)
    # Conv2d(in, out, 1): weight (out, in, 1, 1) stored squeezed as (out, in); bias (out,)
    w1 = jax.random.normal(k1, (out_channel, in_channel), jnp.float32) * 0.1
    b1 = jax.random.normal(k2, (out_channel,), jnp.float32) * 0.1
    # ConvTranspose2d(3, 3, 4): weight (in=3, out=3, 4, 4); bias (3,)
    wt = jax.random.normal(k3, (3, 3, 4, 4), jnp.float32) * 0.1
    bt = jax.random.normal(k4, (3,), jnp.float32) * 0.1

    x = jax.random.normal(k5, (N, in_channel, H, W), jnp.float32)

    fwd = jax.jit(sideoutput2_forward, static_argnames=("tile_h",))
    ref = reference(x, w1, b1, wt, bt)

    # default (budget-derived, single H tile at this size)
    out = jax.block_until_ready(fwd(x, w1, b1, wt, bt))
    assert out.shape == (N, 3, 2 * H, 2 * W), out.shape
    np.testing.assert_allclose(np.asarray(out), np.asarray(ref), rtol=1e-4, atol=1e-4)

    # explicit small tile to exercise the multi-tile halo path
    out_t = jax.block_until_ready(fwd(x, w1, b1, wt, bt, tile_h=8))
    np.testing.assert_allclose(np.asarray(out_t), np.asarray(ref), rtol=1e-4, atol=1e-4)

    print("KERNEL_OK")
</pallas_src>

<mosaic_0001>
module attributes {stable_mosaic.version = 11 : i64} {
  func.func @kernel(%arg0: i32, %arg1: i32, %arg2: memref<1x4x16x16xf32, #tpu.memory_space<vmem>>, %arg3: memref<1x4x8x16xf32, #tpu.memory_space<vmem>>, %arg4: memref<1x4x8x16xf32, #tpu.memory_space<vmem>>, %arg5: memref<12xf32, #tpu.memory_space<smem>>, %arg6: memref<3xf32, #tpu.memory_space<smem>>, %arg7: memref<144xf32, #tpu.memory_space<smem>>, %arg8: memref<3xf32, #tpu.memory_space<smem>>, %arg9: memref<1x3x4x16x16xf32, #tpu.memory_space<vmem>>, %arg10: memref<3x18x18xf32, #tpu.memory_space<vmem>>) attributes {dimension_semantics = [#tpu.dimension_semantics<parallel>, #tpu.dimension_semantics<parallel>], iteration_bounds = array<i64: 2, 1>, scalar_prefetch = 0 : i64, scratch_operands = 1 : i64, tpu.core_type = #tpu.core_type<tc>, window_params = [{transform_indices = @transform_0, window_bounds = array<i64: 1, 4, 16, 16>}, {transform_indices = @transform_1, window_bounds = array<i64: 1, 4, 8, 16>}, {transform_indices = @transform_2, window_bounds = array<i64: 1, 4, 8, 16>}, {transform_indices = @transform_3, window_bounds = array<i64: 12>}, {transform_indices = @transform_4, window_bounds = array<i64: 3>}, {transform_indices = @transform_5, window_bounds = array<i64: 144>}, {transform_indices = @transform_6, window_bounds = array<i64: 3>}, {transform_indices = @transform_7, window_bounds = array<i64: 1, 3, 4, 16, 16>}]} {
    %cst = arith.constant 0.000000e+00 : f32
    %0 = vector.broadcast %cst : f32 to vector<3x18x1xf32>
    %c0 = arith.constant 0 : index
    %c0_0 = arith.constant 0 : index
    %c0_1 = arith.constant 0 : index
    %1 = vector.load %arg10[%c0, %c0_0, %c0_1] : memref<3x18x18xf32, #tpu.memory_space<vmem>>, vector<3x18x1xf32>
    tpu.vector_store %arg10[%c0, %c0_0, %c0_1], %0 {strides = array<i32>} : memref<3x18x18xf32, #tpu.memory_space<vmem>>, vector<3x18x1xf32>,
    %cst_2 = arith.constant 0.000000e+00 : f32
    %2 = vector.broadcast %cst_2 : f32 to vector<3x18x1xf32>
    %c0_3 = arith.constant 0 : index
    %c0_4 = arith.constant 0 : index
    %c17 = arith.constant 17 : index
    %3 = vector.load %arg10[%c0_3, %c0_4, %c17] : memref<3x18x18xf32, #tpu.memory_space<vmem>>, vector<3x18x1xf32>
    tpu.vector_store %arg10[%c0_3, %c0_4, %c17], %2 {strides = array<i32>} : memref<3x18x18xf32, #tpu.memory_space<vmem>>, vector<3x18x1xf32>,
    %c0_5 = arith.constant 0 : index
    %4 = memref.load %arg6[%c0_5] : memref<3xf32, #tpu.memory_space<smem>>
    %5 = vector.broadcast %4 : f32 to vector<8x16xf32>
    %c1 = arith.constant 1 : index
    %6 = memref.load %arg6[%c1] : memref<3xf32, #tpu.memory_space<smem>>
    %7 = vector.broadcast %6 : f32 to vector<8x16xf32>
    %c2 = arith.constant 2 : index
    %8 = memref.load %arg6[%c2] : memref<3xf32, #tpu.memory_space<smem>>
    %9 = vector.broadcast %8 : f32 to vector<8x16xf32>
    %c0_6 = arith.constant 0 : index
    %c0_7 = arith.constant 0 : index
    %c0_8 = arith.constant 0 : index
    %c0_9 = arith.constant 0 : index
    %10 = vector.load %arg2[%c0_6, %c0_7, %c0_8, %c0_9] : memref<1x4x16x16xf32, #tpu.memory_space<vmem>>, vector<1x1x8x16xf32>
    %11 = vector.shape_cast %10 : vector<1x1x8x16xf32> to vector<8x16xf32>
    %c0_10 = arith.constant 0 : index
    %12 = memref.load %arg5[%c0_10] : memref<12xf32, #tpu.memory_space<smem>>
    %13 = vector.broadcast %12 : f32 to vector<8x16xf32>
    %14 = arith.mulf %11, %13 : vector<8x16xf32>
    %15 = arith.addf %5, %14 : vector<8x16xf32>
    %c0_11 = arith.constant 0 : index
    %c1_12 = arith.constant 1 : index
    %c0_13 = arith.constant 0 : index
    %c0_14 = arith.constant 0 : index
    %16 = vector.load %arg2[%c0_11, %c1_12, %c0_13, %c0_14] : memref<1x4x16x16xf32, #tpu.memory_space<vmem>>, vector<1x1x8x16xf32>
    %17 = vector.shape_cast %16 : vector<1x1x8x16xf32> to vector<8x16xf32>
    %c1_15 = arith.constant 1 : index
    %18 = memref.load %arg5[%c1_15] : memref<12xf32, #tpu.memory_space<smem>>
    %19 = vector.broadcast %18 : f32 to vector<8x16xf32>
    %20 = arith.mulf %17, %19 : vector<8x16xf32>
    %21 = arith.addf %15, %20 : vector<8x16xf32>
    %c0_16 = arith.constant 0 : index
    %c2_17 = arith.constant 2 : index
    %c0_18 = arith.constant 0 : index
    %c0_19 = arith.constant 0 : index
    %22 = vector.load %arg2[%c0_16, %c2_17, %c0_18, %c0_19] : memref<1x4x16x16xf32, #tpu.memory_space<vmem>>, vector<1x1x8x16xf32>
    %23 = vector.shape_cast %22 : vector<1x1x8x16xf32> to vector<8x16xf32>
    %c2_20 = arith.constant 2 : index
    %24 = memref.load %arg5[%c2_20] : memref<12xf32, #tpu.memory_space<smem>>
    %25 = vector.broadcast %24 : f32 to vector<8x16xf32>
    %26 = arith.mulf %23, %25 : vector<8x16xf32>
    %27 = arith.addf %21, %26 : vector<8x16xf32>
    %c0_21 = arith.constant 0 : index
    %c3 = arith.constant 3 : index
    %c0_22 = arith.constant 0 : index
    %c0_23 = arith.constant 0 : index
    %28 = vector.load %arg2[%c0_21, %c3, %c0_22, %c0_23] : memref<1x4x16x16xf32, #tpu.memory_space<vmem>>, vector<1x1x8x16xf32>
    %29 = vector.shape_cast %28 : vector<1x1x8x16xf32> to vector<8x16xf32>
    %c3_24 = arith.constant 3 : index
    %30 = memref.load %arg5[%c3_24] : memref<12xf32, #tpu.memory_space<smem>>
    %31 = vector.broadcast %30 : f32 to vector<8x16xf32>
    %32 = arith.mulf %29, %31 : vector<8x16xf32>
    %33 = arith.addf %27, %32 : vector<8x16xf32>
    %c0_25 = arith.constant 0 : index
    %c1_26 = arith.constant 1 : index
    %c1_27 = arith.constant 1 : index
    %34 = vector.load %arg10[%c0_25, %c1_26, %c1_27] : memref<3x18x18xf32, #tpu.memory_space<vmem>>, vector<1x8x16xf32>
    %35 = vector.shape_cast %34 : vector<1x8x16xf32> to vector<8x16xf32>
    %36 = vector.shape_cast %33 : vector<8x16xf32> to vector<1x8x16xf32>
    tpu.vector_store %arg10[%c0_25, %c1_26, %c1_27], %36 {strides = array<i32>} : memref<3x18x18xf32, #tpu.memory_space<vmem>>, vector<1x8x16xf32>,
    %c0_28 = arith.constant 0 : index
    %c0_29 = arith.constant 0 : index
    %c0_30 = arith.constant 0 : index
    %c0_31 = arith.constant 0 : index
    %37 = vector.load %arg2[%c0_28, %c0_29, %c0_30, %c0_31] : memref<1x4x16x16xf32, #tpu.memory_space<vmem>>, vector<1x1x8x16xf32>
    %38 = vector.shape_cast %37 : vector<1x1x8x16xf32> to vector<8x16xf32>
    %c4 = arith.constant 4 : index
    %39 = memref.load %arg5[%c4] : memref<12xf32, #tpu.memory_space<smem>>
    %40 = vector.broadcast %39 : f32 to vector<8x16xf32>
    %41 = arith.mulf %38, %40 : vector<8x16xf32>
    %42 = arith.addf %7, %41 : vector<8x16xf32>
    %c0_32 = arith.constant 0 : index
    %c1_33 = arith.constant 1 : index
    %c0_34 = arith.constant 0 : index
    %c0_35 = arith.constant 0 : index
    %43 = vector.load %arg2[%c0_32, %c1_33, %c0_34, %c0_35] : memref<1x4x16x16xf32, #tpu.memory_space<vmem>>, vector<1x1x8x16xf32>
    %44 = vector.shape_cast %43 : vector<1x1x8x16xf32> to vector<8x16xf32>
    %c5 = arith.constant 5 : index
    %45 = memref.load %arg5[%c5] : memref<12xf32, #tpu.memory_space<smem>>
    %46 = vector.broadcast %45 : f32 to vector<8x16xf32>
    %47 = arith.mulf %44, %46 : vector<8x16xf32>
    %48 = arith.addf %42, %47 : vector<8x16xf32>
    %c0_36 = arith.constant 0 : index
    %c2_37 = arith.constant 2 : index
    %c0_38 = arith.constant 0 : index
    %c0_39 = arith.constant 0 : index
    %49 = vector.load %arg2[%c0_36, %c2_37, %c0_38, %c0_39] : memref<1x4x16x16xf32, #tpu.memory_space<vmem>>, vector<1x1x8x16xf32>
    %50 = vector.shape_cast %49 : vector<1x1x8x16xf32> to vector<8x16xf32>
    %c6 = arith.constant 6 : index
    %51 = memref.load %arg5[%c6] : memref<12xf32, #tpu.memory_space<smem>>
    %52 = vector.broadcast %51 : f32 to vector<8x16xf32>
    %53 = arith.mulf %50, %52 : vector<8x16xf32>
    %54 = arith.addf %48, %53 : vector<8x16xf32>
    %c0_40 = arith.constant 0 : index
    %c3_41 = arith.constant 3 : index
    %c0_42 = arith.constant 0 : index
    %c0_43 = arith.constant 0 : index
    %55 = vector.load %arg2[%c0_40, %c3_41, %c0_42, %c0_43] : memref<1x4x16x16xf32, #tpu.memory_space<vmem>>, vector<1x1x8x16xf32>
    %56 = vector.shape_cast %55 : vector<1x1x8x16xf32> to vector<8x16xf32>
    %c7 = arith.constant 7 : index
    %57 = memref.load %arg5[%c7] : memref<12xf32, #tpu.memory_space<smem>>
    %58 = vector.broadcast %57 : f32 to vector<8x16xf32>
    %59 = arith.mulf %56, %58 : vector<8x16xf32>
    %60 = arith.addf %54, %59 : vector<8x16xf32>
    %c1_44 = arith.constant 1 : index
    %c1_45 = arith.constant 1 : index
    %c1_46 = arith.constant 1 : index
    %61 = vector.load %arg10[%c1_44, %c1_45, %c1_46] : memref<3x18x18xf32, #tpu.memory_space<vmem>>, vector<1x8x16xf32>
    %62 = vector.shape_cast %61 : vector<1x8x16xf32> to vector<8x16xf32>
    %63 = vector.shape_cast %60 : vector<8x16xf32> to vector<1x8x16xf32>
    tpu.vector_store %arg10[%c1_44, %c1_45, %c1_46], %63 {strides = array<i32>} : memref<3x18x18xf32, #tpu.memory_space<vmem>>, vector<1x8x16xf32>,
    %c0_47 = arith.constant 0 : index
    %c0_48 = arith.constant 0 : index
    %c0_49 = arith.constant 0 : index
    %c0_50 = arith.constant 0 : index
    %64 = vector.load %arg2[%c0_47, %c0_48, %c0_49, %c0_50] : memref<1x4x16x16xf32, #tpu.memory_space<vmem>>, vector<1x1x8x16xf32>
    %65 = vector.shape_cast %64 : vector<1x1x8x16xf32> to vector<8x16xf32>
    %c8 = arith.constant 8 : index
    %66 = memref.load %arg5[%c8] : memref<12xf32, #tpu.memory_space<smem>>
    %67 = vector.broadcast %66 : f32 to vector<8x16xf32>
    %68 = arith.mulf %65, %67 : vector<8x16xf32>
    %69 = arith.addf %9, %68 : vector<8x16xf32>
    %c0_51 = arith.constant 0 : index
    %c1_52 = arith.constant 1 : index
    %c0_53 = arith.constant 0 : index
    %c0_54 = arith.constant 0 : index
    %70 = vector.load %arg2[%c0_51, %c1_52, %c0_53, %c0_54] : memref<1x4x16x16xf32, #tpu.memory_space<vmem>>, vector<1x1x8x16xf32>
    %71 = vector.shape_cast %70 : vector<1x1x8x16xf32> to vector<8x16xf32>
    %c9 = arith.constant 9 : index
    %72 = memref.load %arg5[%c9] : memref<12xf32, #tpu.memory_space<smem>>
    %73 = vector.broadcast %72 : f32 to vector<8x16xf32>
    %74 = arith.mulf %71, %73 : vector<8x16xf32>
    %75 = arith.addf %69, %74 : vector<8x16xf32>
    %c0_55 = arith.constant 0 : index
    %c2_56 = arith.constant 2 : index
    %c0_57 = arith.constant 0 : index
    %c0_58 = arith.constant 0 : index
    %76 = vector.load %arg2[%c0_55, %c2_56, %c0_57, %c0_58] : memref<1x4x16x16xf32, #tpu.memory_space<vmem>>, vector<1x1x8x16xf32>
    %77 = vector.shape_cast %76 : vector<1x1x8x16xf32> to vector<8x16xf32>
    %c10 = arith.constant 10 : index
    %78 = memref.load %arg5[%c10] : memref<12xf32, #tpu.memory_space<smem>>
    %79 = vector.broadcast %78 : f32 to vector<8x16xf32>
    %80 = arith.mulf %77, %79 : vector<8x16xf32>
    %81 = arith.addf %75, %80 : vector<8x16xf32>
    %c0_59 = arith.constant 0 : index
    %c3_60 = arith.constant 3 : index
    %c0_61 = arith.constant 0 : index
    %c0_62 = arith.constant 0 : index
    %82 = vector.load %arg2[%c0_59, %c3_60, %c0_61, %c0_62] : memref<1x4x16x16xf32, #tpu.memory_space<vmem>>, vector<1x1x8x16xf32>
    %83 = vector.shape_cast %82 : vector<1x1x8x16xf32> to vector<8x16xf32>
    %c11 = arith.constant 11 : index
    %84 = memref.load %arg5[%c11] : memref<12xf32, #tpu.memory_space<smem>>
    %85 = vector.broadcast %84 : f32 to vector<8x16xf32>
    %86 = arith.mulf %83, %85 : vector<8x16xf32>
    %87 = arith.addf %81, %86 : vector<8x16xf32>
    %c2_63 = arith.constant 2 : index
    %c1_64 = arith.constant 1 : index
    %c1_65 = arith.constant 1 : index
    %88 = vector.load %arg10[%c2_63, %c1_64, %c1_65] : memref<3x18x18xf32, #tpu.memory_space<vmem>>, vector<1x8x16xf32>
    %89 = vector.shape_cast %88 : vector<1x8x16xf32> to vector<8x16xf32>
    %90 = vector.shape_cast %87 : vector<8x16xf32> to vector<1x8x16xf32>
    tpu.vector_store %arg10[%c2_63, %c1_64, %c1_65], %90 {strides = array<i32>} : memref<3x18x18xf32, #tpu.memory_space<vmem>>, vector<1x8x16xf32>,
    %c0_66 = arith.constant 0 : index
    %c0_67 = arith.constant 0 : index
    %c8_68 = arith.constant 8 : index
    %c0_69 = arith.constant 0 : index
    %91 = vector.load %arg2[%c0_66, %c0_67, %c8_68, %c0_69] : memref<1x4x16x16xf32, #tpu.memory_space<vmem>>, vector<1x1x8x16xf32>
    %92 = vector.shape_cast %91 : vector<1x1x8x16xf32> to vector<8x16xf32>
    %c0_70 = arith.constant 0 : index
    %93 = memref.load %arg5[%c0_70] : memref<12xf32, #tpu.memory_space<smem>>
    %94 = vector.broadcast %93 : f32 to vector<8x16xf32>
    %95 = arith.mulf %92, %94 : vector<8x16xf32>
    %96 = arith.addf %5, %95 : vector<8x16xf32>
    %c0_71 = arith.constant 0 : index
    %c1_72 = arith.constant 1 : index
    %c8_73 = arith.constant 8 : index
    %c0_74 = arith.constant 0 : index
    %97 = vector.load %arg2[%c0_71, %c1_72, %c8_73, %c0_74] : memref<1x4x16x16xf32, #tpu.memory_space<vmem>>, vector<1x1x8x16xf32>
    %98 = vector.shape_cast %97 : vector<1x1x8x16xf32> to vector<8x16xf32>
    %c1_75 = arith.constant 1 : index
    %99 = memref.load %arg5[%c1_75] : memref<12xf32, #tpu.memory_space<smem>>
    %100 = vector.broadcast %99 : f32 to vector<8x16xf32>
    %101 = arith.mulf %98, %100 : vector<8x16xf32>
    %102 = arith.addf %96, %101 : vector<8x16xf32>
    %c0_76 = arith.constant 0 : index
    %c2_77 = arith.constant 2 : index
    %c8_78 = arith.constant 8 : index
    %c0_79 = arith.constant 0 : index
    %103 = vector.load %arg2[%c0_76, %c2_77, %c8_78, %c0_79] : memref<1x4x16x16xf32, #tpu.memory_space<vmem>>, vector<1x1x8x16xf32>
    %104 = vector.shape_cast %103 : vector<1x1x8x16xf32> to vector<8x16xf32>
    %c2_80 = arith.constant 2 : index
    %105 = memref.load %arg5[%c2_80] : memref<12xf32, #tpu.memory_space<smem>>
    %106 = vector.broadcast %105 : f32 to vector<8x16xf32>
    %107 = arith.mulf %104, %106 : vector<8x16xf32>
    %108 = arith.addf %102, %107 : vector<8x16xf32>
    %c0_81 = arith.constant 0 : index
    %c3_82 = arith.constant 3 : index
    %c8_83 = arith.constant 8 : index
    %c0_84 = arith.constant 0 : index
    %109 = vector.load %arg2[%c0_81, %c3_82, %c8_83, %c0_84] : memref<1x4x16x16xf32, #tpu.memory_space<vmem>>, vector<1x1x8x16xf32>
    %110 = vector.shape_cast %109 : vector<1x1x8x16xf32> to vector<8x16xf32>
    %c3_85 = arith.constant 3 : index
    %111 = memref.load %arg5[%c3_85] : memref<12xf32, #tpu.memory_space<smem>>
    %112 = vector.broadcast %111 : f32 to vector<8x16xf32>
    %113 = arith.mulf %110, %112 : vector<8x16xf32>
    %114 = arith.addf %108, %113 : vector<8x16xf32>
    %c0_86 = arith.constant 0 : index
    %c9_87 = arith.constant 9 : index
    %c1_88 = arith.constant 1 : index
    %115 = vector.load %arg10[%c0_86, %c9_87, %c1_88] : memref<3x18x18xf32, #tpu.memory_space<vmem>>, vector<1x8x16xf32>
    %116 = vector.shape_cast %115 : vector<1x8x16xf32> to vector<8x16xf32>
    %117 = vector.shape_cast %114 : vector<8x16xf32> to vector<1x8x16xf32>
    tpu.vector_store %arg10[%c0_86, %c9_87, %c1_88], %117 {strides = array<i32>} : memref<3x18x18xf32, #tpu.memory_space<vmem>>, vector<1x8x16xf32>,
    %c0_89 = arith.constant 0 : index
    %c0_90 = arith.constant 0 : index
    %c8_91 = arith.constant 8 : index
    %c0_92 = arith.constant 0 : index
    %118 = vector.load %arg2[%c0_89, %c0_90, %c8_91, %c0_92] : memref<1x4x16x16xf32, #tpu.memory_space<vmem>>, vector<1x1x8x16xf32>
    %119 = vector.shape_cast %118 : vector<1x1x8x16xf32> to vector<8x16xf32>
    %c4_93 = arith.constant 4 : index
    %120 = memref.load %arg5[%c4_93] : memref<12xf32, #tpu.memory_space<smem>>
    %121 = vector.broadcast %120 : f32 to vector<8x16xf32>
    %122 = arith.mulf %119, %121 : vector<8x16xf32>
    %123 = arith.addf %7, %122 : vector<8x16xf32>
    %c0_94 = arith.constant 0 : index
    %c1_95 = arith.constant 1 : index
    %c8_96 = arith.constant 8 : index
    %c0_97 = arith.constant 0 : index
    %124 = vector.load %arg2[%c0_94, %c1_95, %c8_96, %c0_97] : memref<1x4x16x16xf32, #tpu.memory_space<vmem>>, vector<1x1x8x16xf32>
    %125 = vector.shape_cast %124 : vector<1x1x8x16xf32> to vector<8x16xf32>
    %c5_98 = arith.constant 5 : index
    %126 = memref.load %arg5[%c5_98] : memref<12xf32, #tpu.memory_space<smem>>
    %127 = vector.broadcast %126 : f32 to vector<8x16xf32>
    %128 = arith.mulf %125, %127 : vector<8x16xf32>
    %129 = arith.addf %123, %128 : vector<8x16xf32>
    %c0_99 = arith.constant 0 : index
    %c2_100 = arith.constant 2 : index
    %c8_101 = arith.constant 8 : index
    %c0_102 = arith.constant 0 : index
    %130 = vector.load %arg2[%c0_99, %c2_100, %c8_101, %c0_102] : memref<1x4x16x16xf32, #tpu.memory_space<vmem>>, vector<1x1x8x16xf32>
    %131 = vector.shape_cast %130 : vector<1x1x8x16xf32> to vector<8x16xf32>
    %c6_103 = arith.constant 6 : index
    %132 = memref.load %arg5[%c6_103] : memref<12xf32, #tpu.memory_space<smem>>
    %133 = vector.broadcast %132 : f32 to vector<8x16xf32>
    %134 = arith.mulf %131, %133 : vector<8x16xf32>
    %135 = arith.addf %129, %134 : vector<8x16xf32>
    %c0_104 = arith.constant 0 : index
    %c3_105 = arith.constant 3 : index
    %c8_106 = arith.constant 8 : index
    %c0_107 = arith.constant 0 : index
    %136 = vector.load %arg2[%c0_104, %c3_105, %c8_106, %c0_107] : memref<1x4x16x16xf32, #tpu.memory_space<vmem>>, vector<1x1x8x16xf32>
    %137 = vector.shape_cast %136 : vector<1x1x8x16xf32> to vector<8x16xf32>
    %c7_108 = arith.constant 7 : index
    %138 = memref.load %arg5[%c7_108] : memref<12xf32, #tpu.memory_space<smem>>
    %139 = vector.broadcast %138 : f32 to vector<8x16xf32>
    %140 = arith.mulf %137, %139 : vector<8x16xf32>
    %141 = arith.addf %135, %140 : vector<8x16xf32>
    %c1_109 = arith.constant 1 : index
    %c9_110 = arith.constant 9 : index
    %c1_111 = arith.constant 1 : index
    %142 = vector.load %arg10[%c1_109, %c9_110, %c1_111] : memref<3x18x18xf32, #tpu.memory_space<vmem>>, vector<1x8x16xf32>
    %143 = vector.shape_cast %142 : vector<1x8x16xf32> to vector<8x16xf32>
    %144 = vector.shape_cast %141 : vector<8x16xf32> to vector<1x8x16xf32>
    tpu.vector_store %arg10[%c1_109, %c9_110, %c1_111], %144 {strides = array<i32>} : memref<3x18x18xf32, #tpu.memory_space<vmem>>, vector<1x8x16xf32>,
    %c0_112 = arith.constant 0 : index
    %c0_113 = arith.constant 0 : index
    %c8_114 = arith.constant 8 : index
    %c0_115 = arith.constant 0 : index
    %145 = vector.load %arg2[%c0_112, %c0_113, %c8_114, %c0_115] : memref<1x4x16x16xf32, #tpu.memory_space<vmem>>, vector<1x1x8x16xf32>
    %146 = vector.shape_cast %145 : vector<1x1x8x16xf32> to vector<8x16xf32>
    %c8_116 = arith.constant 8 : index
    %147 = memref.load %arg5[%c8_116] : memref<12xf32, #tpu.memory_space<smem>>
    %148 = vector.broadcast %147 : f32 to vector<8x16xf32>
    %149 = arith.mulf %146, %148 : vector<8x16xf32>
    %150 = arith.addf %9, %149 : vector<8x16xf32>
    %c0_117 = arith.constant 0 : index
    %c1_118 = arith.constant 1 : index
    %c8_119 = arith.constant 8 : index
    %c0_120 = arith.constant 0 : index
    %151 = vector.load %arg2[%c0_117, %c1_118, %c8_119, %c0_120] : memref<1x4x16x16xf32, #tpu.memory_space<vmem>>, vector<1x1x8x16xf32>
    %152 = vector.shape_cast %151 : vector<1x1x8x16xf32> to vector<8x16xf32>
    %c9_121 = arith.constant 9 : index
    %153 = memref.load %arg5[%c9_121] : memref<12xf32, #tpu.memory_space<smem>>
    %154 = vector.broadcast %153 : f32 to vector<8x16xf32>
    %155 = arith.mulf %152, %154 : vector<8x16xf32>
    %156 = arith.addf %150, %155 : vector<8x16xf32>
    %c0_122 = arith.constant 0 : index
    %c2_123 = arith.constant 2 : index
    %c8_124 = arith.constant 8 : index
    %c0_125 = arith.constant 0 : index
    %157 = vector.load %arg2[%c0_122, %c2_123, %c8_124, %c0_125] : memref<1x4x16x16xf32, #tpu.memory_space<vmem>>, vector<1x1x8x16xf32>
    %158 = vector.shape_cast %157 : vector<1x1x8x16xf32> to vector<8x16xf32>
    %c10_126 = arith.constant 10 : index
    %159 = memref.load %arg5[%c10_126] : memref<12xf32, #tpu.memory_space<smem>>
    %160 = vector.broadcast %159 : f32 to vector<8x16xf32>
    %161 = arith.mulf %158, %160 : vector<8x16xf32>
    %162 = arith.addf %156, %161 : vector<8x16xf32>
    %c0_127 = arith.constant 0 : index
    %c3_128 = arith.constant 3 : index
    %c8_129 = arith.constant 8 : index
    %c0_130 = arith.constant 0 : index
    %163 = vector.load %arg2[%c0_127, %c3_128, %c8_129, %c0_130] : memref<1x4x16x16xf32, #tpu.memory_space<vmem>>, vector<1x1x8x16xf32>
    %164 = vector.shape_cast %163 : vector<1x1x8x16xf32> to vector<8x16xf32>
    %c11_131 = arith.constant 11 : index
    %165 = memref.load %arg5[%c11_131] : memref<12xf32, #tpu.memory_space<smem>>
    %166 = vector.broadcast %165 : f32 to vector<8x16xf32>
    %167 = arith.mulf %164, %166 : vector<8x16xf32>
    %168 = arith.addf %162, %167 : vector<8x16xf32>
    %c2_132 = arith.constant 2 : index
    %c9_133 = arith.constant 9 : index
    %c1_134 = arith.constant 1 : index
    %169 = vector.load %arg10[%c2_132, %c9_133, %c1_134] : memref<3x18x18xf32, #tpu.memory_space<vmem>>, vector<1x8x16xf32>
    %170 = vector.shape_cast %169 : vector<1x8x16xf32> to vector<8x16xf32>
    %171 = vector.shape_cast %168 : vector<8x16xf32> to vector<1x8x16xf32>
    tpu.vector_store %arg10[%c2_132, %c9_133, %c1_134], %171 {strides = array<i32>} : memref<3x18x18xf32, #tpu.memory_space<vmem>>, vector<1x8x16xf32>,
    %c0_i32 = arith.constant 0 : i32
    %172 = arith.cmpi eq, %arg1, %c0_i32 : i32
    %173 = arith.extui %172 : i1 to i32
    %c0_i32_135 = arith.constant 0 : i32
    %174 = arith.cmpi ne, %173, %c0_i32_135 : i32
    scf.if %174 {
      %cst_494 = arith.constant 0.000000e+00 : f32
      %1534 = vector.broadcast %cst_494 : f32 to vector<3x1x16xf32>
      %c0_495 = arith.constant 0 : index
      %c0_496 = arith.constant 0 : index
      %c1_497 = arith.constant 1 : index
      %1535 = vector.load %arg10[%c0_495, %c0_496, %c1_497] : memref<3x18x18xf32, #tpu.memory_space<vmem>>, vector<3x1x16xf32>
      tpu.vector_store %arg10[%c0_495, %c0_496, %c1_497], %1534 {strides = array<i32>} : memref<3x18x18xf32, #tpu.memory_space<vmem>>, vector<3x1x16xf32>,
    } else {
    }
    %c0_i32_136 = arith.constant 0 : i32
    %175 = arith.cmpi sgt, %arg1, %c0_i32_136 : i32
    %176 = arith.extui %175 : i1 to i32
    %c0_i32_137 = arith.constant 0 : i32
    %177 = arith.cmpi ne, %176, %c0_i32_137 : i32
    scf.if %177 {
      %c0_494 = arith.constant 0 : index
      %1534 = memref.load %arg6[%c0_494] : memref<3xf32, #tpu.memory_space<smem>>
      %1535 = vector.broadcast %1534 : f32 to vector<1x16xf32>
      %c0_495 = arith.constant 0 : index
      %c0_496 = arith.constant 0 : index
      %c7_497 = arith.constant 7 : index
      %c0_498 = arith.constant 0 : index
      %1536 = vector.load %arg3[%c0_495, %c0_496, %c7_497, %c0_498] : memref<1x4x8x16xf32, #tpu.memory_space<vmem>>, vector<1x1x1x16xf32>
      %1537 = vector.shape_cast %1536 : vector<1x1x1x16xf32> to vector<1x16xf32>
      %c0_499 = arith.constant 0 : index
      %1538 = memref.load %arg5[%c0_499] : memref<12xf32, #tpu.memory_space<smem>>
      %1539 = vector.broadcast %1538 : f32 to vector<1x16xf32>
      %1540 = arith.mulf %1537, %1539 : vector<1x16xf32>
      %1541 = arith.addf %1535, %1540 : vector<1x16xf32>
      %c0_500 = arith.constant 0 : index
      %c1_501 = arith.constant 1 : index
      %c7_502 = arith.constant 7 : index
      %c0_503 = arith.constant 0 : index
      %1542 = vector.load %arg3[%c0_500, %c1_501, %c7_502, %c0_503] : memref<1x4x8x16xf32, #tpu.memory_space<vmem>>, vector<1x1x1x16xf32>
      %1543 = vector.shape_cast %1542 : vector<1x1x1x16xf32> to vector<1x16xf32>
      %c1_504 = arith.constant 1 : index
      %1544 = memref.load %arg5[%c1_504] : memref<12xf32, #tpu.memory_space<smem>>
      %1545 = vector.broadcast %1544 : f32 to vector<1x16xf32>
      %1546 = arith.mulf %1543, %1545 : vector<1x16xf32>
      %1547 = arith.addf %1541, %1546 : vector<1x16xf32>
      %c0_505 = arith.constant 0 : index
      %c2_506 = arith.constant 2 : index
      %c7_507 = arith.constant 7 : index
      %c0_508 = arith.constant 0 : index
      %1548 = vector.load %arg3[%c0_505, %c2_506, %c7_507, %c0_508] : memref<1x4x8x16xf32, #tpu.memory_space<vmem>>, vector<1x1x1x16xf32>
      %1549 = vector.shape_cast %1548 : vector<1x1x1x16xf32> to vector<1x16xf32>
      %c2_509 = arith.constant 2 : index
      %1550 = memref.load %arg5[%c2_509] : memref<12xf32, #tpu.memory_space<smem>>
      %1551 = vector.broadcast %1550 : f32 to vector<1x16xf32>
      %1552 = arith.mulf %1549, %1551 : vector<1x16xf32>
      %1553 = arith.addf %1547, %1552 : vector<1x16xf32>
      %c0_510 = arith.constant 0 : index
      %c3_511 = arith.constant 3 : index
      %c7_512 = arith.constant 7 : index
      %c0_513 = arith.constant 0 : index
      %1554 = vector.load %arg3[%c0_510, %c3_511, %c7_512, %c0_513] : memref<1x4x8x16xf32, #tpu.memory_space<vmem>>, vector<1x1x1x16xf32>
      %1555 = vector.shape_cast %1554 : vector<1x1x1x16xf32> to vector<1x16xf32>
      %c3_514 = arith.constant 3 : index
      %1556 = memref.load %arg5[%c3_514] : memref<12xf32, #tpu.memory_space<smem>>
      %1557 = vector.broadcast %1556 : f32 to vector<1x16xf32>
      %1558 = arith.mulf %1555, %1557 : vector<1x16xf32>
      %1559 = arith.addf %1553, %1558 : vector<1x16xf32>
      %c0_515 = arith.constant 0 : index
      %c0_516 = arith.constant 0 : index
      %c1_517 = arith.constant 1 : index
      %1560 = vector.load %arg10[%c0_515, %c0_516, %c1_517] : memref<3x18x18xf32, #tpu.memory_space<vmem>>, vector<1x1x16xf32>
      %1561 = vector.shape_cast %1560 : vector<1x1x16xf32> to vector<1x16xf32>
      %1562 = vector.shape_cast %1559 : vector<1x16xf32> to vector<1x1x16xf32>
      tpu.vector_store %arg10[%c0_515, %c0_516, %c1_517], %1562 {strides = array<i32>} : memref<3x18x18xf32, #tpu.memory_space<vmem>>, vector<1x1x16xf32>,
      %c1_518 = arith.constant 1 : index
      %1563 = memref.load %arg6[%c1_518] : memref<3xf32, #tpu.memory_space<smem>>
      %1564 = vector.broadcast %1563 : f32 to vector<1x16xf32>
      %c0_519 = arith.constant 0 : index
      %c0_520 = arith.constant 0 : index
      %c7_521 = arith.constant 7 : index
      %c0_522 = arith.constant 0 : index
      %1565 = vector.load %arg3[%c0_519, %c0_520, %c7_521, %c0_522] : memref<1x4x8x16xf32, #tpu.memory_space<vmem>>, vector<1x1x1x16xf32>
      %1566 = vector.shape_cast %1565 : vector<1x1x1x16xf32> to vector<1x16xf32>
      %c4_523 = arith.constant 4 : index
      %1567 = memref.load %arg5[%c4_523] : memref<12xf32, #tpu.memory_space<smem>>
      %1568 = vector.broadcast %1567 : f32 to vector<1x16xf32>
      %1569 = arith.mulf %1566, %1568 : vector<1x16xf32>
      %1570 = arith.addf %1564, %1569 : vector<1x16xf32>
      %c0_524 = arith.constant 0 : index
      %c1_525 = arith.constant 1 : index
      %c7_526 = arith.constant 7 : index
      %c0_527 = arith.constant 0 : index
      %1571 = vector.load %arg3[%c0_524, %c1_525, %c7_526, %c0_527] : memref<1x4x8x16xf32, #tpu.memory_space<vmem>>, vector<1x1x1x16xf32>
      %1572 = vector.shape_cast %1571 : vector<1x1x1x16xf32> to vector<1x16xf32>
      %c5_528 = arith.constant 5 : index
      %1573 = memref.load %arg5[%c5_528] : memref<12xf32, #tpu.memory_space<smem>>
      %1574 = vector.broadcast %1573 : f32 to vector<1x16xf32>
      %1575 = arith.mulf %1572, %1574 : vector<1x16xf32>
      %1576 = arith.addf %1570, %1575 : vector<1x16xf32>
      %c0_529 = arith.constant 0 : index
      %c2_530 = arith.constant 2 : index
      %c7_531 = arith.constant 7 : index
      %c0_532 = arith.constant 0 : index
      %1577 = vector.load %arg3[%c0_529, %c2_530, %c7_531, %c0_532] : memref<1x4x8x16xf32, #tpu.memory_space<vmem>>, vector<1x1x1x16xf32>
      %1578 = vector.shape_cast %1577 : vector<1x1x1x16xf32> to vector<1x16xf32>
      %c6_533 = arith.constant 6 : index
      %1579 = memref.load %arg5[%c6_533] : memref<12xf32, #tpu.memory_space<smem>>
      %1580 = vector.broadcast %1579 : f32 to vector<1x16xf32>
      %1581 = arith.mulf %1578, %1580 : vector<1x16xf32>
      %1582 = arith.addf %1576, %1581 : vector<1x16xf32>
      %c0_534 = arith.constant 0 : index
      %c3_535 = arith.constant 3 : index
      %c7_536 = arith.constant 7 : index
      %c0_537 = arith.constant 0 : index
      %1583 = vector.load %arg3[%c0_534, %c3_535, %c7_536, %c0_537] : memref<1x4x8x16xf32, #tpu.memory_space<vmem>>, vector<1x1x1x16xf32>
      %1584 = vector.shape_cast %1583 : vector<1x1x1x16xf32> to vector<1x16xf32>
      %c7_538 = arith.constant 7 : index
      %1585 = memref.load %arg5[%c7_538] : memref<12xf32, #tpu.memory_space<smem>>
      %1586 = vector.broadcast %1585 : f32 to vector<1x16xf32>
      %1587 = arith.mulf %1584, %1586 : vector<1x16xf32>
      %1588 = arith.addf %1582, %1587 : vector<1x16xf32>
      %c1_539 = arith.constant 1 : index
      %c0_540 = arith.constant 0 : index
      %c1_541 = arith.constant 1 : index
      %1589 = vector.load %arg10[%c1_539, %c0_540, %c1_541] : memref<3x18x18xf32, #tpu.memory_space<vmem>>, vector<1x1x16xf32>
      %1590 = vector.shape_cast %1589 : vector<1x1x16xf32> to vector<1x16xf32>
      %1591 = vector.shape_cast %1588 : vector<1x16xf32> to vector<1x1x16xf32>
      tpu.vector_store %arg10[%c1_539, %c0_540, %c1_541], %1591 {strides = array<i32>} : memref<3x18x18xf32, #tpu.memory_space<vmem>>, vector<1x1x16xf32>,
      %c2_542 = arith.constant 2 : index
      %1592 = memref.load %arg6[%c2_542] : memref<3xf32, #tpu.memory_space<smem>>
      %1593 = vector.broadcast %1592 : f32 to vector<1x16xf32>
      %c0_543 = arith.constant 0 : index
      %c0_544 = arith.constant 0 : index
      %c7_545 = arith.constant 7 : index
      %c0_546 = arith.constant 0 : index
      %1594 = vector.load %arg3[%c0_543, %c0_544, %c7_545, %c0_546] : memref<1x4x8x16xf32, #tpu.memory_space<vmem>>, vector<1x1x1x16xf32>
      %1595 = vector.shape_cast %1594 : vector<1x1x1x16xf32> to vector<1x16xf32>
      %c8_547 = arith.constant 8 : index
      %1596 = memref.load %arg5[%c8_547] : memref<12xf32, #tpu.memory_space<smem>>
      %1597 = vector.broadcast %1596 : f32 to vector<1x16xf32>
      %1598 = arith.mulf %1595, %1597 : vector<1x16xf32>
      %1599 = arith.addf %1593, %1598 : vector<1x16xf32>
      %c0_548 = arith.constant 0 : index
      %c1_549 = arith.constant 1 : index
      %c7_550 = arith.constant 7 : index
      %c0_551 = arith.constant 0 : index
      %1600 = vector.load %arg3[%c0_548, %c1_549, %c7_550, %c0_551] : memref<1x4x8x16xf32, #tpu.memory_space<vmem>>, vector<1x1x1x16xf32>
      %1601 = vector.shape_cast %1600 : vector<1x1x1x16xf32> to vector<1x16xf32>
      %c9_552 = arith.constant 9 : index
      %1602 = memref.load %arg5[%c9_552] : memref<12xf32, #tpu.memory_space<smem>>
      %1603 = vector.broadcast %1602 : f32 to vector<1x16xf32>
      %1604 = arith.mulf %1601, %1603 : vector<1x16xf32>
      %1605 = arith.addf %1599, %1604 : vector<1x16xf32>
      %c0_553 = arith.constant 0 : index
      %c2_554 = arith.constant 2 : index
      %c7_555 = arith.constant 7 : index
      %c0_556 = arith.constant 0 : index
      %1606 = vector.load %arg3[%c0_553, %c2_554, %c7_555, %c0_556] : memref<1x4x8x16xf32, #tpu.memory_space<vmem>>, vector<1x1x1x16xf32>
      %1607 = vector.shape_cast %1606 : vector<1x1x1x16xf32> to vector<1x16xf32>
      %c10_557 = arith.constant 10 : index
      %1608 = memref.load %arg5[%c10_557] : memref<12xf32, #tpu.memory_space<smem>>
      %1609 = vector.broadcast %1608 : f32 to vector<1x16xf32>
      %1610 = arith.mulf %1607, %1609 : vector<1x16xf32>
      %1611 = arith.addf %1605, %1610 : vector<1x16xf32>
      %c0_558 = arith.constant 0 : index
      %c3_559 = arith.constant 3 : index
      %c7_560 = arith.constant 7 : index
      %c0_561 = arith.constant 0 : index
      %1612 = vector.load %arg3[%c0_558, %c3_559, %c7_560, %c0_561] : memref<1x4x8x16xf32, #tpu.memory_space<vmem>>, vector<1x1x1x16xf32>
      %1613 = vector.shape_cast %1612 : vector<1x1x1x16xf32> to vector<1x16xf32>
      %c11_562 = arith.constant 11 : index
      %1614 = memref.load %arg5[%c11_562] : memref<12xf32, #tpu.memory_space<smem>>
      %1615 = vector.broadcast %1614 : f32 to vector<1x16xf32>
      %1616 = arith.mulf %1613, %1615 : vector<1x16xf32>
      %1617 = arith.addf %1611, %1616 : vector<1x16xf32>
      %c2_563 = arith.constant 2 : index
      %c0_564 = arith.constant 0 : index
      %c1_565 = arith.constant 1 : index
      %1618 = vector.load %arg10[%c2_563, %c0_564, %c1_565] : memref<3x18x18xf32, #tpu.memory_space<vmem>>, vector<1x1x16xf32>
      %1619 = vector.shape_cast %1618 : vector<1x1x16xf32> to vector<1x16xf32>
      %1620 = vector.shape_cast %1617 : vector<1x16xf32> to vector<1x1x16xf32>
      tpu.vector_store %arg10[%c2_563, %c0_564, %c1_565], %1620 {strides = array<i32>} : memref<3x18x18xf32, #tpu.memory_space<vmem>>, vector<1x1x16xf32>,
    } else {
    }
    %c0_i32_138 = arith.constant 0 : i32
    %178 = arith.cmpi eq, %arg1, %c0_i32_138 : i32
    %179 = arith.extui %178 : i1 to i32
    %c0_i32_139 = arith.constant 0 : i32
    %180 = arith.cmpi ne, %179, %c0_i32_139 : i32
    scf.if %180 {
      %cst_494 = arith.constant 0.000000e+00 : f32
      %1534 = vector.broadcast %cst_494 : f32 to vector<3x1x16xf32>
      %c0_495 = arith.constant 0 : index
      %c17_496 = arith.constant 17 : index
      %c1_497 = arith.constant 1 : index
      %1535 = vector.load %arg10[%c0_495, %c17_496, %c1_497] : memref<3x18x18xf32, #tpu.memory_space<vmem>>, vector<3x1x16xf32>
      tpu.vector_store %arg10[%c0_495, %c17_496, %c1_497], %1534 {strides = array<i32>} : memref<3x18x18xf32, #tpu.memory_space<vmem>>, vector<3x1x16xf32>,
    } else {
    }
    %c0_i32_140 = arith.constant 0 : i32
    %181 = arith.cmpi slt, %arg1, %c0_i32_140 : i32
    %182 = arith.extui %181 : i1 to i32
    %c0_i32_141 = arith.constant 0 : i32
    %183 = arith.cmpi ne, %182, %c0_i32_141 : i32
    scf.if %183 {
      %c0_494 = arith.constant 0 : index
      %1534 = memref.load %arg6[%c0_494] : memref<3xf32, #tpu.memory_space<smem>>
      %1535 = vector.broadcast %1534 : f32 to vector<1x16xf32>
      %c0_495 = arith.constant 0 : index
      %c0_496 = arith.constant 0 : index
      %c0_497 = arith.constant 0 : index
      %c0_498 = arith.constant 0 : index
      %1536 = vector.load %arg4[%c0_495, %c0_496, %c0_497, %c0_498] : memref<1x4x8x16xf32, #tpu.memory_space<vmem>>, vector<1x1x1x16xf32>
      %1537 = vector.shape_cast %1536 : vector<1x1x1x16xf32> to vector<1x16xf32>
      %c0_499 = arith.constant 0 : index
      %1538 = memref.load %arg5[%c0_499] : memref<12xf32, #tpu.memory_space<smem>>
      %1539 = vector.broadcast %1538 : f32 to vector<1x16xf32>
      %1540 = arith.mulf %1537, %1539 : vector<1x16xf32>
      %1541 = arith.addf %1535, %1540 : vector<1x16xf32>
      %c0_500 = arith.constant 0 : index
      %c1_501 = arith.constant 1 : index
      %c0_502 = arith.constant 0 : index
      %c0_503 = arith.constant 0 : index
      %1542 = vector.load %arg4[%c0_500, %c1_501, %c0_502, %c0_503] : memref<1x4x8x16xf32, #tpu.memory_space<vmem>>, vector<1x1x1x16xf32>
      %1543 = vector.shape_cast %1542 : vector<1x1x1x16xf32> to vector<1x16xf32>
      %c1_504 = arith.constant 1 : index
      %1544 = memref.load %arg5[%c1_504] : memref<12xf32, #tpu.memory_space<smem>>
      %1545 = vector.broadcast %1544 : f32 to vector<1x16xf32>
      %1546 = arith.mulf %1543, %1545 : vector<1x16xf32>
      %1547 = arith.addf %1541, %1546 : vector<1x16xf32>
      %c0_505 = arith.constant 0 : index
      %c2_506 = arith.constant 2 : index
      %c0_507 = arith.constant 0 : index
      %c0_508 = arith.constant 0 : index
      %1548 = vector.load %arg4[%c0_505, %c2_506, %c0_507, %c0_508] : memref<1x4x8x16xf32, #tpu.memory_space<vmem>>, vector<1x1x1x16xf32>
      %1549 = vector.shape_cast %1548 : vector<1x1x1x16xf32> to vector<1x16xf32>
      %c2_509 = arith.constant 2 : index
      %1550 = memref.load %arg5[%c2_509] : memref<12xf32, #tpu.memory_space<smem>>
      %1551 = vector.broadcast %1550 : f32 to vector<1x16xf32>
      %1552 = arith.mulf %1549, %1551 : vector<1x16xf32>
      %1553 = arith.addf %1547, %1552 : vector<1x16xf32>
      %c0_510 = arith.constant 0 : index
      %c3_511 = arith.constant 3 : index
      %c0_512 = arith.constant 0 : index
      %c0_513 = arith.constant 0 : index
      %1554 = vector.load %arg4[%c0_510, %c3_511, %c0_512, %c0_513] : memref<1x4x8x16xf32, #tpu.memory_space<vmem>>, vector<1x1x1x16xf32>
      %1555 = vector.shape_cast %1554 : vector<1x1x1x16xf32> to vector<1x16xf32>
      %c3_514 = arith.constant 3 : index
      %1556 = memref.load %arg5[%c3_514] : memref<12xf32, #tpu.memory_space<smem>>
      %1557 = vector.broadcast %1556 : f32 to vector<1x16xf32>
      %1558 = arith.mulf %1555, %1557 : vector<1x16xf32>
      %1559 = arith.addf %1553, %1558 : vector<1x16xf32>
      %c0_515 = arith.constant 0 : index
      %c17_516 = arith.constant 17 : index
      %c1_517 = arith.constant 1 : index
      %1560 = vector.load %arg10[%c0_515, %c17_516, %c1_517] : memref<3x18x18xf32, #tpu.memory_space<vmem>>, vector<1x1x16xf32>
      %1561 = vector.shape_cast %1560 : vector<1x1x16xf32> to vector<1x16xf32>
      %1562 = vector.shape_cast %1559 : vector<1x16xf32> to vector<1x1x16xf32>
      tpu.vector_store %arg10[%c0_515, %c17_516, %c1_517], %1562 {strides = array<i32>} : memref<3x18x18xf32, #tpu.memory_space<vmem>>, vector<1x1x16xf32>,
      %c1_518 = arith.constant 1 : index
      %1563 = memref.load %arg6[%c1_518] : memref<3xf32, #tpu.memory_space<smem>>
      %1564 = vector.broadcast %1563 : f32 to vector<1x16xf32>
      %c0_519 = arith.constant 0 : index
      %c0_520 = arith.constant 0 : index
      %c0_521 = arith.constant 0 : index
      %c0_522 = arith.constant 0 : index
      %1565 = vector.load %arg4[%c0_519, %c0_520, %c0_521, %c0_522] : memref<1x4x8x16xf32, #tpu.memory_space<vmem>>, vector<1x1x1x16xf32>
      %1566 = vector.shape_cast %1565 : vector<1x1x1x16xf32> to vector<1x16xf32>
      %c4_523 = arith.constant 4 : index
      %1567 = memref.load %arg5[%c4_523] : memref<12xf32, #tpu.memory_space<smem>>
      %1568 = vector.broadcast %1567 : f32 to vector<1x16xf32>
      %1569 = arith.mulf %1566, %1568 : vector<1x16xf32>
      %1570 = arith.addf %1564, %1569 : vector<1x16xf32>
      %c0_524 = arith.constant 0 : index
      %c1_525 = arith.constant 1 : index
      %c0_526 = arith.constant 0 : index
      %c0_527 = arith.constant 0 : index
      %1571 = vector.load %arg4[%c0_524, %c1_525, %c0_526, %c0_527] : memref<1x4x8x16xf32, #tpu.memory_space<vmem>>, vector<1x1x1x16xf32>
      %1572 = vector.shape_cast %1571 : vector<1x1x1x16xf32> to vector<1x16xf32>
      %c5_528 = arith.constant 5 : index
      %1573 = memref.load %arg5[%c5_528] : memref<12xf32, #tpu.memory_space<smem>>
      %1574 = vector.broadcast %1573 : f32 to vector<1x16xf32>
      %1575 = arith.mulf %1572, %1574 : vector<1x16xf32>
      %1576 = arith.addf %1570, %1575 : vector<1x16xf32>
      %c0_529 = arith.constant 0 : index
      %c2_530 = arith.constant 2 : index
      %c0_531 = arith.constant 0 : index
      %c0_532 = arith.constant 0 : index
      %1577 = vector.load %arg4[%c0_529, %c2_530, %c0_531, %c0_532] : memref<1x4x8x16xf32, #tpu.memory_space<vmem>>, vector<1x1x1x16xf32>
      %1578 = vector.shape_cast %1577 : vector<1x1x1x16xf32> to vector<1x16xf32>
      %c6_533 = arith.constant 6 : index
      %1579 = memref.load %arg5[%c6_533] : memref<12xf32, #tpu.memory_space<smem>>
      %1580 = vector.broadcast %1579 : f32 to vector<1x16xf32>
      %1581 = arith.mulf %1578, %1580 : vector<1x16xf32>
      %1582 = arith.addf %1576, %1581 : vector<1x16xf32>
      %c0_534 = arith.constant 0 : index
      %c3_535 = arith.constant 3 : index
      %c0_536 = arith.constant 0 : index
      %c0_537 = arith.constant 0 : index
      %1583 = vector.load %arg4[%c0_534, %c3_535, %c0_536, %c0_537] : memref<1x4x8x16xf32, #tpu.memory_space<vmem>>, vector<1x1x1x16xf32>
      %1584 = vector.shape_cast %1583 : vector<1x1x1x16xf32> to vector<1x16xf32>
      %c7_538 = arith.constant 7 : index
      %1585 = memref.load %arg5[%c7_538] : memref<12xf32, #tpu.memory_space<smem>>
      %1586 = vector.broadcast %1585 : f32 to vector<1x16xf32>
      %1587 = arith.mulf %1584, %1586 : vector<1x16xf32>
      %1588 = arith.addf %1582, %1587 : vector<1x16xf32>
      %c1_539 = arith.constant 1 : index
      %c17_540 = arith.constant 17 : index
      %c1_541 = arith.constant 1 : index
      %1589 = vector.load %arg10[%c1_539, %c17_540, %c1_541] : memref<3x18x18xf32, #tpu.memory_space<vmem>>, vector<1x1x16xf32>
      %1590 = vector.shape_cast %1589 : vector<1x1x16xf32> to vector<1x16xf32>
      %1591 = vector.shape_cast %1588 : vector<1x16xf32> to vector<1x1x16xf32>
      tpu.vector_store %arg10[%c1_539, %c17_540, %c1_541], %1591 {strides = array<i32>} : memref<3x18x18xf32, #tpu.memory_space<vmem>>, vector<1x1x16xf32>,
      %c2_542 = arith.constant 2 : index
      %1592 = memref.load %arg6[%c2_542] : memref<3xf32, #tpu.memory_space<smem>>
      %1593 = vector.broadcast %1592 : f32 to vector<1x16xf32>
      %c0_543 = arith.constant 0 : index
      %c0_544 = arith.constant 0 : index
      %c0_545 = arith.constant 0 : index
      %c0_546 = arith.constant 0 : index
      %1594 = vector.load %arg4[%c0_543, %c0_544, %c0_545, %c0_546] : memref<1x4x8x16xf32, #tpu.memory_space<vmem>>, vector<1x1x1x16xf32>
      %1595 = vector.shape_cast %1594 : vector<1x1x1x16xf32> to vector<1x16xf32>
      %c8_547 = arith.constant 8 : index
      %1596 = memref.load %arg5[%c8_547] : memref<12xf32, #tpu.memory_space<smem>>
      %1597 = vector.broadcast %1596 : f32 to vector<1x16xf32>
      %1598 = arith.mulf %1595, %1597 : vector<1x16xf32>
      %1599 = arith.addf %1593, %1598 : vector<1x16xf32>
      %c0_548 = arith.constant 0 : index
      %c1_549 = arith.constant 1 : index
      %c0_550 = arith.constant 0 : index
      %c0_551 = arith.constant 0 : index
      %1600 = vector.load %arg4[%c0_548, %c1_549, %c0_550, %c0_551] : memref<1x4x8x16xf32, #tpu.memory_space<vmem>>, vector<1x1x1x16xf32>
      %1601 = vector.shape_cast %1600 : vector<1x1x1x16xf32> to vector<1x16xf32>
      %c9_552 = arith.constant 9 : index
      %1602 = memref.load %arg5[%c9_552] : memref<12xf32, #tpu.memory_space<smem>>
      %1603 = vector.broadcast %1602 : f32 to vector<1x16xf32>
      %1604 = arith.mulf %1601, %1603 : vector<1x16xf32>
      %1605 = arith.addf %1599, %1604 : vector<1x16xf32>
      %c0_553 = arith.constant 0 : index
      %c2_554 = arith.constant 2 : index
      %c0_555 = arith.constant 0 : index
      %c0_556 = arith.constant 0 : index
      %1606 = vector.load %arg4[%c0_553, %c2_554, %c0_555, %c0_556] : memref<1x4x8x16xf32, #tpu.memory_space<vmem>>, vector<1x1x1x16xf32>
      %1607 = vector.shape_cast %1606 : vector<1x1x1x16xf32> to vector<1x16xf32>
      %c10_557 = arith.constant 10 : index
      %1608 = memref.load %arg5[%c10_557] : memref<12xf32, #tpu.memory_space<smem>>
      %1609 = vector.broadcast %1608 : f32 to vector<1x16xf32>
      %1610 = arith.mulf %1607, %1609 : vector<1x16xf32>
      %1611 = arith.addf %1605, %1610 : vector<1x16xf32>
      %c0_558 = arith.constant 0 : index
      %c3_559 = arith.constant 3 : index
      %c0_560 = arith.constant 0 : index
      %c0_561 = arith.constant 0 : index
      %1612 = vector.load %arg4[%c0_558, %c3_559, %c0_560, %c0_561] : memref<1x4x8x16xf32, #tpu.memory_space<vmem>>, vector<1x1x1x16xf32>
      %1613 = vector.shape_cast %1612 : vector<1x1x1x16xf32> to vector<1x16xf32>
      %c11_562 = arith.constant 11 : index
      %1614 = memref.load %arg5[%c11_562] : memref<12xf32, #tpu.memory_space<smem>>
      %1615 = vector.broadcast %1614 : f32 to vector<1x16xf32>
      %1616 = arith.mulf %1613, %1615 : vector<1x16xf32>
      %1617 = arith.addf %1611, %1616 : vector<1x16xf32>
      %c2_563 = arith.constant 2 : index
      %c17_564 = arith.constant 17 : index
      %c1_565 = arith.constant 1 : index
      %1618 = vector.load %arg10[%c2_563, %c17_564, %c1_565] : memref<3x18x18xf32, #tpu.memory_space<vmem>>, vector<1x1x16xf32>
      %1619 = vector.shape_cast %1618 : vector<1x1x16xf32> to vector<1x16xf32>
      %1620 = vector.shape_cast %1617 : vector<1x16xf32> to vector<1x1x16xf32>
      tpu.vector_store %arg10[%c2_563, %c17_564, %c1_565], %1620 {strides = array<i32>} : memref<3x18x18xf32, #tpu.memory_space<vmem>>, vector<1x1x16xf32>,
    } else {
    }
    %c0_142 = arith.constant 0 : index
    %184 = memref.load %arg8[%c0_142] : memref<3xf32, #tpu.memory_space<smem>>
    %185 = vector.broadcast %184 : f32 to vector<8x16xf32>
    %c1_143 = arith.constant 1 : index
    %186 = memref.load %arg8[%c1_143] : memref<3xf32, #tpu.memory_space<smem>>
    %187 = vector.broadcast %186 : f32 to vector<8x16xf32>
    %c2_144 = arith.constant 2 : index
    %188 = memref.load %arg8[%c2_144] : memref<3xf32, #tpu.memory_space<smem>>
    %189 = vector.broadcast %188 : f32 to vector<8x16xf32>
    %c0_145 = arith.constant 0 : index
    %c1_146 = arith.constant 1 : index
    %c0_147 = arith.constant 0 : index
    %190 = vector.load %arg10[%c0_145, %c1_146, %c0_147] : memref<3x18x18xf32, #tpu.memory_space<vmem>>, vector<1x8x18xf32>
    %191 = vector.shape_cast %190 : vector<1x8x18xf32> to vector<8x18xf32>
    %192 = vector.extract_strided_slice %191 {offsets = [0, 0], sizes = [8, 16], strides = [1, 1]} : vector<8x18xf32> to vector<8x16xf32>
    %193 = vector.extract_strided_slice %191 {offsets = [0, 1], sizes = [8, 16], strides = [1, 1]} : vector<8x18xf32> to vector<8x16xf32>
    %194 = vector.extract_strided_slice %191 {offsets = [0, 2], sizes = [8, 16], strides = [1, 1]} : vector<8x18xf32> to vector<8x16xf32>
    %c0_148 = arith.constant 0 : index
    %c0_149 = arith.constant 0 : index
    %c0_150 = arith.constant 0 : index
    %195 = vector.load %arg10[%c0_148, %c0_149, %c0_150] : memref<3x18x18xf32, #tpu.memory_space<vmem>>, vector<1x8x18xf32>
    %196 = vector.shape_cast %195 : vector<1x8x18xf32> to vector<8x18xf32>
    %197 = vector.extract_strided_slice %196 {offsets = [0, 0], sizes = [8, 16], strides = [1, 1]} : vector<8x18xf32> to vector<8x16xf32>
    %198 = vector.extract_strided_slice %196 {offsets = [0, 1], sizes = [8, 16], strides = [1, 1]} : vector<8x18xf32> to vector<8x16xf32>
    %199 = vector.extract_strided_slice %196 {offsets = [0, 2], sizes = [8, 16], strides = [1, 1]} : vector<8x18xf32> to vector<8x16xf32>
    %c5_151 = arith.constant 5 : index
    %200 = memref.load %arg7[%c5_151] : memref<144xf32, #tpu.memory_space<smem>>
    %201 = vector.broadcast %200 : f32 to vector<8x16xf32>
    %202 = arith.mulf %193, %201 : vector<8x16xf32>
    %203 = arith.addf %185, %202 : vector<8x16xf32>
    %c7_152 = arith.constant 7 : index
    %204 = memref.load %arg7[%c7_152] : memref<144xf32, #tpu.memory_space<smem>>
    %205 = vector.broadcast %204 : f32 to vector<8x16xf32>
    %206 = arith.mulf %192, %205 : vector<8x16xf32>
    %207 = arith.addf %203, %206 : vector<8x16xf32>
    %c13 = arith.constant 13 : index
    %208 = memref.load %arg7[%c13] : memref<144xf32, #tpu.memory_space<smem>>
    %209 = vector.broadcast %208 : f32 to vector<8x16xf32>
    %210 = arith.mulf %198, %209 : vector<8x16xf32>
    %211 = arith.addf %207, %210 : vector<8x16xf32>
    %c15 = arith.constant 15 : index
    %212 = memref.load %arg7[%c15] : memref<144xf32, #tpu.memory_space<smem>>
    %213 = vector.broadcast %212 : f32 to vector<8x16xf32>
    %214 = arith.mulf %197, %213 : vector<8x16xf32>
    %215 = arith.addf %211, %214 : vector<8x16xf32>
    %c4_153 = arith.constant 4 : index
    %216 = memref.load %arg7[%c4_153] : memref<144xf32, #tpu.memory_space<smem>>
    %217 = vector.broadcast %216 : f32 to vector<8x16xf32>
    %218 = arith.mulf %194, %217 : vector<8x16xf32>
    %219 = arith.addf %185, %218 : vector<8x16xf32>
    %c6_154 = arith.constant 6 : index
    %220 = memref.load %arg7[%c6_154] : memref<144xf32, #tpu.memory_space<smem>>
    %221 = vector.broadcast %220 : f32 to vector<8x16xf32>
    %222 = arith.mulf %193, %221 : vector<8x16xf32>
    %223 = arith.addf %219, %222 : vector<8x16xf32>
    %c12 = arith.constant 12 : index
    %224 = memref.load %arg7[%c12] : memref<144xf32, #tpu.memory_space<smem>>
    %225 = vector.broadcast %224 : f32 to vector<8x16xf32>
    %226 = arith.mulf %199, %225 : vector<8x16xf32>
    %227 = arith.addf %223, %226 : vector<8x16xf32>
    %c14 = arith.constant 14 : index
    %228 = memref.load %arg7[%c14] : memref<144xf32, #tpu.memory_space<smem>>
    %229 = vector.broadcast %228 : f32 to vector<8x16xf32>
    %230 = arith.mulf %198, %229 : vector<8x16xf32>
    %231 = arith.addf %227, %230 : vector<8x16xf32>
    %c21 = arith.constant 21 : index
    %232 = memref.load %arg7[%c21] : memref<144xf32, #tpu.memory_space<smem>>
    %233 = vector.broadcast %232 : f32 to vector<8x16xf32>
    %234 = arith.mulf %193, %233 : vector<8x16xf32>
    %235 = arith.addf %187, %234 : vector<8x16xf32>
    %c23 = arith.constant 23 : index
    %236 = memref.load %arg7[%c23] : memref<144xf32, #tpu.memory_space<smem>>
    %237 = vector.broadcast %236 : f32 to vector<8x16xf32>
    %238 = arith.mulf %192, %237 : vector<8x16xf32>
    %239 = arith.addf %235, %238 : vector<8x16xf32>
    %c29 = arith.constant 29 : index
    %240 = memref.load %arg7[%c29] : memref<144xf32, #tpu.memory_space<smem>>
    %241 = vector.broadcast %240 : f32 to vector<8x16xf32>
    %242 = arith.mulf %198, %241 : vector<8x16xf32>
    %243 = arith.addf %239, %242 : vector<8x16xf32>
    %c31 = arith.constant 31 : index
    %244 = memref.load %arg7[%c31] : memref<144xf32, #tpu.memory_space<smem>>
    %245 = vector.broadcast %244 : f32 to vector<8x16xf32>
    %246 = arith.mulf %197, %245 : vector<8x16xf32>
    %247 = arith.addf %243, %246 : vector<8x16xf32>
    %c20 = arith.constant 20 : index
    %248 = memref.load %arg7[%c20] : memref<144xf32, #tpu.memory_space<smem>>
    %249 = vector.broadcast %248 : f32 to vector<8x16xf32>
    %250 = arith.mulf %194, %249 : vector<8x16xf32>
    %251 = arith.addf %187, %250 : vector<8x16xf32>
    %c22 = arith.constant 22 : index
    %252 = memref.load %arg7[%c22] : memref<144xf32, #tpu.memory_space<smem>>
    %253 = vector.broadcast %252 : f32 to vector<8x16xf32>
    %254 = arith.mulf %193, %253 : vector<8x16xf32>
    %255 = arith.addf %251, %254 : vector<8x16xf32>
    %c28 = arith.constant 28 : index
    %256 = memref.load %arg7[%c28] : memref<144xf32, #tpu.memory_space<smem>>
    %257 = vector.broadcast %256 : f32 to vector<8x16xf32>
    %258 = arith.mulf %199, %257 : vector<8x16xf32>
    %259 = arith.addf %255, %258 : vector<8x16xf32>
    %c30 = arith.constant 30 : index
    %260 = memref.load %arg7[%c30] : memref<144xf32, #tpu.memory_space<smem>>
    %261 = vector.broadcast %260 : f32 to vector<8x16xf32>
    %262 = arith.mulf %198, %261 : vector<8x16xf32>
    %263 = arith.addf %259, %262 : vector<8x16xf32>
    %c37 = arith.constant 37 : index
    %264 = memref.load %arg7[%c37] : memref<144xf32, #tpu.memory_space<smem>>
    %265 = vector.broadcast %264 : f32 to vector<8x16xf32>
    %266 = arith.mulf %193, %265 : vector<8x16xf32>
    %267 = arith.addf %189, %266 : vector<8x16xf32>
    %c39 = arith.constant 39 : index
    %268 = memref.load %arg7[%c39] : memref<144xf32, #tpu.memory_space<smem>>
    %269 = vector.broadcast %268 : f32 to vector<8x16xf32>
    %270 = arith.mulf %192, %269 : vector<8x16xf32>
    %271 = arith.addf %267, %270 : vector<8x16xf32>
    %c45 = arith.constant 45 : index
    %272 = memref.load %arg7[%c45] : memref<144xf32, #tpu.memory_space<smem>>
    %273 = vector.broadcast %272 : f32 to vector<8x16xf32>
    %274 = arith.mulf %198, %273 : vector<8x16xf32>
    %275 = arith.addf %271, %274 : vector<8x16xf32>
    %c47 = arith.constant 47 : index
    %276 = memref.load %arg7[%c47] : memref<144xf32, #tpu.memory_space<smem>>
    %277 = vector.broadcast %276 : f32 to vector<8x16xf32>
    %278 = arith.mulf %197, %277 : vector<8x16xf32>
    %279 = arith.addf %275, %278 : vector<8x16xf32>
    %c36 = arith.constant 36 : index
    %280 = memref.load %arg7[%c36] : memref<144xf32, #tpu.memory_space<smem>>
    %281 = vector.broadcast %280 : f32 to vector<8x16xf32>
    %282 = arith.mulf %194, %281 : vector<8x16xf32>
    %283 = arith.addf %189, %282 : vector<8x16xf32>
    %c38 = arith.constant 38 : index
    %284 = memref.load %arg7[%c38] : memref<144xf32, #tpu.memory_space<smem>>
    %285 = vector.broadcast %284 : f32 to vector<8x16xf32>
    %286 = arith.mulf %193, %285 : vector<8x16xf32>
    %287 = arith.addf %283, %286 : vector<8x16xf32>
    %c44 = arith.constant 44 : index
    %288 = memref.load %arg7[%c44] : memref<144xf32, #tpu.memory_space<smem>>
    %289 = vector.broadcast %288 : f32 to vector<8x16xf32>
    %290 = arith.mulf %199, %289 : vector<8x16xf32>
    %291 = arith.addf %287, %290 : vector<8x16xf32>
    %c46 = arith.constant 46 : index
    %292 = memref.load %arg7[%c46] : memref<144xf32, #tpu.memory_space<smem>>
    %293 = vector.broadcast %292 : f32 to vector<8x16xf32>
    %294 = arith.mulf %198, %293 : vector<8x16xf32>
    %295 = arith.addf %291, %294 : vector<8x16xf32>
    %c1_155 = arith.constant 1 : index
    %c1_156 = arith.constant 1 : index
    %c0_157 = arith.constant 0 : index
    %296 = vector.load %arg10[%c1_155, %c1_156, %c0_157] : memref<3x18x18xf32, #tpu.memory_space<vmem>>, vector<1x8x18xf32>
    %297 = vector.shape_cast %296 : vector<1x8x18xf32> to vector<8x18xf32>
    %298 = vector.extract_strided_slice %297 {offsets = [0, 0], sizes = [8, 16], strides = [1, 1]} : vector<8x18xf32> to vector<8x16xf32>
    %299 = vector.extract_strided_slice %297 {offsets = [0, 1], sizes = [8, 16], strides = [1, 1]} : vector<8x18xf32> to vector<8x16xf32>
    %300 = vector.extract_strided_slice %297 {offsets = [0, 2], sizes = [8, 16], strides = [1, 1]} : vector<8x18xf32> to vector<8x16xf32>
    %c1_158 = arith.constant 1 : index
    %c0_159 = arith.constant 0 : index
    %c0_160 = arith.constant 0 : index
    %301 = vector.load %arg10[%c1_158, %c0_159, %c0_160] : memref<3x18x18xf32, #tpu.memory_space<vmem>>, vector<1x8x18xf32>
    %302 = vector.shape_cast %301 : vector<1x8x18xf32> to vector<8x18xf32>
    %303 = vector.extract_strided_slice %302 {offsets = [0, 0], sizes = [8, 16], strides = [1, 1]} : vector<8x18xf32> to vector<8x16xf32>
    %304 = vector.extract_strided_slice %302 {offsets = [0, 1], sizes = [8, 16], strides = [1, 1]} : vector<8x18xf32> to vector<8x16xf32>
    %305 = vector.extract_strided_slice %302 {offsets = [0, 2], sizes = [8, 16], strides = [1, 1]} : vector<8x18xf32> to vector<8x16xf32>
    %c53 = arith.constant 53 : index
    %306 = memref.load %arg7[%c53] : memref<144xf32, #tpu.memory_space<smem>>
    %307 = vector.broadcast %306 : f32 to vector<8x16xf32>
    %308 = arith.mulf %299, %307 : vector<8x16xf32>
    %309 = arith.addf %215, %308 : vector<8x16xf32>
    %c55 = arith.constant 55 : index
    %310 = memref.load %arg7[%c55] : memref<144xf32, #tpu.memory_space<smem>>
    %311 = vector.broadcast %310 : f32 to vector<8x16xf32>
    %312 = arith.mulf %298, %311 : vector<8x16xf32>
    %313 = arith.addf %309, %312 : vector<8x16xf32>
    %c61 = arith.constant 61 : index
    %314 = memref.load %arg7[%c61] : memref<144xf32, #tpu.memory_space<smem>>
    %315 = vector.broadcast %314 : f32 to vector<8x16xf32>
    %316 = arith.mulf %304, %315 : vector<8x16xf32>
    %317 = arith.addf %313, %316 : vector<8x16xf32>
    %c63 = arith.constant 63 : index
    %318 = memref.load %arg7[%c63] : memref<144xf32, #tpu.memory_space<smem>>
    %319 = vector.broadcast %318 : f32 to vector<8x16xf32>
    %320 = arith.mulf %303, %319 : vector<8x16xf32>
    %321 = arith.addf %317, %320 : vector<8x16xf32>
    %c52 = arith.constant 52 : index
    %322 = memref.load %arg7[%c52] : memref<144xf32, #tpu.memory_space<smem>>
    %323 = vector.broadcast %322 : f32 to vector<8x16xf32>
    %324 = arith.mulf %300, %323 : vector<8x16xf32>
    %325 = arith.addf %231, %324 : vector<8x16xf32>
    %c54 = arith.constant 54 : index
    %326 = memref.load %arg7[%c54] : memref<144xf32, #tpu.memory_space<smem>>
    %327 = vector.broadcast %326 : f32 to vector<8x16xf32>
    %328 = arith.mulf %299, %327 : vector<8x16xf32>
    %329 = arith.addf %325, %328 : vector<8x16xf32>
    %c60 = arith.constant 60 : index
    %330 = memref.load %arg7[%c60] : memref<144xf32, #tpu.memory_space<smem>>
    %331 = vector.broadcast %330 : f32 to vector<8x16xf32>
    %332 = arith.mulf %305, %331 : vector<8x16xf32>
    %333 = arith.addf %329, %332 : vector<8x16xf32>
    %c62 = arith.constant 62 : index
    %334 = memref.load %arg7[%c62] : memref<144xf32, #tpu.memory_space<smem>>
    %335 = vector.broadcast %334 : f32 to vector<8x16xf32>
    %336 = arith.mulf %304, %335 : vector<8x16xf32>
    %337 = arith.addf %333, %336 : vector<8x16xf32>
    %c69 = arith.constant 69 : index
    %338 = memref.load %arg7[%c69] : memref<144xf32, #tpu.memory_space<smem>>
    %339 = vector.broadcast %338 : f32 to vector<8x16xf32>
    %340 = arith.mulf %299, %339 : vector<8x16xf32>
    %341 = arith.addf %247, %340 : vector<8x16xf32>
    %c71 = arith.constant 71 : index
    %342 = memref.load %arg7[%c71] : memref<144xf32, #tpu.memory_space<smem>>
    %343 = vector.broadcast %342 : f32 to vector<8x16xf32>
    %344 = arith.mulf %298, %343 : vector<8x16xf32>
    %345 = arith.addf %341, %344 : vector<8x16xf32>
    %c77 = arith.constant 77 : index
    %346 = memref.load %arg7[%c77] : memref<144xf32, #tpu.memory_space<smem>>
    %347 = vector.broadcast %346 : f32 to vector<8x16xf32>
    %348 = arith.mulf %304, %347 : vector<8x16xf32>
    %349 = arith.addf %345, %348 : vector<8x16xf32>
    %c79 = arith.constant 79 : index
    %350 = memref.load %arg7[%c79] : memref<144xf32, #tpu.memory_space<smem>>
    %351 = vector.broadcast %350 : f32 to vector<8x16xf32>
    %352 = arith.mulf %303, %351 : vector<8x16xf32>
    %353 = arith.addf %349, %352 : vector<8x16xf32>
    %c68 = arith.constant 68 : index
    %354 = memref.load %arg7[%c68] : memref<144xf32, #tpu.memory_space<smem>>
    %355 = vector.broadcast %354 : f32 to vector<8x16xf32>
    %356 = arith.mulf %300, %355 : vector<8x16xf32>
    %357 = arith.addf %263, %356 : vector<8x16xf32>
    %c70 = arith.constant 70 : index
    %358 = memref.load %arg7[%c70] : memref<144xf32, #tpu.memory_space<smem>>
    %359 = vector.broadcast %358 : f32 to vector<8x16xf32>
    %360 = arith.mulf %299, %359 : vector<8x16xf32>
    %361 = arith.addf %357, %360 : vector<8x16xf32>
    %c76 = arith.constant 76 : index
    %362 = memref.load %arg7[%c76] : memref<144xf32, #tpu.memory_space<smem>>
    %363 = vector.broadcast %362 : f32 to vector<8x16xf32>
    %364 = arith.mulf %305, %363 : vector<8x16xf32>
    %365 = arith.addf %361, %364 : vector<8x16xf32>
    %c78 = arith.constant 78 : index
    %366 = memref.load %arg7[%c78] : memref<144xf32, #tpu.memory_space<smem>>
    %367 = vector.broadcast %366 : f32 to vector<8x16xf32>
    %368 = arith.mulf %304, %367 : vector<8x16xf32>
    %369 = arith.addf %365, %368 : vector<8x16xf32>
    %c85 = arith.constant 85 : index
    %370 = memref.load %arg7[%c85] : memref<144xf32, #tpu.memory_space<smem>>
    %371 = vector.broadcast %370 : f32 to vector<8x16xf32>
    %372 = arith.mulf %299, %371 : vector<8x16xf32>
    %373 = arith.addf %279, %372 : vector<8x16xf32>
    %c87 = arith.constant 87 : index
    %374 = memref.load %arg7[%c87] : memref<144xf32, #tpu.memory_space<smem>>
    %375 = vector.broadcast %374 : f32 to vector<8x16xf32>
    %376 = arith.mulf %298, %375 : vector<8x16xf32>
    %377 = arith.addf %373, %376 : vector<8x16xf32>
    %c93 = arith.constant 93 : index
    %378 = memref.load %arg7[%c93] : memref<144xf32, #tpu.memory_space<smem>>
    %379 = vector.broadcast %378 : f32 to vector<8x16xf32>
    %380 = arith.mulf %304, %379 : vector<8x16xf32>
    %381 = arith.addf %377, %380 : vector<8x16xf32>
    %c95 = arith.constant 95 : index
    %382 = memref.load %arg7[%c95] : memref<144xf32, #tpu.memory_space<smem>>
    %383 = vector.broadcast %382 : f32 to vector<8x16xf32>
    %384 = arith.mulf %303, %383 : vector<8x16xf32>
    %385 = arith.addf %381, %384 : vector<8x16xf32>
    %c84 = arith.constant 84 : index
    %386 = memref.load %arg7[%c84] : memref<144xf32, #tpu.memory_space<smem>>
    %387 = vector.broadcast %386 : f32 to vector<8x16xf32>
    %388 = arith.mulf %300, %387 : vector<8x16xf32>
    %389 = arith.addf %295, %388 : vector<8x16xf32>
    %c86 = arith.constant 86 : index
    %390 = memref.load %arg7[%c86] : memref<144xf32, #tpu.memory_space<smem>>
    %391 = vector.broadcast %390 : f32 to vector<8x16xf32>
    %392 = arith.mulf %299, %391 : vector<8x16xf32>
    %393 = arith.addf %389, %392 : vector<8x16xf32>
    %c92 = arith.constant 92 : index
    %394 = memref.load %arg7[%c92] : memref<144xf32, #tpu.memory_space<smem>>
    %395 = vector.broadcast %394 : f32 to vector<8x16xf32>
    %396 = arith.mulf %305, %395 : vector<8x16xf32>
    %397 = arith.addf %393, %396 : vector<8x16xf32>
    %c94 = arith.constant 94 : index
    %398 = memref.load %arg7[%c94] : memref<144xf32, #tpu.memory_space<smem>>
    %399 = vector.broadcast %398 : f32 to vector<8x16xf32>
    %400 = arith.mulf %304, %399 : vector<8x16xf32>
    %401 = arith.addf %397, %400 : vector<8x16xf32>
    %c2_161 = arith.constant 2 : index
    %c1_162 = arith.constant 1 : index
    %c0_163 = arith.constant 0 : index
    %402 = vector.load %arg10[%c2_161, %c1_162, %c0_163] : memref<3x18x18xf32, #tpu.memory_space<vmem>>, vector<1x8x18xf32>
    %403 = vector.shape_cast %402 : vector<1x8x18xf32> to vector<8x18xf32>
    %404 = vector.extract_strided_slice %403 {offsets = [0, 0], sizes = [8, 16], strides = [1, 1]} : vector<8x18xf32> to vector<8x16xf32>
    %405 = vector.extract_strided_slice %403 {offsets = [0, 1], sizes = [8, 16], strides = [1, 1]} : vector<8x18xf32> to vector<8x16xf32>
    %406 = vector.extract_strided_slice %403 {offsets = [0, 2], sizes = [8, 16], strides = [1, 1]} : vector<8x18xf32> to vector<8x16xf32>
    %c2_164 = arith.constant 2 : index
    %c0_165 = arith.constant 0 : index
    %c0_166 = arith.constant 0 : index
    %407 = vector.load %arg10[%c2_164, %c0_165, %c0_166] : memref<3x18x18xf32, #tpu.memory_space<vmem>>, vector<1x8x18xf32>
    %408 = vector.shape_cast %407 : vector<1x8x18xf32> to vector<8x18xf32>
    %409 = vector.extract_strided_slice %408 {offsets = [0, 0], sizes = [8, 16], strides = [1, 1]} : vector<8x18xf32> to vector<8x16xf32>
    %410 = vector.extract_strided_slice %408 {offsets = [0, 1], sizes = [8, 16], strides = [1, 1]} : vector<8x18xf32> to vector<8x16xf32>
    %411 = vector.extract_strided_slice %408 {offsets = [0, 2], sizes = [8, 16], strides = [1, 1]} : vector<8x18xf32> to vector<8x16xf32>
    %c101 = arith.constant 101 : index
    %412 = memref.load %arg7[%c101] : memref<144xf32, #tpu.memory_space<smem>>
    %413 = vector.broadcast %412 : f32 to vector<8x16xf32>
    %414 = arith.mulf %405, %413 : vector<8x16xf32>
    %415 = arith.addf %321, %414 : vector<8x16xf32>
    %c103 = arith.constant 103 : index
    %416 = memref.load %arg7[%c103] : memref<144xf32, #tpu.memory_space<smem>>
    %417 = vector.broadcast %416 : f32 to vector<8x16xf32>
    %418 = arith.mulf %404, %417 : vector<8x16xf32>
    %419 = arith.addf %415, %418 : vector<8x16xf32>
    %c109 = arith.constant 109 : index
    %420 = memref.load %arg7[%c109] : memref<144xf32, #tpu.memory_space<smem>>
    %421 = vector.broadcast %420 : f32 to vector<8x16xf32>
    %422 = arith.mulf %410, %421 : vector<8x16xf32>
    %423 = arith.addf %419, %422 : vector<8x16xf32>
    %c111 = arith.constant 111 : index
    %424 = memref.load %arg7[%c111] : memref<144xf32, #tpu.memory_space<smem>>
    %425 = vector.broadcast %424 : f32 to vector<8x16xf32>
    %426 = arith.mulf %409, %425 : vector<8x16xf32>
    %427 = arith.addf %423, %426 : vector<8x16xf32>
    %c100 = arith.constant 100 : index
    %428 = memref.load %arg7[%c100] : memref<144xf32, #tpu.memory_space<smem>>
    %429 = vector.broadcast %428 : f32 to vector<8x16xf32>
    %430 = arith.mulf %406, %429 : vector<8x16xf32>
    %431 = arith.addf %337, %430 : vector<8x16xf32>
    %c102 = arith.constant 102 : index
    %432 = memref.load %arg7[%c102] : memref<144xf32, #tpu.memory_space<smem>>
    %433 = vector.broadcast %432 : f32 to vector<8x16xf32>
    %434 = arith.mulf %405, %433 : vector<8x16xf32>
    %435 = arith.addf %431, %434 : vector<8x16xf32>
    %c108 = arith.constant 108 : index
    %436 = memref.load %arg7[%c108] : memref<144xf32, #tpu.memory_space<smem>>
    %437 = vector.broadcast %436 : f32 to vector<8x16xf32>
    %438 = arith.mulf %411, %437 : vector<8x16xf32>
    %439 = arith.addf %435, %438 : vector<8x16xf32>
    %c110 = arith.constant 110 : index
    %440 = memref.load %arg7[%c110] : memref<144xf32, #tpu.memory_space<smem>>
    %441 = vector.broadcast %440 : f32 to vector<8x16xf32>
    %442 = arith.mulf %410, %441 : vector<8x16xf32>
    %443 = arith.addf %439, %442 : vector<8x16xf32>
    %c117 = arith.constant 117 : index
    %444 = memref.load %arg7[%c117] : memref<144xf32, #tpu.memory_space<smem>>
    %445 = vector.broadcast %444 : f32 to vector<8x16xf32>
    %446 = arith.mulf %405, %445 : vector<8x16xf32>
    %447 = arith.addf %353, %446 : vector<8x16xf32>
    %c119 = arith.constant 119 : index
    %448 = memref.load %arg7[%c119] : memref<144xf32, #tpu.memory_space<smem>>
    %449 = vector.broadcast %448 : f32 to vector<8x16xf32>
    %450 = arith.mulf %404, %449 : vector<8x16xf32>
    %451 = arith.addf %447, %450 : vector<8x16xf32>
    %c125 = arith.constant 125 : index
    %452 = memref.load %arg7[%c125] : memref<144xf32, #tpu.memory_space<smem>>
    %453 = vector.broadcast %452 : f32 to vector<8x16xf32>
    %454 = arith.mulf %410, %453 : vector<8x16xf32>
    %455 = arith.addf %451, %454 : vector<8x16xf32>
    %c127 = arith.constant 127 : index
    %456 = memref.load %arg7[%c127] : memref<144xf32, #tpu.memory_space<smem>>
    %457 = vector.broadcast %456 : f32 to vector<8x16xf32>
    %458 = arith.mulf %409, %457 : vector<8x16xf32>
    %459 = arith.addf %455, %458 : vector<8x16xf32>
    %c116 = arith.constant 116 : index
    %460 = memref.load %arg7[%c116] : memref<144xf32, #tpu.memory_space<smem>>
    %461 = vector.broadcast %460 : f32 to vector<8x16xf32>
    %462 = arith.mulf %406, %461 : vector<8x16xf32>
    %463 = arith.addf %369, %462 : vector<8x16xf32>
    %c118 = arith.constant 118 : index
    %464 = memref.load %arg7[%c118] : memref<144xf32, #tpu.memory_space<smem>>
    %465 = vector.broadcast %464 : f32 to vector<8x16xf32>
    %466 = arith.mulf %405, %465 : vector<8x16xf32>
    %467 = arith.addf %463, %466 : vector<8x16xf32>
    %c124 = arith.constant 124 : index
    %468 = memref.load %arg7[%c124] : memref<144xf32, #tpu.memory_space<smem>>
    %469 = vector.broadcast %468 : f32 to vector<8x16xf32>
    %470 = arith.mulf %411, %469 : vector<8x16xf32>
    %471 = arith.addf %467, %470 : vector<8x16xf32>
    %c126 = arith.constant 126 : index
    %472 = memref.load %arg7[%c126] : memref<144xf32, #tpu.memory_space<smem>>
    %473 = vector.broadcast %472 : f32 to vector<8x16xf32>
    %474 = arith.mulf %410, %473 : vector<8x16xf32>
    %475 = arith.addf %471, %474 : vector<8x16xf32>
    %c133 = arith.constant 133 : index
    %476 = memref.load %arg7[%c133] : memref<144xf32, #tpu.memory_space<smem>>
    %477 = vector.broadcast %476 : f32 to vector<8x16xf32>
    %478 = arith.mulf %405, %477 : vector<8x16xf32>
    %479 = arith.addf %385, %478 : vector<8x16xf32>
    %c135 = arith.constant 135 : index
    %480 = memref.load %arg7[%c135] : memref<144xf32, #tpu.memory_space<smem>>
    %481 = vector.broadcast %480 : f32 to vector<8x16xf32>
    %482 = arith.mulf %404, %481 : vector<8x16xf32>
    %483 = arith.addf %479, %482 : vector<8x16xf32>
    %c141 = arith.constant 141 : index
    %484 = memref.load %arg7[%c141] : memref<144xf32, #tpu.memory_space<smem>>
    %485 = vector.broadcast %484 : f32 to vector<8x16xf32>
    %486 = arith.mulf %410, %485 : vector<8x16xf32>
    %487 = arith.addf %483, %486 : vector<8x16xf32>
    %c143 = arith.constant 143 : index
    %488 = memref.load %arg7[%c143] : memref<144xf32, #tpu.memory_space<smem>>
    %489 = vector.broadcast %488 : f32 to vector<8x16xf32>
    %490 = arith.mulf %409, %489 : vector<8x16xf32>
    %491 = arith.addf %487, %490 : vector<8x16xf32>
    %c132 = arith.constant 132 : index
    %492 = memref.load %arg7[%c132] : memref<144xf32, #tpu.memory_space<smem>>
    %493 = vector.broadcast %492 : f32 to vector<8x16xf32>
    %494 = arith.mulf %406, %493 : vector<8x16xf32>
    %495 = arith.addf %401, %494 : vector<8x16xf32>
    %c134 = arith.constant 134 : index
    %496 = memref.load %arg7[%c134] : memref<144xf32, #tpu.memory_space<smem>>
    %497 = vector.broadcast %496 : f32 to vector<8x16xf32>
    %498 = arith.mulf %405, %497 : vector<8x16xf32>
    %499 = arith.addf %495, %498 : vector<8x16xf32>
    %c140 = arith.constant 140 : index
    %500 = memref.load %arg7[%c140] : memref<144xf32, #tpu.memory_space<smem>>
    %501 = vector.broadcast %500 : f32 to vector<8x16xf32>
    %502 = arith.mulf %411, %501 : vector<8x16xf32>
    %503 = arith.addf %499, %502 : vector<8x16xf32>
    %c142 = arith.constant 142 : index
    %504 = memref.load %arg7[%c142] : memref<144xf32, #tpu.memory_space<smem>>
    %505 = vector.broadcast %504 : f32 to vector<8x16xf32>
    %506 = arith.mulf %410, %505 : vector<8x16xf32>
    %507 = arith.addf %503, %506 : vector<8x16xf32>
    %c0_167 = arith.constant 0 : index
    %c0_168 = arith.constant 0 : index
    %c0_169 = arith.constant 0 : index
    %c0_170 = arith.constant 0 : index
    %c0_171 = arith.constant 0 : index
    %508 = vector.load %arg9[%c0_167, %c0_168, %c0_169, %c0_170, %c0_171] : memref<1x3x4x16x16xf32, #tpu.memory_space<vmem>>, vector<1x1x1x8x16xf32>
    %509 = vector.shape_cast %508 : vector<1x1x1x8x16xf32> to vector<8x16xf32>
    %510 = vector.shape_cast %427 : vector<8x16xf32> to vector<1x1x1x8x16xf32>
    tpu.vector_store %arg9[%c0_167, %c0_168, %c0_169, %c0_170, %c0_171], %510 {strides = array<i32>} : memref<1x3x4x16x16xf32, #tpu.memory_space<vmem>>, vector<1x1x1x8x16xf32>,
    %c0_172 = arith.constant 0 : index
    %c0_173 = arith.constant 0 : index
    %c1_174 = arith.constant 1 : index
    %c0_175 = arith.constant 0 : index
    %c0_176 = arith.constant 0 : index
    %511 = vector.load %arg9[%c0_172, %c0_173, %c1_174, %c0_175, %c0_176] : memref<1x3x4x16x16xf32, #tpu.memory_space<vmem>>, vector<1x1x1x8x16xf32>
    %512 = vector.shape_cast %511 : vector<1x1x1x8x16xf32> to vector<8x16xf32>
    %513 = vector.shape_cast %443 : vector<8x16xf32> to vector<1x1x1x8x16xf32>
    tpu.vector_store %arg9[%c0_172, %c0_173, %c1_174, %c0_175, %c0_176], %513 {strides = array<i32>} : memref<1x3x4x16x16xf32, #tpu.memory_space<vmem>>, vector<1x1x1x8x16xf32>,
    %c0_177 = arith.constant 0 : index
    %c1_178 = arith.constant 1 : index
    %c0_179 = arith.constant 0 : index
    %c0_180 = arith.constant 0 : index
    %c0_181 = arith.constant 0 : index
    %514 = vector.load %arg9[%c0_177, %c1_178, %c0_179, %c0_180, %c0_181] : memref<1x3x4x16x16xf32, #tpu.memory_space<vmem>>, vector<1x1x1x8x16xf32>
    %515 = vector.shape_cast %514 : vector<1x1x1x8x16xf32> to vector<8x16xf32>
    %516 = vector.shape_cast %459 : vector<8x16xf32> to vector<1x1x1x8x16xf32>
    tpu.vector_store %arg9[%c0_177, %c1_178, %c0_179, %c0_180, %c0_181], %516 {strides = array<i32>} : memref<1x3x4x16x16xf32, #tpu.memory_space<vmem>>, vector<1x1x1x8x16xf32>,
    %c0_182 = arith.constant 0 : index
    %c1_183 = arith.constant 1 : index
    %c1_184 = arith.constant 1 : index
    %c0_185 = arith.constant 0 : index
    %c0_186 = arith.constant 0 : index
    %517 = vector.load %arg9[%c0_182, %c1_183, %c1_184, %c0_185, %c0_186] : memref<1x3x4x16x16xf32, #tpu.memory_space<vmem>>, vector<1x1x1x8x16xf32>
    %518 = vector.shape_cast %517 : vector<1x1x1x8x16xf32> to vector<8x16xf32>
    %519 = vector.shape_cast %475 : vector<8x16xf32> to vector<1x1x1x8x16xf32>
    tpu.vector_store %arg9[%c0_182, %c1_183, %c1_184, %c0_185, %c0_186], %519 {strides = array<i32>} : memref<1x3x4x16x16xf32, #tpu.memory_space<vmem>>, vector<1x1x1x8x16xf32>,
    %c0_187 = arith.constant 0 : index
    %c2_188 = arith.constant 2 : index
    %c0_189 = arith.constant 0 : index
    %c0_190 = arith.constant 0 : index
    %c0_191 = arith.constant 0 : index
    %520 = vector.load %arg9[%c0_187, %c2_188, %c0_189, %c0_190, %c0_191] : memref<1x3x4x16x16xf32, #tpu.memory_space<vmem>>, vector<1x1x1x8x16xf32>
    %521 = vector.shape_cast %520 : vector<1x1x1x8x16xf32> to vector<8x16xf32>
    %522 = vector.shape_cast %491 : vector<8x16xf32> to vector<1x1x1x8x16xf32>
    tpu.vector_store %arg9[%c0_187, %c2_188, %c0_189, %c0_190, %c0_191], %522 {strides = array<i32>} : memref<1x3x4x16x16xf32, #tpu.memory_space<vmem>>, vector<1x1x1x8x16xf32>,
    %c0_192 = arith.constant 0 : index
    %c2_193 = arith.constant 2 : index
    %c1_194 = arith.constant 1 : index
    %c0_195 = arith.constant 0 : index
    %c0_196 = arith.constant 0 : index
    %523 = vector.load %arg9[%c0_192, %c2_193, %c1_194, %c0_195, %c0_196] : memref<1x3x4x16x16xf32, #tpu.memory_space<vmem>>, vector<1x1x1x8x16xf32>
    %524 = vector.shape_cast %523 : vector<1x1x1x8x16xf32> to vector<8x16xf32>
    %525 = vector.shape_cast %507 : vector<8x16xf32> to vector<1x1x1x8x16xf32>
    tpu.vector_store %arg9[%c0_192, %c2_193, %c1_194, %c0_195, %c0_196], %525 {strides = array<i32>} : memref<1x3x4x16x16xf32, #tpu.memory_space<vmem>>, vector<1x1x1x8x16xf32>,
    %c0_197 = arith.constant 0 : index
    %c2_198 = arith.constant 2 : index
    %c0_199 = arith.constant 0 : index
    %526 = vector.load %arg10[%c0_197, %c2_198, %c0_199] : memref<3x18x18xf32, #tpu.memory_space<vmem>>, vector<1x8x18xf32>
    %527 = vector.shape_cast %526 : vector<1x8x18xf32> to vector<8x18xf32>
    %528 = vector.extract_strided_slice %527 {offsets = [0, 0], sizes = [8, 16], strides = [1, 1]} : vector<8x18xf32> to vector<8x16xf32>
    %529 = vector.extract_strided_slice %527 {offsets = [0, 1], sizes = [8, 16], strides = [1, 1]} : vector<8x18xf32> to vector<8x16xf32>
    %530 = vector.extract_strided_slice %527 {offsets = [0, 2], sizes = [8, 16], strides = [1, 1]} : vector<8x18xf32> to vector<8x16xf32>
    %c0_200 = arith.constant 0 : index
    %c1_201 = arith.constant 1 : index
    %c0_202 = arith.constant 0 : index
    %531 = vector.load %arg10[%c0_200, %c1_201, %c0_202] : memref<3x18x18xf32, #tpu.memory_space<vmem>>, vector<1x8x18xf32>
    %532 = vector.shape_cast %531 : vector<1x8x18xf32> to vector<8x18xf32>
    %533 = vector.extract_strided_slice %532 {offsets = [0, 0], sizes = [8, 16], strides = [1, 1]} : vector<8x18xf32> to vector<8x16xf32>
    %534 = vector.extract_strided_slice %532 {offsets = [0, 1], sizes = [8, 16], strides = [1, 1]} : vector<8x18xf32> to vector<8x16xf32>
    %535 = vector.extract_strided_slice %532 {offsets = [0, 2], sizes = [8, 16], strides = [1, 1]} : vector<8x18xf32> to vector<8x16xf32>
    %c1_203 = arith.constant 1 : index
    %536 = memref.load %arg7[%c1_203] : memref<144xf32, #tpu.memory_space<smem>>
    %537 = vector.broadcast %536 : f32 to vector<8x16xf32>
    %538 = arith.mulf %529, %537 : vector<8x16xf32>
    %539 = arith.addf %185, %538 : vector<8x16xf32>
    %c3_204 = arith.constant 3 : index
    %540 = memref.load %arg7[%c3_204] : memref<144xf32, #tpu.memory_space<smem>>
    %541 = vector.broadcast %540 : f32 to vector<8x16xf32>
    %542 = arith.mulf %528, %541 : vector<8x16xf32>
    %543 = arith.addf %539, %542 : vector<8x16xf32>
    %c9_205 = arith.constant 9 : index
    %544 = memref.load %arg7[%c9_205] : memref<144xf32, #tpu.memory_space<smem>>
    %545 = vector.broadcast %544 : f32 to vector<8x16xf32>
    %546 = arith.mulf %534, %545 : vector<8x16xf32>
    %547 = arith.addf %543, %546 : vector<8x16xf32>
    %c11_206 = arith.constant 11 : index
    %548 = memref.load %arg7[%c11_206] : memref<144xf32, #tpu.memory_space<smem>>
    %549 = vector.broadcast %548 : f32 to vector<8x16xf32>
    %550 = arith.mulf %533, %549 : vector<8x16xf32>
    %551 = arith.addf %547, %550 : vector<8x16xf32>
    %c0_207 = arith.constant 0 : index
    %552 = memref.load %arg7[%c0_207] : memref<144xf32, #tpu.memory_space<smem>>
    %553 = vector.broadcast %552 : f32 to vector<8x16xf32>
    %554 = arith.mulf %530, %553 : vector<8x16xf32>
    %555 = arith.addf %185, %554 : vector<8x16xf32>
    %c2_208 = arith.constant 2 : index
    %556 = memref.load %arg7[%c2_208] : memref<144xf32, #tpu.memory_space<smem>>
    %557 = vector.broadcast %556 : f32 to vector<8x16xf32>
    %558 = arith.mulf %529, %557 : vector<8x16xf32>
    %559 = arith.addf %555, %558 : vector<8x16xf32>
    %c8_209 = arith.constant 8 : index
    %560 = memref.load %arg7[%c8_209] : memref<144xf32, #tpu.memory_space<smem>>
    %561 = vector.broadcast %560 : f32 to vector<8x16xf32>
    %562 = arith.mulf %535, %561 : vector<8x16xf32>
    %563 = arith.addf %559, %562 : vector<8x16xf32>
    %c10_210 = arith.constant 10 : index
    %564 = memref.load %arg7[%c10_210] : memref<144xf32, #tpu.memory_space<smem>>
    %565 = vector.broadcast %564 : f32 to vector<8x16xf32>
    %566 = arith.mulf %534, %565 : vector<8x16xf32>
    %567 = arith.addf %563, %566 : vector<8x16xf32>
    %c17_211 = arith.constant 17 : index
    %568 = memref.load %arg7[%c17_211] : memref<144xf32, #tpu.memory_space<smem>>
    %569 = vector.broadcast %568 : f32 to vector<8x16xf32>
    %570 = arith.mulf %529, %569 : vector<8x16xf32>
    %571 = arith.addf %187, %570 : vector<8x16xf32>
    %c19 = arith.constant 19 : index
    %572 = memref.load %arg7[%c19] : memref<144xf32, #tpu.memory_space<smem>>
    %573 = vector.broadcast %572 : f32 to vector<8x16xf32>
    %574 = arith.mulf %528, %573 : vector<8x16xf32>
    %575 = arith.addf %571, %574 : vector<8x16xf32>
    %c25 = arith.constant 25 : index
    %576 = memref.load %arg7[%c25] : memref<144xf32, #tpu.memory_space<smem>>
    %577 = vector.broadcast %576 : f32 to vector<8x16xf32>
    %578 = arith.mulf %534, %577 : vector<8x16xf32>
    %579 = arith.addf %575, %578 : vector<8x16xf32>
    %c27 = arith.constant 27 : index
    %580 = memref.load %arg7[%c27] : memref<144xf32, #tpu.memory_space<smem>>
    %581 = vector.broadcast %580 : f32 to vector<8x16xf32>
    %582 = arith.mulf %533, %581 : vector<8x16xf32>
    %583 = arith.addf %579, %582 : vector<8x16xf32>
    %c16 = arith.constant 16 : index
    %584 = memref.load %arg7[%c16] : memref<144xf32, #tpu.memory_space<smem>>
    %585 = vector.broadcast %584 : f32 to vector<8x16xf32>
    %586 = arith.mulf %530, %585 : vector<8x16xf32>
    %587 = arith.addf %187, %586 : vector<8x16xf32>
    %c18 = arith.constant 18 : index
    %588 = memref.load %arg7[%c18] : memref<144xf32, #tpu.memory_space<smem>>
    %589 = vector.broadcast %588 : f32 to vector<8x16xf32>
    %590 = arith.mulf %529, %589 : vector<8x16xf32>
    %591 = arith.addf %587, %590 : vector<8x16xf32>
    %c24 = arith.constant 24 : index
    %592 = memref.load %arg7[%c24] : memref<144xf32, #tpu.memory_space<smem>>
    %593 = vector.broadcast %592 : f32 to vector<8x16xf32>
    %594 = arith.mulf %535, %593 : vector<8x16xf32>
    %595 = arith.addf %591, %594 : vector<8x16xf32>
    %c26 = arith.constant 26 : index
    %596 = memref.load %arg7[%c26] : memref<144xf32, #tpu.memory_space<smem>>
    %597 = vector.broadcast %596 : f32 to vector<8x16xf32>
    %598 = arith.mulf %534, %597 : vector<8x16xf32>
    %599 = arith.addf %595, %598 : vector<8x16xf32>
    %c33 = arith.constant 33 : index
    %600 = memref.load %arg7[%c33] : memref<144xf32, #tpu.memory_space<smem>>
    %601 = vector.broadcast %600 : f32 to vector<8x16xf32>
    %602 = arith.mulf %529, %601 : vector<8x16xf32>
    %603 = arith.addf %189, %602 : vector<8x16xf32>
    %c35 = arith.constant 35 : index
    %604 = memref.load %arg7[%c35] : memref<144xf32, #tpu.memory_space<smem>>
    %605 = vector.broadcast %604 : f32 to vector<8x16xf32>
    %606 = arith.mulf %528, %605 : vector<8x16xf32>
    %607 = arith.addf %603, %606 : vector<8x16xf32>
    %c41 = arith.constant 41 : index
    %608 = memref.load %arg7[%c41] : memref<144xf32, #tpu.memory_space<smem>>
    %609 = vector.broadcast %608 : f32 to vector<8x16xf32>
    %610 = arith.mulf %534, %609 : vector<8x16xf32>
    %611 = arith.addf %607, %610 : vector<8x16xf32>
    %c43 = arith.constant 43 : index
    %612 = memref.load %arg7[%c43] : memref<144xf32, #tpu.memory_space<smem>>
    %613 = vector.broadcast %612 : f32 to vector<8x16xf32>
    %614 = arith.mulf %533, %613 : vector<8x16xf32>
    %615 = arith.addf %611, %614 : vector<8x16xf32>
    %c32 = arith.constant 32 : index
    %616 = memref.load %arg7[%c32] : memref<144xf32, #tpu.memory_space<smem>>
    %617 = vector.broadcast %616 : f32 to vector<8x16xf32>
    %618 = arith.mulf %530, %617 : vector<8x16xf32>
    %619 = arith.addf %189, %618 : vector<8x16xf32>
    %c34 = arith.constant 34 : index
    %620 = memref.load %arg7[%c34] : memref<144xf32, #tpu.memory_space<smem>>
    %621 = vector.broadcast %620 : f32 to vector<8x16xf32>
    %622 = arith.mulf %529, %621 : vector<8x16xf32>
    %623 = arith.addf %619, %622 : vector<8x16xf32>
    %c40 = arith.constant 40 : index
    %624 = memref.load %arg7[%c40] : memref<144xf32, #tpu.memory_space<smem>>
    %625 = vector.broadcast %624 : f32 to vector<8x16xf32>
    %626 = arith.mulf %535, %625 : vector<8x16xf32>
    %627 = arith.addf %623, %626 : vector<8x16xf32>
    %c42 = arith.constant 42 : index
    %628 = memref.load %arg7[%c42] : memref<144xf32, #tpu.memory_space<smem>>
    %629 = vector.broadcast %628 : f32 to vector<8x16xf32>
    %630 = arith.mulf %534, %629 : vector<8x16xf32>
    %631 = arith.addf %627, %630 : vector<8x16xf32>
    %c1_212 = arith.constant 1 : index
    %c2_213 = arith.constant 2 : index
    %c0_214 = arith.constant 0 : index
    %632 = vector.load %arg10[%c1_212, %c2_213, %c0_214] : memref<3x18x18xf32, #tpu.memory_space<vmem>>, vector<1x8x18xf32>
    %633 = vector.shape_cast %632 : vector<1x8x18xf32> to vector<8x18xf32>
    %634 = vector.extract_strided_slice %633 {offsets = [0, 0], sizes = [8, 16], strides = [1, 1]} : vector<8x18xf32> to vector<8x16xf32>
    %635 = vector.extract_strided_slice %633 {offsets = [0, 1], sizes = [8, 16], strides = [1, 1]} : vector<8x18xf32> to vector<8x16xf32>
    %636 = vector.extract_strided_slice %633 {offsets = [0, 2], sizes = [8, 16], strides = [1, 1]} : vector<8x18xf32> to vector<8x16xf32>
    %c1_215 = arith.constant 1 : index
    %c1_216 = arith.constant 1 : index
    %c0_217 = arith.constant 0 : index
    %637 = vector.load %arg10[%c1_215, %c1_216, %c0_217] : memref<3x18x18xf32, #tpu.memory_space<vmem>>, vector<1x8x18xf32>
    %638 = vector.shape_cast %637 : vector<1x8x18xf32> to vector<8x18xf32>
    %639 = vector.extract_strided_slice %638 {offsets = [0, 0], sizes = [8, 16], strides = [1, 1]} : vector<8x18xf32> to vector<8x16xf32>
    %640 = vector.extract_strided_slice %638 {offsets = [0, 1], sizes = [8, 16], strides = [1, 1]} : vector<8x18xf32> to vector<8x16xf32>
    %641 = vector.extract_strided_slice %638 {offsets = [0, 2], sizes = [8, 16], strides = [1, 1]} : vector<8x18xf32> to vector<8x16xf32>
    %c49 = arith.constant 49 : index
    %642 = memref.load %arg7[%c49] : memref<144xf32, #tpu.memory_space<smem>>
    %643 = vector.broadcast %642 : f32 to vector<8x16xf32>
    %644 = arith.mulf %635, %643 : vector<8x16xf32>
    %645 = arith.addf %551, %644 : vector<8x16xf32>
    %c51 = arith.constant 51 : index
    %646 = memref.load %arg7[%c51] : memref<144xf32, #tpu.memory_space<smem>>
    %647 = vector.broadcast %646 : f32 to vector<8x16xf32>
    %648 = arith.mulf %634, %647 : vector<8x16xf32>
    %649 = arith.addf %645, %648 : vector<8x16xf32>
    %c57 = arith.constant 57 : index
    %650 = memref.load %arg7[%c57] : memref<144xf32, #tpu.memory_space<smem>>
    %651 = vector.broadcast %650 : f32 to vector<8x16xf32>
    %652 = arith.mulf %640, %651 : vector<8x16xf32>
    %653 = arith.addf %649, %652 : vector<8x16xf32>
    %c59 = arith.constant 59 : index
    %654 = memref.load %arg7[%c59] : memref<144xf32, #tpu.memory_space<smem>>
    %655 = vector.broadcast %654 : f32 to vector<8x16xf32>
    %656 = arith.mulf %639, %655 : vector<8x16xf32>
    %657 = arith.addf %653, %656 : vector<8x16xf32>
    %c48 = arith.constant 48 : index
    %658 = memref.load %arg7[%c48] : memref<144xf32, #tpu.memory_space<smem>>
    %659 = vector.broadcast %658 : f32 to vector<8x16xf32>
    %660 = arith.mulf %636, %659 : vector<8x16xf32>
    %661 = arith.addf %567, %660 : vector<8x16xf32>
    %c50 = arith.constant 50 : index
    %662 = memref.load %arg7[%c50] : memref<144xf32, #tpu.memory_space<smem>>
    %663 = vector.broadcast %662 : f32 to vector<8x16xf32>
    %664 = arith.mulf %635, %663 : vector<8x16xf32>
    %665 = arith.addf %661, %664 : vector<8x16xf32>
    %c56 = arith.constant 56 : index
    %666 = memref.load %arg7[%c56] : memref<144xf32, #tpu.memory_space<smem>>
    %667 = vector.broadcast %666 : f32 to vector<8x16xf32>
    %668 = arith.mulf %641, %667 : vector<8x16xf32>
    %669 = arith.addf %665, %668 : vector<8x16xf32>
    %c58 = arith.constant 58 : index
    %670 = memref.load %arg7[%c58] : memref<144xf32, #tpu.memory_space<smem>>
    %671 = vector.broadcast %670 : f32 to vector<8x16xf32>
    %672 = arith.mulf %640, %671 : vector<8x16xf32>
    %673 = arith.addf %669, %672 : vector<8x16xf32>
    %c65 = arith.constant 65 : index
    %674 = memref.load %arg7[%c65] : memref<144xf32, #tpu.memory_space<smem>>
    %675 = vector.broadcast %674 : f32 to vector<8x16xf32>
    %676 = arith.mulf %635, %675 : vector<8x16xf32>
    %677 = arith.addf %583, %676 : vector<8x16xf32>
    %c67 = arith.constant 67 : index
    %678 = memref.load %arg7[%c67] : memref<144xf32, #tpu.memory_space<smem>>
    %679 = vector.broadcast %678 : f32 to vector<8x16xf32>
    %680 = arith.mulf %634, %679 : vector<8x16xf32>
    %681 = arith.addf %677, %680 : vector<8x16xf32>
    %c73 = arith.constant 73 : index
    %682 = memref.load %arg7[%c73] : memref<144xf32, #tpu.memory_space<smem>>
    %683 = vector.broadcast %682 : f32 to vector<8x16xf32>
    %684 = arith.mulf %640, %683 : vector<8x16xf32>
    %685 = arith.addf %681, %684 : vector<8x16xf32>
    %c75 = arith.constant 75 : index
    %686 = memref.load %arg7[%c75] : memref<144xf32, #tpu.memory_space<smem>>
    %687 = vector.broadcast %686 : f32 to vector<8x16xf32>
    %688 = arith.mulf %639, %687 : vector<8x16xf32>
    %689 = arith.addf %685, %688 : vector<8x16xf32>
    %c64 = arith.constant 64 : index
    %690 = memref.load %arg7[%c64] : memref<144xf32, #tpu.memory_space<smem>>
    %691 = vector.broadcast %690 : f32 to vector<8x16xf32>
    %692 = arith.mulf %636, %691 : vector<8x16xf32>
    %693 = arith.addf %599, %692 : vector<8x16xf32>
    %c66 = arith.constant 66 : index
    %694 = memref.load %arg7[%c66] : memref<144xf32, #tpu.memory_space<smem>>
    %695 = vector.broadcast %694 : f32 to vector<8x16xf32>
    %696 = arith.mulf %635, %695 : vector<8x16xf32>
    %697 = arith.addf %693, %696 : vector<8x16xf32>
    %c72 = arith.constant 72 : index
    %698 = memref.load %arg7[%c72] : memref<144xf32, #tpu.memory_space<smem>>
    %699 = vector.broadcast %698 : f32 to vector<8x16xf32>
    %700 = arith.mulf %641, %699 : vector<8x16xf32>
    %701 = arith.addf %697, %700 : vector<8x16xf32>
    %c74 = arith.constant 74 : index
    %702 = memref.load %arg7[%c74] : memref<144xf32, #tpu.memory_space<smem>>
    %703 = vector.broadcast %702 : f32 to vector<8x16xf32>
    %704 = arith.mulf %640, %703 : vector<8x16xf32>
    %705 = arith.addf %701, %704 : vector<8x16xf32>
    %c81 = arith.constant 81 : index
    %706 = memref.load %arg7[%c81] : memref<144xf32, #tpu.memory_space<smem>>
    %707 = vector.broadcast %706 : f32 to vector<8x16xf32>
    %708 = arith.mulf %635, %707 : vector<8x16xf32>
    %709 = arith.addf %615, %708 : vector<8x16xf32>
    %c83 = arith.constant 83 : index
    %710 = memref.load %arg7[%c83] : memref<144xf32, #tpu.memory_space<smem>>
    %711 = vector.broadcast %710 : f32 to vector<8x16xf32>
    %712 = arith.mulf %634, %711 : vector<8x16xf32>
    %713 = arith.addf %709, %712 : vector<8x16xf32>
    %c89 = arith.constant 89 : index
    %714 = memref.load %arg7[%c89] : memref<144xf32, #tpu.memory_space<smem>>
    %715 = vector.broadcast %714 : f32 to vector<8x16xf32>
    %716 = arith.mulf %640, %715 : vector<8x16xf32>
    %717 = arith.addf %713, %716 : vector<8x16xf32>
    %c91 = arith.constant 91 : index
    %718 = memref.load %arg7[%c91] : memref<144xf32, #tpu.memory_space<smem>>
    %719 = vector.broadcast %718 : f32 to vector<8x16xf32>
    %720 = arith.mulf %639, %719 : vector<8x16xf32>
    %721 = arith.addf %717, %720 : vector<8x16xf32>
    %c80 = arith.constant 80 : index
    %722 = memref.load %arg7[%c80] : memref<144xf32, #tpu.memory_space<smem>>
    %723 = vector.broadcast %722 : f32 to vector<8x16xf32>
    %724 = arith.mulf %636, %723 : vector<8x16xf32>
    %725 = arith.addf %631, %724 : vector<8x16xf32>
    %c82 = arith.constant 82 : index
    %726 = memref.load %arg7[%c82] : memref<144xf32, #tpu.memory_space<smem>>
    %727 = vector.broadcast %726 : f32 to vector<8x16xf32>
    %728 = arith.mulf %635, %727 : vector<8x16xf32>
    %729 = arith.addf %725, %728 : vector<8x16xf32>
    %c88 = arith.constant 88 : index
    %730 = memref.load %arg7[%c88] : memref<144xf32, #tpu.memory_space<smem>>
    %731 = vector.broadcast %730 : f32 to vector<8x16xf32>
    %732 = arith.mulf %641, %731 : vector<8x16xf32>
    %733 = arith.addf %729, %732 : vector<8x16xf32>
    %c90 = arith.constant 90 : index
    %734 = memref.load %arg7[%c90] : memref<144xf32, #tpu.memory_space<smem>>
    %735 = vector.broadcast %734 : f32 to vector<8x16xf32>
    %736 = arith.mulf %640, %735 : vector<8x16xf32>
    %737 = arith.addf %733, %736 : vector<8x16xf32>
    %c2_218 = arith.constant 2 : index
    %c2_219 = arith.constant 2 : index
    %c0_220 = arith.constant 0 : index
    %738 = vector.load %arg10[%c2_218, %c2_219, %c0_220] : memref<3x18x18xf32, #tpu.memory_space<vmem>>, vector<1x8x18xf32>
    %739 = vector.shape_cast %738 : vector<1x8x18xf32> to vector<8x18xf32>
    %740 = vector.extract_strided_slice %739 {offsets = [0, 0], sizes = [8, 16], strides = [1, 1]} : vector<8x18xf32> to vector<8x16xf32>
    %741 = vector.extract_strided_slice %739 {offsets = [0, 1], sizes = [8, 16], strides = [1, 1]} : vector<8x18xf32> to vector<8x16xf32>
    %742 = vector.extract_strided_slice %739 {offsets = [0, 2], sizes = [8, 16], strides = [1, 1]} : vector<8x18xf32> to vector<8x16xf32>
    %c2_221 = arith.constant 2 : index
    %c1_222 = arith.constant 1 : index
    %c0_223 = arith.constant 0 : index
    %743 = vector.load %arg10[%c2_221, %c1_222, %c0_223] : memref<3x18x18xf32, #tpu.memory_space<vmem>>, vector<1x8x18xf32>
    %744 = vector.shape_cast %743 : vector<1x8x18xf32> to vector<8x18xf32>
    %745 = vector.extract_strided_slice %744 {offsets = [0, 0], sizes = [8, 16], strides = [1, 1]} : vector<8x18xf32> to vector<8x16xf32>
    %746 = vector.extract_strided_slice %744 {offsets = [0, 1], sizes = [8, 16], strides = [1, 1]} : vector<8x18xf32> to vector<8x16xf32>
    %747 = vector.extract_strided_slice %744 {offsets = [0, 2], sizes = [8, 16], strides = [1, 1]} : vector<8x18xf32> to vector<8x16xf32>
    %c97 = arith.constant 97 : index
    %748 = memref.load %arg7[%c97] : memref<144xf32, #tpu.memory_space<smem>>
    %749 = vector.broadcast %748 : f32 to vector<8x16xf32>
    %750 = arith.mulf %741, %749 : vector<8x16xf32>
    %751 = arith.addf %657, %750 : vector<8x16xf32>
    %c99 = arith.constant 99 : index
    %752 = memref.load %arg7[%c99] : memref<144xf32, #tpu.memory_space<smem>>
    %753 = vector.broadcast %752 : f32 to vector<8x16xf32>
    %754 = arith.mulf %740, %753 : vector<8x16xf32>
    %755 = arith.addf %751, %754 : vector<8x16xf32>
    %c105 = arith.constant 105 : index
    %756 = memref.load %arg7[%c105] : memref<144xf32, #tpu.memory_space<smem>>
    %757 = vector.broadcast %756 : f32 to vector<8x16xf32>
    %758 = arith.mulf %746, %757 : vector<8x16xf32>
    %759 = arith.addf %755, %758 : vector<8x16xf32>
    %c107 = arith.constant 107 : index
    %760 = memref.load %arg7[%c107] : memref<144xf32, #tpu.memory_space<smem>>
    %761 = vector.broadcast %760 : f32 to vector<8x16xf32>
    %762 = arith.mulf %745, %761 : vector<8x16xf32>
    %763 = arith.addf %759, %762 : vector<8x16xf32>
    %c96 = arith.constant 96 : index
    %764 = memref.load %arg7[%c96] : memref<144xf32, #tpu.memory_space<smem>>
    %765 = vector.broadcast %764 : f32 to vector<8x16xf32>
    %766 = arith.mulf %742, %765 : vector<8x16xf32>
    %767 = arith.addf %673, %766 : vector<8x16xf32>
    %c98 = arith.constant 98 : index
    %768 = memref.load %arg7[%c98] : memref<144xf32, #tpu.memory_space<smem>>
    %769 = vector.broadcast %768 : f32 to vector<8x16xf32>
    %770 = arith.mulf %741, %769 : vector<8x16xf32>
    %771 = arith.addf %767, %770 : vector<8x16xf32>
    %c104 = arith.constant 104 : index
    %772 = memref.load %arg7[%c104] : memref<144xf32, #tpu.memory_space<smem>>
    %773 = vector.broadcast %772 : f32 to vector<8x16xf32>
    %774 = arith.mulf %747, %773 : vector<8x16xf32>
    %775 = arith.addf %771, %774 : vector<8x16xf32>
    %c106 = arith.constant 106 : index
    %776 = memref.load %arg7[%c106] : memref<144xf32, #tpu.memory_space<smem>>
    %777 = vector.broadcast %776 : f32 to vector<8x16xf32>
    %778 = arith.mulf %746, %777 : vector<8x16xf32>
    %779 = arith.addf %775, %778 : vector<8x16xf32>
    %c113 = arith.constant 113 : index
    %780 = memref.load %arg7[%c113] : memref<144xf32, #tpu.memory_space<smem>>
    %781 = vector.broadcast %780 : f32 to vector<8x16xf32>
    %782 = arith.mulf %741, %781 : vector<8x16xf32>
    %783 = arith.addf %689, %782 : vector<8x16xf32>
    %c115 = arith.constant 115 : index
    %784 = memref.load %arg7[%c115] : memref<144xf32, #tpu.memory_space<smem>>
    %785 = vector.broadcast %784 : f32 to vector<8x16xf32>
    %786 = arith.mulf %740, %785 : vector<8x16xf32>
    %787 = arith.addf %783, %786 : vector<8x16xf32>
    %c121 = arith.constant 121 : index
    %788 = memref.load %arg7[%c121] : memref<144xf32, #tpu.memory_space<smem>>
    %789 = vector.broadcast %788 : f32 to vector<8x16xf32>
    %790 = arith.mulf %746, %789 : vector<8x16xf32>
    %791 = arith.addf %787, %790 : vector<8x16xf32>
    %c123 = arith.constant 123 : index
    %792 = memref.load %arg7[%c123] : memref<144xf32, #tpu.memory_space<smem>>
    %793 = vector.broadcast %792 : f32 to vector<8x16xf32>
    %794 = arith.mulf %745, %793 : vector<8x16xf32>
    %795 = arith.addf %791, %794 : vector<8x16xf32>
    %c112 = arith.constant 112 : index
    %796 = memref.load %arg7[%c112] : memref<144xf32, #tpu.memory_space<smem>>
    %797 = vector.broadcast %796 : f32 to vector<8x16xf32>
    %798 = arith.mulf %742, %797 : vector<8x16xf32>
    %799 = arith.addf %705, %798 : vector<8x16xf32>
    %c114 = arith.constant 114 : index
    %800 = memref.load %arg7[%c114] : memref<144xf32, #tpu.memory_space<smem>>
    %801 = vector.broadcast %800 : f32 to vector<8x16xf32>
    %802 = arith.mulf %741, %801 : vector<8x16xf32>
    %803 = arith.addf %799, %802 : vector<8x16xf32>
    %c120 = arith.constant 120 : index
    %804 = memref.load %arg7[%c120] : memref<144xf32, #tpu.memory_space<smem>>
    %805 = vector.broadcast %804 : f32 to vector<8x16xf32>
    %806 = arith.mulf %747, %805 : vector<8x16xf32>
    %807 = arith.addf %803, %806 : vector<8x16xf32>
    %c122 = arith.constant 122 : index
    %808 = memref.load %arg7[%c122] : memref<144xf32, #tpu.memory_space<smem>>
    %809 = vector.broadcast %808 : f32 to vector<8x16xf32>
    %810 = arith.mulf %746, %809 : vector<8x16xf32>
    %811 = arith.addf %807, %810 : vector<8x16xf32>
    %c129 = arith.constant 129 : index
    %812 = memref.load %arg7[%c129] : memref<144xf32, #tpu.memory_space<smem>>
    %813 = vector.broadcast %812 : f32 to vector<8x16xf32>
    %814 = arith.mulf %741, %813 : vector<8x16xf32>
    %815 = arith.addf %721, %814 : vector<8x16xf32>
    %c131 = arith.constant 131 : index
    %816 = memref.load %arg7[%c131] : memref<144xf32, #tpu.memory_space<smem>>
    %817 = vector.broadcast %816 : f32 to vector<8x16xf32>
    %818 = arith.mulf %740, %817 : vector<8x16xf32>
    %819 = arith.addf %815, %818 : vector<8x16xf32>
    %c137 = arith.constant 137 : index
    %820 = memref.load %arg7[%c137] : memref<144xf32, #tpu.memory_space<smem>>
    %821 = vector.broadcast %820 : f32 to vector<8x16xf32>
    %822 = arith.mulf %746, %821 : vector<8x16xf32>
    %823 = arith.addf %819, %822 : vector<8x16xf32>
    %c139 = arith.constant 139 : index
    %824 = memref.load %arg7[%c139] : memref<144xf32, #tpu.memory_space<smem>>
    %825 = vector.broadcast %824 : f32 to vector<8x16xf32>
    %826 = arith.mulf %745, %825 : vector<8x16xf32>
    %827 = arith.addf %823, %826 : vector<8x16xf32>
    %c128 = arith.constant 128 : index
    %828 = memref.load %arg7[%c128] : memref<144xf32, #tpu.memory_space<smem>>
    %829 = vector.broadcast %828 : f32 to vector<8x16xf32>
    %830 = arith.mulf %742, %829 : vector<8x16xf32>
    %831 = arith.addf %737, %830 : vector<8x16xf32>
    %c130 = arith.constant 130 : index
    %832 = memref.load %arg7[%c130] : memref<144xf32, #tpu.memory_space<smem>>
    %833 = vector.broadcast %832 : f32 to vector<8x16xf32>
    %834 = arith.mulf %741, %833 : vector<8x16xf32>
    %835 = arith.addf %831, %834 : vector<8x16xf32>
    %c136 = arith.constant 136 : index
    %836 = memref.load %arg7[%c136] : memref<144xf32, #tpu.memory_space<smem>>
    %837 = vector.broadcast %836 : f32 to vector<8x16xf32>
    %838 = arith.mulf %747, %837 : vector<8x16xf32>
    %839 = arith.addf %835, %838 : vector<8x16xf32>
    %c138 = arith.constant 138 : index
    %840 = memref.load %arg7[%c138] : memref<144xf32, #tpu.memory_space<smem>>
    %841 = vector.broadcast %840 : f32 to vector<8x16xf32>
    %842 = arith.mulf %746, %841 : vector<8x16xf32>
    %843 = arith.addf %839, %842 : vector<8x16xf32>
    %c0_224 = arith.constant 0 : index
    %c0_225 = arith.constant 0 : index
    %c2_226 = arith.constant 2 : index
    %c0_227 = arith.constant 0 : index
    %c0_228 = arith.constant 0 : index
    %844 = vector.load %arg9[%c0_224, %c0_225, %c2_226, %c0_227, %c0_228] : memref<1x3x4x16x16xf32, #tpu.memory_space<vmem>>, vector<1x1x1x8x16xf32>
    %845 = vector.shape_cast %844 : vector<1x1x1x8x16xf32> to vector<8x16xf32>
    %846 = vector.shape_cast %763 : vector<8x16xf32> to vector<1x1x1x8x16xf32>
    tpu.vector_store %arg9[%c0_224, %c0_225, %c2_226, %c0_227, %c0_228], %846 {strides = array<i32>} : memref<1x3x4x16x16xf32, #tpu.memory_space<vmem>>, vector<1x1x1x8x16xf32>,
    %c0_229 = arith.constant 0 : index
    %c0_230 = arith.constant 0 : index
    %c3_231 = arith.constant 3 : index
    %c0_232 = arith.constant 0 : index
    %c0_233 = arith.constant 0 : index
    %847 = vector.load %arg9[%c0_229, %c0_230, %c3_231, %c0_232, %c0_233] : memref<1x3x4x16x16xf32, #tpu.memory_space<vmem>>, vector<1x1x1x8x16xf32>
    %848 = vector.shape_cast %847 : vector<1x1x1x8x16xf32> to vector<8x16xf32>
    %849 = vector.shape_cast %779 : vector<8x16xf32> to vector<1x1x1x8x16xf32>
    tpu.vector_store %arg9[%c0_229, %c0_230, %c3_231, %c0_232, %c0_233], %849 {strides = array<i32>} : memref<1x3x4x16x16xf32, #tpu.memory_space<vmem>>, vector<1x1x1x8x16xf32>,
    %c0_234 = arith.constant 0 : index
    %c1_235 = arith.constant 1 : index
    %c2_236 = arith.constant 2 : index
    %c0_237 = arith.constant 0 : index
    %c0_238 = arith.constant 0 : index
    %850 = vector.load %arg9[%c0_234, %c1_235, %c2_236, %c0_237, %c0_238] : memref<1x3x4x16x16xf32, #tpu.memory_space<vmem>>, vector<1x1x1x8x16xf32>
    %851 = vector.shape_cast %850 : vector<1x1x1x8x16xf32> to vector<8x16xf32>
    %852 = vector.shape_cast %795 : vector<8x16xf32> to vector<1x1x1x8x16xf32>
    tpu.vector_store %arg9[%c0_234, %c1_235, %c2_236, %c0_237, %c0_238], %852 {strides = array<i32>} : memref<1x3x4x16x16xf32, #tpu.memory_space<vmem>>, vector<1x1x1x8x16xf32>,
    %c0_239 = arith.constant 0 : index
    %c1_240 = arith.constant 1 : index
    %c3_241 = arith.constant 3 : index
    %c0_242 = arith.constant 0 : index
    %c0_243 = arith.constant 0 : index
    %853 = vector.load %arg9[%c0_239, %c1_240, %c3_241, %c0_242, %c0_243] : memref<1x3x4x16x16xf32, #tpu.memory_space<vmem>>, vector<1x1x1x8x16xf32>
    %854 = vector.shape_cast %853 : vector<1x1x1x8x16xf32> to vector<8x16xf32>
    %855 = vector.shape_cast %811 : vector<8x16xf32> to vector<1x1x1x8x16xf32>
    tpu.vector_store %arg9[%c0_239, %c1_240, %c3_241, %c0_242, %c0_243], %855 {strides = array<i32>} : memref<1x3x4x16x16xf32, #tpu.memory_space<vmem>>, vector<1x1x1x8x16xf32>,
    %c0_244 = arith.constant 0 : index
    %c2_245 = arith.constant 2 : index
    %c2_246 = arith.constant 2 : index
    %c0_247 = arith.constant 0 : index
    %c0_248 = arith.constant 0 : index
    %856 = vector.load %arg9[%c0_244, %c2_245, %c2_246, %c0_247, %c0_248] : memref<1x3x4x16x16xf32, #tpu.memory_space<vmem>>, vector<1x1x1x8x16xf32>
    %857 = vector.shape_cast %856 : vector<1x1x1x8x16xf32> to vector<8x16xf32>
    %858 = vector.shape_cast %827 : vector<8x16xf32> to vector<1x1x1x8x16xf32>
    tpu.vector_store %arg9[%c0_244, %c2_245, %c2_246, %c0_247, %c0_248], %858 {strides = array<i32>} : memref<1x3x4x16x16xf32, #tpu.memory_space<vmem>>, vector<1x1x1x8x16xf32>,
    %c0_249 = arith.constant 0 : index
    %c2_250 = arith.constant 2 : index
    %c3_251 = arith.constant 3 : index
    %c0_252 = arith.constant 0 : index
    %c0_253 = arith.constant 0 : index
    %859 = vector.load %arg9[%c0_249, %c2_250, %c3_251, %c0_252, %c0_253] : memref<1x3x4x16x16xf32, #tpu.memory_space<vmem>>, vector<1x1x1x8x16xf32>
    %860 = vector.shape_cast %859 : vector<1x1x1x8x16xf32> to vector<8x16xf32>
    %861 = vector.shape_cast %843 : vector<8x16xf32> to vector<1x1x1x8x16xf32>
    tpu.vector_store %arg9[%c0_249, %c2_250, %c3_251, %c0_252, %c0_253], %861 {strides = array<i32>} : memref<1x3x4x16x16xf32, #tpu.memory_space<vmem>>, vector<1x1x1x8x16xf32>,
    %c0_254 = arith.constant 0 : index
    %c9_255 = arith.constant 9 : index
    %c0_256 = arith.constant 0 : index
    %862 = vector.load %arg10[%c0_254, %c9_255, %c0_256] : memref<3x18x18xf32, #tpu.memory_space<vmem>>, vector<1x8x18xf32>
    %863 = vector.shape_cast %862 : vector<1x8x18xf32> to vector<8x18xf32>
    %864 = vector.extract_strided_slice %863 {offsets = [0, 0], sizes = [8, 16], strides = [1, 1]} : vector<8x18xf32> to vector<8x16xf32>
    %865 = vector.extract_strided_slice %863 {offsets = [0, 1], sizes = [8, 16], strides = [1, 1]} : vector<8x18xf32> to vector<8x16xf32>
    %866 = vector.extract_strided_slice %863 {offsets = [0, 2], sizes = [8, 16], strides = [1, 1]} : vector<8x18xf32> to vector<8x16xf32>
    %c0_257 = arith.constant 0 : index
    %c8_258 = arith.constant 8 : index
    %c0_259 = arith.constant 0 : index
    %867 = vector.load %arg10[%c0_257, %c8_258, %c0_259] : memref<3x18x18xf32, #tpu.memory_space<vmem>>, vector<1x8x18xf32>
    %868 = vector.shape_cast %867 : vector<1x8x18xf32> to vector<8x18xf32>
    %869 = vector.extract_strided_slice %868 {offsets = [0, 0], sizes = [8, 16], strides = [1, 1]} : vector<8x18xf32> to vector<8x16xf32>
    %870 = vector.extract_strided_slice %868 {offsets = [0, 1], sizes = [8, 16], strides = [1, 1]} : vector<8x18xf32> to vector<8x16xf32>
    %871 = vector.extract_strided_slice %868 {offsets = [0, 2], sizes = [8, 16], strides = [1, 1]} : vector<8x18xf32> to vector<8x16xf32>
    %c5_260 = arith.constant 5 : index
    %872 = memref.load %arg7[%c5_260] : memref<144xf32, #tpu.memory_space<smem>>
    %873 = vector.broadcast %872 : f32 to vector<8x16xf32>
    %874 = arith.mulf %865, %873 : vector<8x16xf32>
    %875 = arith.addf %185, %874 : vector<8x16xf32>
    %c7_261 = arith.constant 7 : index
    %876 = memref.load %arg7[%c7_261] : memref<144xf32, #tpu.memory_space<smem>>
    %877 = vector.broadcast %876 : f32 to vector<8x16xf32>
    %878 = arith.mulf %864, %877 : vector<8x16xf32>
    %879 = arith.addf %875, %878 : vector<8x16xf32>
    %c13_262 = arith.constant 13 : index
    %880 = memref.load %arg7[%c13_262] : memref<144xf32, #tpu.memory_space<smem>>
    %881 = vector.broadcast %880 : f32 to vector<8x16xf32>
    %882 = arith.mulf %870, %881 : vector<8x16xf32>
    %883 = arith.addf %879, %882 : vector<8x16xf32>
    %c15_263 = arith.constant 15 : index
    %884 = memref.load %arg7[%c15_263] : memref<144xf32, #tpu.memory_space<smem>>
    %885 = vector.broadcast %884 : f32 to vector<8x16xf32>
    %886 = arith.mulf %869, %885 : vector<8x16xf32>
    %887 = arith.addf %883, %886 : vector<8x16xf32>
    %c4_264 = arith.constant 4 : index
    %888 = memref.load %arg7[%c4_264] : memref<144xf32, #tpu.memory_space<smem>>
    %889 = vector.broadcast %888 : f32 to vector<8x16xf32>
    %890 = arith.mulf %866, %889 : vector<8x16xf32>
    %891 = arith.addf %185, %890 : vector<8x16xf32>
    %c6_265 = arith.constant 6 : index
    %892 = memref.load %arg7[%c6_265] : memref<144xf32, #tpu.memory_space<smem>>
    %893 = vector.broadcast %892 : f32 to vector<8x16xf32>
    %894 = arith.mulf %865, %893 : vector<8x16xf32>
    %895 = arith.addf %891, %894 : vector<8x16xf32>
    %c12_266 = arith.constant 12 : index
    %896 = memref.load %arg7[%c12_266] : memref<144xf32, #tpu.memory_space<smem>>
    %897 = vector.broadcast %896 : f32 to vector<8x16xf32>
    %898 = arith.mulf %871, %897 : vector<8x16xf32>
    %899 = arith.addf %895, %898 : vector<8x16xf32>
    %c14_267 = arith.constant 14 : index
    %900 = memref.load %arg7[%c14_267] : memref<144xf32, #tpu.memory_space<smem>>
    %901 = vector.broadcast %900 : f32 to vector<8x16xf32>
    %902 = arith.mulf %870, %901 : vector<8x16xf32>
    %903 = arith.addf %899, %902 : vector<8x16xf32>
    %c21_268 = arith.constant 21 : index
    %904 = memref.load %arg7[%c21_268] : memref<144xf32, #tpu.memory_space<smem>>
    %905 = vector.broadcast %904 : f32 to vector<8x16xf32>
    %906 = arith.mulf %865, %905 : vector<8x16xf32>
    %907 = arith.addf %187, %906 : vector<8x16xf32>
    %c23_269 = arith.constant 23 : index
    %908 = memref.load %arg7[%c23_269] : memref<144xf32, #tpu.memory_space<smem>>
    %909 = vector.broadcast %908 : f32 to vector<8x16xf32>
    %910 = arith.mulf %864, %909 : vector<8x16xf32>
    %911 = arith.addf %907, %910 : vector<8x16xf32>
    %c29_270 = arith.constant 29 : index
    %912 = memref.load %arg7[%c29_270] : memref<144xf32, #tpu.memory_space<smem>>
    %913 = vector.broadcast %912 : f32 to vector<8x16xf32>
    %914 = arith.mulf %870, %913 : vector<8x16xf32>
    %915 = arith.addf %911, %914 : vector<8x16xf32>
    %c31_271 = arith.constant 31 : index
    %916 = memref.load %arg7[%c31_271] : memref<144xf32, #tpu.memory_space<smem>>
    %917 = vector.broadcast %916 : f32 to vector<8x16xf32>
    %918 = arith.mulf %869, %917 : vector<8x16xf32>
    %919 = arith.addf %915, %918 : vector<8x16xf32>
    %c20_272 = arith.constant 20 : index
    %920 = memref.load %arg7[%c20_272] : memref<144xf32, #tpu.memory_space<smem>>
    %921 = vector.broadcast %920 : f32 to vector<8x16xf32>
    %922 = arith.mulf %866, %921 : vector<8x16xf32>
    %923 = arith.addf %187, %922 : vector<8x16xf32>
    %c22_273 = arith.constant 22 : index
    %924 = memref.load %arg7[%c22_273] : memref<144xf32, #tpu.memory_space<smem>>
    %925 = vector.broadcast %924 : f32 to vector<8x16xf32>
    %926 = arith.mulf %865, %925 : vector<8x16xf32>
    %927 = arith.addf %923, %926 : vector<8x16xf32>
    %c28_274 = arith.constant 28 : index
    %928 = memref.load %arg7[%c28_274] : memref<144xf32, #tpu.memory_space<smem>>
    %929 = vector.broadcast %928 : f32 to vector<8x16xf32>
    %930 = arith.mulf %871, %929 : vector<8x16xf32>
    %931 = arith.addf %927, %930 : vector<8x16xf32>
    %c30_275 = arith.constant 30 : index
    %932 = memref.load %arg7[%c30_275] : memref<144xf32, #tpu.memory_space<smem>>
    %933 = vector.broadcast %932 : f32 to vector<8x16xf32>
    %934 = arith.mulf %870, %933 : vector<8x16xf32>
    %935 = arith.addf %931, %934 : vector<8x16xf32>
    %c37_276 = arith.constant 37 : index
    %936 = memref.load %arg7[%c37_276] : memref<144xf32, #tpu.memory_space<smem>>
    %937 = vector.broadcast %936 : f32 to vector<8x16xf32>
    %938 = arith.mulf %865, %937 : vector<8x16xf32>
    %939 = arith.addf %189, %938 : vector<8x16xf32>
    %c39_277 = arith.constant 39 : index
    %940 = memref.load %arg7[%c39_277] : memref<144xf32, #tpu.memory_space<smem>>
    %941 = vector.broadcast %940 : f32 to vector<8x16xf32>
    %942 = arith.mulf %864, %941 : vector<8x16xf32>
    %943 = arith.addf %939, %942 : vector<8x16xf32>
    %c45_278 = arith.constant 45 : index
    %944 = memref.load %arg7[%c45_278] : memref<144xf32, #tpu.memory_space<smem>>
    %945 = vector.broadcast %944 : f32 to vector<8x16xf32>
    %946 = arith.mulf %870, %945 : vector<8x16xf32>
    %947 = arith.addf %943, %946 : vector<8x16xf32>
    %c47_279 = arith.constant 47 : index
    %948 = memref.load %arg7[%c47_279] : memref<144xf32, #tpu.memory_space<smem>>
    %949 = vector.broadcast %948 : f32 to vector<8x16xf32>
    %950 = arith.mulf %869, %949 : vector<8x16xf32>
    %951 = arith.addf %947, %950 : vector<8x16xf32>
    %c36_280 = arith.constant 36 : index
    %952 = memref.load %arg7[%c36_280] : memref<144xf32, #tpu.memory_space<smem>>
    %953 = vector.broadcast %952 : f32 to vector<8x16xf32>
    %954 = arith.mulf %866, %953 : vector<8x16xf32>
    %955 = arith.addf %189, %954 : vector<8x16xf32>
    %c38_281 = arith.constant 38 : index
    %956 = memref.load %arg7[%c38_281] : memref<144xf32, #tpu.memory_space<smem>>
    %957 = vector.broadcast %956 : f32 to vector<8x16xf32>
    %958 = arith.mulf %865, %957 : vector<8x16xf32>
    %959 = arith.addf %955, %958 : vector<8x16xf32>
    %c44_282 = arith.constant 44 : index
    %960 = memref.load %arg7[%c44_282] : memref<144xf32, #tpu.memory_space<smem>>
    %961 = vector.broadcast %960 : f32 to vector<8x16xf32>
    %962 = arith.mulf %871, %961 : vector<8x16xf32>
    %963 = arith.addf %959, %962 : vector<8x16xf32>
    %c46_283 = arith.constant 46 : index
    %964 = memref.load %arg7[%c46_283] : memref<144xf32, #tpu.memory_space<smem>>
    %965 = vector.broadcast %964 : f32 to vector<8x16xf32>
    %966 = arith.mulf %870, %965 : vector<8x16xf32>
    %967 = arith.addf %963, %966 : vector<8x16xf32>
    %c1_284 = arith.constant 1 : index
    %c9_285 = arith.constant 9 : index
    %c0_286 = arith.constant 0 : index
    %968 = vector.load %arg10[%c1_284, %c9_285, %c0_286] : memref<3x18x18xf32, #tpu.memory_space<vmem>>, vector<1x8x18xf32>
    %969 = vector.shape_cast %968 : vector<1x8x18xf32> to vector<8x18xf32>
    %970 = vector.extract_strided_slice %969 {offsets = [0, 0], sizes = [8, 16], strides = [1, 1]} : vector<8x18xf32> to vector<8x16xf32>
    %971 = vector.extract_strided_slice %969 {offsets = [0, 1], sizes = [8, 16], strides = [1, 1]} : vector<8x18xf32> to vector<8x16xf32>
    %972 = vector.extract_strided_slice %969 {offsets = [0, 2], sizes = [8, 16], strides = [1, 1]} : vector<8x18xf32> to vector<8x16xf32>
    %c1_287 = arith.constant 1 : index
    %c8_288 = arith.constant 8 : index
    %c0_289 = arith.constant 0 : index
    %973 = vector.load %arg10[%c1_287, %c8_288, %c0_289] : memref<3x18x18xf32, #tpu.memory_space<vmem>>, vector<1x8x18xf32>
    %974 = vector.shape_cast %973 : vector<1x8x18xf32> to vector<8x18xf32>
    %975 = vector.extract_strided_slice %974 {offsets = [0, 0], sizes = [8, 16], strides = [1, 1]} : vector<8x18xf32> to vector<8x16xf32>
    %976 = vector.extract_strided_slice %974 {offsets = [0, 1], sizes = [8, 16], strides = [1, 1]} : vector<8x18xf32> to vector<8x16xf32>
    %977 = vector.extract_strided_slice %974 {offsets = [0, 2], sizes = [8, 16], strides = [1, 1]} : vector<8x18xf32> to vector<8x16xf32>
    %c53_290 = arith.constant 53 : index
    %978 = memref.load %arg7[%c53_290] : memref<144xf32, #tpu.memory_space<smem>>
    %979 = vector.broadcast %978 : f32 to vector<8x16xf32>
    %980 = arith.mulf %971, %979 : vector<8x16xf32>
    %981 = arith.addf %887, %980 : vector<8x16xf32>
    %c55_291 = arith.constant 55 : index
    %982 = memref.load %arg7[%c55_291] : memref<144xf32, #tpu.memory_space<smem>>
    %983 = vector.broadcast %982 : f32 to vector<8x16xf32>
    %984 = arith.mulf %970, %983 : vector<8x16xf32>
    %985 = arith.addf %981, %984 : vector<8x16xf32>
    %c61_292 = arith.constant 61 : index
    %986 = memref.load %arg7[%c61_292] : memref<144xf32, #tpu.memory_space<smem>>
    %987 = vector.broadcast %986 : f32 to vector<8x16xf32>
    %988 = arith.mulf %976, %987 : vector<8x16xf32>
    %989 = arith.addf %985, %988 : vector<8x16xf32>
    %c63_293 = arith.constant 63 : index
    %990 = memref.load %arg7[%c63_293] : memref<144xf32, #tpu.memory_space<smem>>
    %991 = vector.broadcast %990 : f32 to vector<8x16xf32>
    %992 = arith.mulf %975, %991 : vector<8x16xf32>
    %993 = arith.addf %989, %992 : vector<8x16xf32>
    %c52_294 = arith.constant 52 : index
    %994 = memref.load %arg7[%c52_294] : memref<144xf32, #tpu.memory_space<smem>>
    %995 = vector.broadcast %994 : f32 to vector<8x16xf32>
    %996 = arith.mulf %972, %995 : vector<8x16xf32>
    %997 = arith.addf %903, %996 : vector<8x16xf32>
    %c54_295 = arith.constant 54 : index
    %998 = memref.load %arg7[%c54_295] : memref<144xf32, #tpu.memory_space<smem>>
    %999 = vector.broadcast %998 : f32 to vector<8x16xf32>
    %1000 = arith.mulf %971, %999 : vector<8x16xf32>
    %1001 = arith.addf %997, %1000 : vector<8x16xf32>
    %c60_296 = arith.constant 60 : index
    %1002 = memref.load %arg7[%c60_296] : memref<144xf32, #tpu.memory_space<smem>>
    %1003 = vector.broadcast %1002 : f32 to vector<8x16xf32>
    %1004 = arith.mulf %977, %1003 : vector<8x16xf32>
    %1005 = arith.addf %1001, %1004 : vector<8x16xf32>
    %c62_297 = arith.constant 62 : index
    %1006 = memref.load %arg7[%c62_297] : memref<144xf32, #tpu.memory_space<smem>>
    %1007 = vector.broadcast %1006 : f32 to vector<8x16xf32>
    %1008 = arith.mulf %976, %1007 : vector<8x16xf32>
    %1009 = arith.addf %1005, %1008 : vector<8x16xf32>
    %c69_298 = arith.constant 69 : index
    %1010 = memref.load %arg7[%c69_298] : memref<144xf32, #tpu.memory_space<smem>>
    %1011 = vector.broadcast %1010 : f32 to vector<8x16xf32>
    %1012 = arith.mulf %971, %1011 : vector<8x16xf32>
    %1013 = arith.addf %919, %1012 : vector<8x16xf32>
    %c71_299 = arith.constant 71 : index
    %1014 = memref.load %arg7[%c71_299] : memref<144xf32, #tpu.memory_space<smem>>
    %1015 = vector.broadcast %1014 : f32 to vector<8x16xf32>
    %1016 = arith.mulf %970, %1015 : vector<8x16xf32>
    %1017 = arith.addf %1013, %1016 : vector<8x16xf32>
    %c77_300 = arith.constant 77 : index
    %1018 = memref.load %arg7[%c77_300] : memref<144xf32, #tpu.memory_space<smem>>
    %1019 = vector.broadcast %1018 : f32 to vector<8x16xf32>
    %1020 = arith.mulf %976, %1019 : vector<8x16xf32>
    %1021 = arith.addf %1017, %1020 : vector<8x16xf32>
    %c79_301 = arith.constant 79 : index
    %1022 = memref.load %arg7[%c79_301] : memref<144xf32, #tpu.memory_space<smem>>
    %1023 = vector.broadcast %1022 : f32 to vector<8x16xf32>
    %1024 = arith.mulf %975, %1023 : vector<8x16xf32>
    %1025 = arith.addf %1021, %1024 : vector<8x16xf32>
    %c68_302 = arith.constant 68 : index
    %1026 = memref.load %arg7[%c68_302] : memref<144xf32, #tpu.memory_space<smem>>
    %1027 = vector.broadcast %1026 : f32 to vector<8x16xf32>
    %1028 = arith.mulf %972, %1027 : vector<8x16xf32>
    %1029 = arith.addf %935, %1028 : vector<8x16xf32>
    %c70_303 = arith.constant 70 : index
    %1030 = memref.load %arg7[%c70_303] : memref<144xf32, #tpu.memory_space<smem>>
    %1031 = vector.broadcast %1030 : f32 to vector<8x16xf32>
    %1032 = arith.mulf %971, %1031 : vector<8x16xf32>
    %1033 = arith.addf %1029, %1032 : vector<8x16xf32>
    %c76_304 = arith.constant 76 : index
    %1034 = memref.load %arg7[%c76_304] : memref<144xf32, #tpu.memory_space<smem>>
    %1035 = vector.broadcast %1034 : f32 to vector<8x16xf32>
    %1036 = arith.mulf %977, %1035 : vector<8x16xf32>
    %1037 = arith.addf %1033, %1036 : vector<8x16xf32>
    %c78_305 = arith.constant 78 : index
    %1038 = memref.load %arg7[%c78_305] : memref<144xf32, #tpu.memory_space<smem>>
    %1039 = vector.broadcast %1038 : f32 to vector<8x16xf32>
    %1040 = arith.mulf %976, %1039 : vector<8x16xf32>
    %1041 = arith.addf %1037, %1040 : vector<8x16xf32>
    %c85_306 = arith.constant 85 : index
    %1042 = memref.load %arg7[%c85_306] : memref<144xf32, #tpu.memory_space<smem>>
    %1043 = vector.broadcast %1042 : f32 to vector<8x16xf32>
    %1044 = arith.mulf %971, %1043 : vector<8x16xf32>
    %1045 = arith.addf %951, %1044 : vector<8x16xf32>
    %c87_307 = arith.constant 87 : index
    %1046 = memref.load %arg7[%c87_307] : memref<144xf32, #tpu.memory_space<smem>>
    %1047 = vector.broadcast %1046 : f32 to vector<8x16xf32>
    %1048 = arith.mulf %970, %1047 : vector<8x16xf32>
    %1049 = arith.addf %1045, %1048 : vector<8x16xf32>
    %c93_308 = arith.constant 93 : index
    %1050 = memref.load %arg7[%c93_308] : memref<144xf32, #tpu.memory_space<smem>>
    %1051 = vector.broadcast %1050 : f32 to vector<8x16xf32>
    %1052 = arith.mulf %976, %1051 : vector<8x16xf32>
    %1053 = arith.addf %1049, %1052 : vector<8x16xf32>
    %c95_309 = arith.constant 95 : index
    %1054 = memref.load %arg7[%c95_309] : memref<144xf32, #tpu.memory_space<smem>>
    %1055 = vector.broadcast %1054 : f32 to vector<8x16xf32>
    %1056 = arith.mulf %975, %1055 : vector<8x16xf32>
    %1057 = arith.addf %1053, %1056 : vector<8x16xf32>
    %c84_310 = arith.constant 84 : index
    %1058 = memref.load %arg7[%c84_310] : memref<144xf32, #tpu.memory_space<smem>>
    %1059 = vector.broadcast %1058 : f32 to vector<8x16xf32>
    %1060 = arith.mulf %972, %1059 : vector<8x16xf32>
    %1061 = arith.addf %967, %1060 : vector<8x16xf32>
    %c86_311 = arith.constant 86 : index
    %1062 = memref.load %arg7[%c86_311] : memref<144xf32, #tpu.memory_space<smem>>
    %1063 = vector.broadcast %1062 : f32 to vector<8x16xf32>
    %1064 = arith.mulf %971, %1063 : vector<8x16xf32>
    %1065 = arith.addf %1061, %1064 : vector<8x16xf32>
    %c92_312 = arith.constant 92 : index
    %1066 = memref.load %arg7[%c92_312] : memref<144xf32, #tpu.memory_space<smem>>
    %1067 = vector.broadcast %1066 : f32 to vector<8x16xf32>
    %1068 = arith.mulf %977, %1067 : vector<8x16xf32>
    %1069 = arith.addf %1065, %1068 : vector<8x16xf32>
    %c94_313 = arith.constant 94 : index
    %1070 = memref.load %arg7[%c94_313] : memref<144xf32, #tpu.memory_space<smem>>
    %1071 = vector.broadcast %1070 : f32 to vector<8x16xf32>
    %1072 = arith.mulf %976, %1071 : vector<8x16xf32>
    %1073 = arith.addf %1069, %1072 : vector<8x16xf32>
    %c2_314 = arith.constant 2 : index
    %c9_315 = arith.constant 9 : index
    %c0_316 = arith.constant 0 : index
    %1074 = vector.load %arg10[%c2_314, %c9_315, %c0_316] : memref<3x18x18xf32, #tpu.memory_space<vmem>>, vector<1x8x18xf32>
    %1075 = vector.shape_cast %1074 : vector<1x8x18xf32> to vector<8x18xf32>
    %1076 = vector.extract_strided_slice %1075 {offsets = [0, 0], sizes = [8, 16], strides = [1, 1]} : vector<8x18xf32> to vector<8x16xf32>
    %1077 = vector.extract_strided_slice %1075 {offsets = [0, 1], sizes = [8, 16], strides = [1, 1]} : vector<8x18xf32> to vector<8x16xf32>
    %1078 = vector.extract_strided_slice %1075 {offsets = [0, 2], sizes = [8, 16], strides = [1, 1]} : vector<8x18xf32> to vector<8x16xf32>
    %c2_317 = arith.constant 2 : index
    %c8_318 = arith.constant 8 : index
    %c0_319 = arith.constant 0 : index
    %1079 = vector.load %arg10[%c2_317, %c8_318, %c0_319] : memref<3x18x18xf32, #tpu.memory_space<vmem>>, vector<1x8x18xf32>
    %1080 = vector.shape_cast %1079 : vector<1x8x18xf32> to vector<8x18xf32>
    %1081 = vector.extract_strided_slice %1080 {offsets = [0, 0], sizes = [8, 16], strides = [1, 1]} : vector<8x18xf32> to vector<8x16xf32>
    %1082 = vector.extract_strided_slice %1080 {offsets = [0, 1], sizes = [8, 16], strides = [1, 1]} : vector<8x18xf32> to vector<8x16xf32>
    %1083 = vector.extract_strided_slice %1080 {offsets = [0, 2], sizes = [8, 16], strides = [1, 1]} : vector<8x18xf32> to vector<8x16xf32>
    %c101_320 = arith.constant 101 : index
    %1084 = memref.load %arg7[%c101_320] : memref<144xf32, #tpu.memory_space<smem>>
    %1085 = vector.broadcast %1084 : f32 to vector<8x16xf32>
    %1086 = arith.mulf %1077, %1085 : vector<8x16xf32>
    %1087 = arith.addf %993, %1086 : vector<8x16xf32>
    %c103_321 = arith.constant 103 : index
    %1088 = memref.load %arg7[%c103_321] : memref<144xf32, #tpu.memory_space<smem>>
    %1089 = vector.broadcast %1088 : f32 to vector<8x16xf32>
    %1090 = arith.mulf %1076, %1089 : vector<8x16xf32>
    %1091 = arith.addf %1087, %1090 : vector<8x16xf32>
    %c109_322 = arith.constant 109 : index
    %1092 = memref.load %arg7[%c109_322] : memref<144xf32, #tpu.memory_space<smem>>
    %1093 = vector.broadcast %1092 : f32 to vector<8x16xf32>
    %1094 = arith.mulf %1082, %1093 : vector<8x16xf32>
    %1095 = arith.addf %1091, %1094 : vector<8x16xf32>
    %c111_323 = arith.constant 111 : index
    %1096 = memref.load %arg7[%c111_323] : memref<144xf32, #tpu.memory_space<smem>>
    %1097 = vector.broadcast %1096 : f32 to vector<8x16xf32>
    %1098 = arith.mulf %1081, %1097 : vector<8x16xf32>
    %1099 = arith.addf %1095, %1098 : vector<8x16xf32>
    %c100_324 = arith.constant 100 : index
    %1100 = memref.load %arg7[%c100_324] : memref<144xf32, #tpu.memory_space<smem>>
    %1101 = vector.broadcast %1100 : f32 to vector<8x16xf32>
    %1102 = arith.mulf %1078, %1101 : vector<8x16xf32>
    %1103 = arith.addf %1009, %1102 : vector<8x16xf32>
    %c102_325 = arith.constant 102 : index
    %1104 = memref.load %arg7[%c102_325] : memref<144xf32, #tpu.memory_space<smem>>
    %1105 = vector.broadcast %1104 : f32 to vector<8x16xf32>
    %1106 = arith.mulf %1077, %1105 : vector<8x16xf32>
    %1107 = arith.addf %1103, %1106 : vector<8x16xf32>
    %c108_326 = arith.constant 108 : index
    %1108 = memref.load %arg7[%c108_326] : memref<144xf32, #tpu.memory_space<smem>>
    %1109 = vector.broadcast %1108 : f32 to vector<8x16xf32>
    %1110 = arith.mulf %1083, %1109 : vector<8x16xf32>
    %1111 = arith.addf %1107, %1110 : vector<8x16xf32>
    %c110_327 = arith.constant 110 : index
    %1112 = memref.load %arg7[%c110_327] : memref<144xf32, #tpu.memory_space<smem>>
    %1113 = vector.broadcast %1112 : f32 to vector<8x16xf32>
    %1114 = arith.mulf %1082, %1113 : vector<8x16xf32>
    %1115 = arith.addf %1111, %1114 : vector<8x16xf32>
    %c117_328 = arith.constant 117 : index
    %1116 = memref.load %arg7[%c117_328] : memref<144xf32, #tpu.memory_space<smem>>
    %1117 = vector.broadcast %1116 : f32 to vector<8x16xf32>
    %1118 = arith.mulf %1077, %1117 : vector<8x16xf32>
    %1119 = arith.addf %1025, %1118 : vector<8x16xf32>
    %c119_329 = arith.constant 119 : index
    %1120 = memref.load %arg7[%c119_329] : memref<144xf32, #tpu.memory_space<smem>>
    %1121 = vector.broadcast %1120 : f32 to vector<8x16xf32>
    %1122 = arith.mulf %1076, %1121 : vector<8x16xf32>
    %1123 = arith.addf %1119, %1122 : vector<8x16xf32>
    %c125_330 = arith.constant 125 : index
    %1124 = memref.load %arg7[%c125_330] : memref<144xf32, #tpu.memory_space<smem>>
    %1125 = vector.broadcast %1124 : f32 to vector<8x16xf32>
    %1126 = arith.mulf %1082, %1125 : vector<8x16xf32>
    %1127 = arith.addf %1123, %1126 : vector<8x16xf32>
    %c127_331 = arith.constant 127 : index
    %1128 = memref.load %arg7[%c127_331] : memref<144xf32, #tpu.memory_space<smem>>
    %1129 = vector.broadcast %1128 : f32 to vector<8x16xf32>
    %1130 = arith.mulf %1081, %1129 : vector<8x16xf32>
    %1131 = arith.addf %1127, %1130 : vector<8x16xf32>
    %c116_332 = arith.constant 116 : index
    %1132 = memref.load %arg7[%c116_332] : memref<144xf32, #tpu.memory_space<smem>>
    %1133 = vector.broadcast %1132 : f32 to vector<8x16xf32>
    %1134 = arith.mulf %1078, %1133 : vector<8x16xf32>
    %1135 = arith.addf %1041, %1134 : vector<8x16xf32>
    %c118_333 = arith.constant 118 : index
    %1136 = memref.load %arg7[%c118_333] : memref<144xf32, #tpu.memory_space<smem>>
    %1137 = vector.broadcast %1136 : f32 to vector<8x16xf32>
    %1138 = arith.mulf %1077, %1137 : vector<8x16xf32>
    %1139 = arith.addf %1135, %1138 : vector<8x16xf32>
    %c124_334 = arith.constant 124 : index
    %1140 = memref.load %arg7[%c124_334] : memref<144xf32, #tpu.memory_space<smem>>
    %1141 = vector.broadcast %1140 : f32 to vector<8x16xf32>
    %1142 = arith.mulf %1083, %1141 : vector<8x16xf32>
    %1143 = arith.addf %1139, %1142 : vector<8x16xf32>
    %c126_335 = arith.constant 126 : index
    %1144 = memref.load %arg7[%c126_335] : memref<144xf32, #tpu.memory_space<smem>>
    %1145 = vector.broadcast %1144 : f32 to vector<8x16xf32>
    %1146 = arith.mulf %1082, %1145 : vector<8x16xf32>
    %1147 = arith.addf %1143, %1146 : vector<8x16xf32>
    %c133_336 = arith.constant 133 : index
    %1148 = memref.load %arg7[%c133_336] : memref<144xf32, #tpu.memory_space<smem>>
    %1149 = vector.broadcast %1148 : f32 to vector<8x16xf32>
    %1150 = arith.mulf %1077, %1149 : vector<8x16xf32>
    %1151 = arith.addf %1057, %1150 : vector<8x16xf32>
    %c135_337 = arith.constant 135 : index
    %1152 = memref.load %arg7[%c135_337] : memref<144xf32, #tpu.memory_space<smem>>
    %1153 = vector.broadcast %1152 : f32 to vector<8x16xf32>
    %1154 = arith.mulf %1076, %1153 : vector<8x16xf32>
    %1155 = arith.addf %1151, %1154 : vector<8x16xf32>
    %c141_338 = arith.constant 141 : index
    %1156 = memref.load %arg7[%c141_338] : memref<144xf32, #tpu.memory_space<smem>>
    %1157 = vector.broadcast %1156 : f32 to vector<8x16xf32>
    %1158 = arith.mulf %1082, %1157 : vector<8x16xf32>
    %1159 = arith.addf %1155, %1158 : vector<8x16xf32>
    %c143_339 = arith.constant 143 : index
    %1160 = memref.load %arg7[%c143_339] : memref<144xf32, #tpu.memory_space<smem>>
    %1161 = vector.broadcast %1160 : f32 to vector<8x16xf32>
    %1162 = arith.mulf %1081, %1161 : vector<8x16xf32>
    %1163 = arith.addf %1159, %1162 : vector<8x16xf32>
    %c132_340 = arith.constant 132 : index
    %1164 = memref.load %arg7[%c132_340] : memref<144xf32, #tpu.memory_space<smem>>
    %1165 = vector.broadcast %1164 : f32 to vector<8x16xf32>
    %1166 = arith.mulf %1078, %1165 : vector<8x16xf32>
    %1167 = arith.addf %1073, %1166 : vector<8x16xf32>
    %c134_341 = arith.constant 134 : index
    %1168 = memref.load %arg7[%c134_341] : memref<144xf32, #tpu.memory_space<smem>>
    %1169 = vector.broadcast %1168 : f32 to vector<8x16xf32>
    %1170 = arith.mulf %1077, %1169 : vector<8x16xf32>
    %1171 = arith.addf %1167, %1170 : vector<8x16xf32>
    %c140_342 = arith.constant 140 : index
    %1172 = memref.load %arg7[%c140_342] : memref<144xf32, #tpu.memory_space<smem>>
    %1173 = vector.broadcast %1172 : f32 to vector<8x16xf32>
    %1174 = arith.mulf %1083, %1173 : vector<8x16xf32>
    %1175 = arith.addf %1171, %1174 : vector<8x16xf32>
    %c142_343 = arith.constant 142 : index
    %1176 = memref.load %arg7[%c142_343] : memref<144xf32, #tpu.memory_space<smem>>
    %1177 = vector.broadcast %1176 : f32 to vector<8x16xf32>
    %1178 = arith.mulf %1082, %1177 : vector<8x16xf32>
    %1179 = arith.addf %1175, %1178 : vector<8x16xf32>
    %c0_344 = arith.constant 0 : index
    %c0_345 = arith.constant 0 : index
    %c0_346 = arith.constant 0 : index
    %c8_347 = arith.constant 8 : index
    %c0_348 = arith.constant 0 : index
    %1180 = vector.load %arg9[%c0_344, %c0_345, %c0_346, %c8_347, %c0_348] : memref<1x3x4x16x16xf32, #tpu.memory_space<vmem>>, vector<1x1x1x8x16xf32>
    %1181 = vector.shape_cast %1180 : vector<1x1x1x8x16xf32> to vector<8x16xf32>
    %1182 = vector.shape_cast %1099 : vector<8x16xf32> to vector<1x1x1x8x16xf32>
    tpu.vector_store %arg9[%c0_344, %c0_345, %c0_346, %c8_347, %c0_348], %1182 {strides = array<i32>} : memref<1x3x4x16x16xf32, #tpu.memory_space<vmem>>, vector<1x1x1x8x16xf32>,
    %c0_349 = arith.constant 0 : index
    %c0_350 = arith.constant 0 : index
    %c1_351 = arith.constant 1 : index
    %c8_352 = arith.constant 8 : index
    %c0_353 = arith.constant 0 : index
    %1183 = vector.load %arg9[%c0_349, %c0_350, %c1_351, %c8_352, %c0_353] : memref<1x3x4x16x16xf32, #tpu.memory_space<vmem>>, vector<1x1x1x8x16xf32>
    %1184 = vector.shape_cast %1183 : vector<1x1x1x8x16xf32> to vector<8x16xf32>
    %1185 = vector.shape_cast %1115 : vector<8x16xf32> to vector<1x1x1x8x16xf32>
    tpu.vector_store %arg9[%c0_349, %c0_350, %c1_351, %c8_352, %c0_353], %1185 {strides = array<i32>} : memref<1x3x4x16x16xf32, #tpu.memory_space<vmem>>, vector<1x1x1x8x16xf32>,
    %c0_354 = arith.constant 0 : index
    %c1_355 = arith.constant 1 : index
    %c0_356 = arith.constant 0 : index
    %c8_357 = arith.constant 8 : index
    %c0_358 = arith.constant 0 : index
    %1186 = vector.load %arg9[%c0_354, %c1_355, %c0_356, %c8_357, %c0_358] : memref<1x3x4x16x16xf32, #tpu.memory_space<vmem>>, vector<1x1x1x8x16xf32>
    %1187 = vector.shape_cast %1186 : vector<1x1x1x8x16xf32> to vector<8x16xf32>
    %1188 = vector.shape_cast %1131 : vector<8x16xf32> to vector<1x1x1x8x16xf32>
    tpu.vector_store %arg9[%c0_354, %c1_355, %c0_356, %c8_357, %c0_358], %1188 {strides = array<i32>} : memref<1x3x4x16x16xf32, #tpu.memory_space<vmem>>, vector<1x1x1x8x16xf32>,
    %c0_359 = arith.constant 0 : index
    %c1_360 = arith.constant 1 : index
    %c1_361 = arith.constant 1 : index
    %c8_362 = arith.constant 8 : index
    %c0_363 = arith.constant 0 : index
    %1189 = vector.load %arg9[%c0_359, %c1_360, %c1_361, %c8_362, %c0_363] : memref<1x3x4x16x16xf32, #tpu.memory_space<vmem>>, vector<1x1x1x8x16xf32>
    %1190 = vector.shape_cast %1189 : vector<1x1x1x8x16xf32> to vector<8x16xf32>
    %1191 = vector.shape_cast %1147 : vector<8x16xf32> to vector<1x1x1x8x16xf32>
    tpu.vector_store %arg9[%c0_359, %c1_360, %c1_361, %c8_362, %c0_363], %1191 {strides = array<i32>} : memref<1x3x4x16x16xf32, #tpu.memory_space<vmem>>, vector<1x1x1x8x16xf32>,
    %c0_364 = arith.constant 0 : index
    %c2_365 = arith.constant 2 : index
    %c0_366 = arith.constant 0 : index
    %c8_367 = arith.constant 8 : index
    %c0_368 = arith.constant 0 : index
    %1192 = vector.load %arg9[%c0_364, %c2_365, %c0_366, %c8_367, %c0_368] : memref<1x3x4x16x16xf32, #tpu.memory_space<vmem>>, vector<1x1x1x8x16xf32>
    %1193 = vector.shape_cast %1192 : vector<1x1x1x8x16xf32> to vector<8x16xf32>
    %1194 = vector.shape_cast %1163 : vector<8x16xf32> to vector<1x1x1x8x16xf32>
    tpu.vector_store %arg9[%c0_364, %c2_365, %c0_366, %c8_367, %c0_368], %1194 {strides = array<i32>} : memref<1x3x4x16x16xf32, #tpu.memory_space<vmem>>, vector<1x1x1x8x16xf32>,
    %c0_369 = arith.constant 0 : index
    %c2_370 = arith.constant 2 : index
    %c1_371 = arith.constant 1 : index
    %c8_372 = arith.constant 8 : index
    %c0_373 = arith.constant 0 : index
    %1195 = vector.load %arg9[%c0_369, %c2_370, %c1_371, %c8_372, %c0_373] : memref<1x3x4x16x16xf32, #tpu.memory_space<vmem>>, vector<1x1x1x8x16xf32>
    %1196 = vector.shape_cast %1195 : vector<1x1x1x8x16xf32> to vector<8x16xf32>
    %1197 = vector.shape_cast %1179 : vector<8x16xf32> to vector<1x1x1x8x16xf32>
    tpu.vector_store %arg9[%c0_369, %c2_370, %c1_371, %c8_372, %c0_373], %1197 {strides = array<i32>} : memref<1x3x4x16x16xf32, #tpu.memory_space<vmem>>, vector<1x1x1x8x16xf32>,
    %c0_374 = arith.constant 0 : index
    %c10_375 = arith.constant 10 : index
    %c0_376 = arith.constant 0 : index
    %1198 = vector.load %arg10[%c0_374, %c10_375, %c0_376] : memref<3x18x18xf32, #tpu.memory_space<vmem>>, vector<1x8x18xf32>
    %1199 = vector.shape_cast %1198 : vector<1x8x18xf32> to vector<8x18xf32>
    %1200 = vector.extract_strided_slice %1199 {offsets = [0, 0], sizes = [8, 16], strides = [1, 1]} : vector<8x18xf32> to vector<8x16xf32>
    %1201 = vector.extract_strided_slice %1199 {offsets = [0, 1], sizes = [8, 16], strides = [1, 1]} : vector<8x18xf32> to vector<8x16xf32>
    %1202 = vector.extract_strided_slice %1199 {offsets = [0, 2], sizes = [8, 16], strides = [1, 1]} : vector<8x18xf32> to vector<8x16xf32>
    %c0_377 = arith.constant 0 : index
    %c9_378 = arith.constant 9 : index
    %c0_379 = arith.constant 0 : index
    %1203 = vector.load %arg10[%c0_377, %c9_378, %c0_379] : memref<3x18x18xf32, #tpu.memory_space<vmem>>, vector<1x8x18xf32>
    %1204 = vector.shape_cast %1203 : vector<1x8x18xf32> to vector<8x18xf32>
    %1205 = vector.extract_strided_slice %1204 {offsets = [0, 0], sizes = [8, 16], strides = [1, 1]} : vector<8x18xf32> to vector<8x16xf32>
    %1206 = vector.extract_strided_slice %1204 {offsets = [0, 1], sizes = [8, 16], strides = [1, 1]} : vector<8x18xf32> to vector<8x16xf32>
    %1207 = vector.extract_strided_slice %1204 {offsets = [0, 2], sizes = [8, 16], strides = [1, 1]} : vector<8x18xf32> to vector<8x16xf32>
    %c1_380 = arith.constant 1 : index
    %1208 = memref.load %arg7[%c1_380] : memref<144xf32, #tpu.memory_space<smem>>
    %1209 = vector.broadcast %1208 : f32 to vector<8x16xf32>
    %1210 = arith.mulf %1201, %1209 : vector<8x16xf32>
    %1211 = arith.addf %185, %1210 : vector<8x16xf32>
    %c3_381 = arith.constant 3 : index
    %1212 = memref.load %arg7[%c3_381] : memref<144xf32, #tpu.memory_space<smem>>
    %1213 = vector.broadcast %1212 : f32 to vector<8x16xf32>
    %1214 = arith.mulf %1200, %1213 : vector<8x16xf32>
    %1215 = arith.addf %1211, %1214 : vector<8x16xf32>
    %c9_382 = arith.constant 9 : index
    %1216 = memref.load %arg7[%c9_382] : memref<144xf32, #tpu.memory_space<smem>>
    %1217 = vector.broadcast %1216 : f32 to vector<8x16xf32>
    %1218 = arith.mulf %1206, %1217 : vector<8x16xf32>
    %1219 = arith.addf %1215, %1218 : vector<8x16xf32>
    %c11_383 = arith.constant 11 : index
    %1220 = memref.load %arg7[%c11_383] : memref<144xf32, #tpu.memory_space<smem>>
    %1221 = vector.broadcast %1220 : f32 to vector<8x16xf32>
    %1222 = arith.mulf %1205, %1221 : vector<8x16xf32>
    %1223 = arith.addf %1219, %1222 : vector<8x16xf32>
    %c0_384 = arith.constant 0 : index
    %1224 = memref.load %arg7[%c0_384] : memref<144xf32, #tpu.memory_space<smem>>
    %1225 = vector.broadcast %1224 : f32 to vector<8x16xf32>
    %1226 = arith.mulf %1202, %1225 : vector<8x16xf32>
    %1227 = arith.addf %185, %1226 : vector<8x16xf32>
    %c2_385 = arith.constant 2 : index
    %1228 = memref.load %arg7[%c2_385] : memref<144xf32, #tpu.memory_space<smem>>
    %1229 = vector.broadcast %1228 : f32 to vector<8x16xf32>
    %1230 = arith.mulf %1201, %1229 : vector<8x16xf32>
    %1231 = arith.addf %1227, %1230 : vector<8x16xf32>
    %c8_386 = arith.constant 8 : index
    %1232 = memref.load %arg7[%c8_386] : memref<144xf32, #tpu.memory_space<smem>>
    %1233 = vector.broadcast %1232 : f32 to vector<8x16xf32>
    %1234 = arith.mulf %1207, %1233 : vector<8x16xf32>
    %1235 = arith.addf %1231, %1234 : vector<8x16xf32>
    %c10_387 = arith.constant 10 : index
    %1236 = memref.load %arg7[%c10_387] : memref<144xf32, #tpu.memory_space<smem>>
    %1237 = vector.broadcast %1236 : f32 to vector<8x16xf32>
    %1238 = arith.mulf %1206, %1237 : vector<8x16xf32>
    %1239 = arith.addf %1235, %1238 : vector<8x16xf32>
    %c17_388 = arith.constant 17 : index
    %1240 = memref.load %arg7[%c17_388] : memref<144xf32, #tpu.memory_space<smem>>
    %1241 = vector.broadcast %1240 : f32 to vector<8x16xf32>
    %1242 = arith.mulf %1201, %1241 : vector<8x16xf32>
    %1243 = arith.addf %187, %1242 : vector<8x16xf32>
    %c19_389 = arith.constant 19 : index
    %1244 = memref.load %arg7[%c19_389] : memref<144xf32, #tpu.memory_space<smem>>
    %1245 = vector.broadcast %1244 : f32 to vector<8x16xf32>
    %1246 = arith.mulf %1200, %1245 : vector<8x16xf32>
    %1247 = arith.addf %1243, %1246 : vector<8x16xf32>
    %c25_390 = arith.constant 25 : index
    %1248 = memref.load %arg7[%c25_390] : memref<144xf32, #tpu.memory_space<smem>>
    %1249 = vector.broadcast %1248 : f32 to vector<8x16xf32>
    %1250 = arith.mulf %1206, %1249 : vector<8x16xf32>
    %1251 = arith.addf %1247, %1250 : vector<8x16xf32>
    %c27_391 = arith.constant 27 : index
    %1252 = memref.load %arg7[%c27_391] : memref<144xf32, #tpu.memory_space<smem>>
    %1253 = vector.broadcast %1252 : f32 to vector<8x16xf32>
    %1254 = arith.mulf %1205, %1253 : vector<8x16xf32>
    %1255 = arith.addf %1251, %1254 : vector<8x16xf32>
    %c16_392 = arith.constant 16 : index
    %1256 = memref.load %arg7[%c16_392] : memref<144xf32, #tpu.memory_space<smem>>
    %1257 = vector.broadcast %1256 : f32 to vector<8x16xf32>
    %1258 = arith.mulf %1202, %1257 : vector<8x16xf32>
    %1259 = arith.addf %187, %1258 : vector<8x16xf32>
    %c18_393 = arith.constant 18 : index
    %1260 = memref.load %arg7[%c18_393] : memref<144xf32, #tpu.memory_space<smem>>
    %1261 = vector.broadcast %1260 : f32 to vector<8x16xf32>
    %1262 = arith.mulf %1201, %1261 : vector<8x16xf32>
    %1263 = arith.addf %1259, %1262 : vector<8x16xf32>
    %c24_394 = arith.constant 24 : index
    %1264 = memref.load %arg7[%c24_394] : memref<144xf32, #tpu.memory_space<smem>>
    %1265 = vector.broadcast %1264 : f32 to vector<8x16xf32>
    %1266 = arith.mulf %1207, %1265 : vector<8x16xf32>
    %1267 = arith.addf %1263, %1266 : vector<8x16xf32>
    %c26_395 = arith.constant 26 : index
    %1268 = memref.load %arg7[%c26_395] : memref<144xf32, #tpu.memory_space<smem>>
    %1269 = vector.broadcast %1268 : f32 to vector<8x16xf32>
    %1270 = arith.mulf %1206, %1269 : vector<8x16xf32>
    %1271 = arith.addf %1267, %1270 : vector<8x16xf32>
    %c33_396 = arith.constant 33 : index
    %1272 = memref.load %arg7[%c33_396] : memref<144xf32, #tpu.memory_space<smem>>
    %1273 = vector.broadcast %1272 : f32 to vector<8x16xf32>
    %1274 = arith.mulf %1201, %1273 : vector<8x16xf32>
    %1275 = arith.addf %189, %1274 : vector<8x16xf32>
    %c35_397 = arith.constant 35 : index
    %1276 = memref.load %arg7[%c35_397] : memref<144xf32, #tpu.memory_space<smem>>
    %1277 = vector.broadcast %1276 : f32 to vector<8x16xf32>
    %1278 = arith.mulf %1200, %1277 : vector<8x16xf32>
    %1279 = arith.addf %1275, %1278 : vector<8x16xf32>
    %c41_398 = arith.constant 41 : index
    %1280 = memref.load %arg7[%c41_398] : memref<144xf32, #tpu.memory_space<smem>>
    %1281 = vector.broadcast %1280 : f32 to vector<8x16xf32>
    %1282 = arith.mulf %1206, %1281 : vector<8x16xf32>
    %1283 = arith.addf %1279, %1282 : vector<8x16xf32>
    %c43_399 = arith.constant 43 : index
    %1284 = memref.load %arg7[%c43_399] : memref<144xf32, #tpu.memory_space<smem>>
    %1285 = vector.broadcast %1284 : f32 to vector<8x16xf32>
    %1286 = arith.mulf %1205, %1285 : vector<8x16xf32>
    %1287 = arith.addf %1283, %1286 : vector<8x16xf32>
    %c32_400 = arith.constant 32 : index
    %1288 = memref.load %arg7[%c32_400] : memref<144xf32, #tpu.memory_space<smem>>
    %1289 = vector.broadcast %1288 : f32 to vector<8x16xf32>
    %1290 = arith.mulf %1202, %1289 : vector<8x16xf32>
    %1291 = arith.addf %189, %1290 : vector<8x16xf32>
    %c34_401 = arith.constant 34 : index
    %1292 = memref.load %arg7[%c34_401] : memref<144xf32, #tpu.memory_space<smem>>
    %1293 = vector.broadcast %1292 : f32 to vector<8x16xf32>
    %1294 = arith.mulf %1201, %1293 : vector<8x16xf32>
    %1295 = arith.addf %1291, %1294 : vector<8x16xf32>
    %c40_402 = arith.constant 40 : index
    %1296 = memref.load %arg7[%c40_402] : memref<144xf32, #tpu.memory_space<smem>>
    %1297 = vector.broadcast %1296 : f32 to vector<8x16xf32>
    %1298 = arith.mulf %1207, %1297 : vector<8x16xf32>
    %1299 = arith.addf %1295, %1298 : vector<8x16xf32>
    %c42_403 = arith.constant 42 : index
    %1300 = memref.load %arg7[%c42_403] : memref<144xf32, #tpu.memory_space<smem>>
    %1301 = vector.broadcast %1300 : f32 to vector<8x16xf32>
    %1302 = arith.mulf %1206, %1301 : vector<8x16xf32>
    %1303 = arith.addf %1299, %1302 : vector<8x16xf32>
    %c1_404 = arith.constant 1 : index
    %c10_405 = arith.constant 10 : index
    %c0_406 = arith.constant 0 : index
    %1304 = vector.load %arg10[%c1_404, %c10_405, %c0_406] : memref<3x18x18xf32, #tpu.memory_space<vmem>>, vector<1x8x18xf32>
    %1305 = vector.shape_cast %1304 : vector<1x8x18xf32> to vector<8x18xf32>
    %1306 = vector.extract_strided_slice %1305 {offsets = [0, 0], sizes = [8, 16], strides = [1, 1]} : vector<8x18xf32> to vector<8x16xf32>
    %1307 = vector.extract_strided_slice %1305 {offsets = [0, 1], sizes = [8, 16], strides = [1, 1]} : vector<8x18xf32> to vector<8x16xf32>
    %1308 = vector.extract_strided_slice %1305 {offsets = [0, 2], sizes = [8, 16], strides = [1, 1]} : vector<8x18xf32> to vector<8x16xf32>
    %c1_407 = arith.constant 1 : index
    %c9_408 = arith.constant 9 : index
    %c0_409 = arith.constant 0 : index
    %1309 = vector.load %arg10[%c1_407, %c9_408, %c0_409] : memref<3x18x18xf32, #tpu.memory_space<vmem>>, vector<1x8x18xf32>
    %1310 = vector.shape_cast %1309 : vector<1x8x18xf32> to vector<8x18xf32>
    %1311 = vector.extract_strided_slice %1310 {offsets = [0, 0], sizes = [8, 16], strides = [1, 1]} : vector<8x18xf32> to vector<8x16xf32>
    %1312 = vector.extract_strided_slice %1310 {offsets = [0, 1], sizes = [8, 16], strides = [1, 1]} : vector<8x18xf32> to vector<8x16xf32>
    %1313 = vector.extract_strided_slice %1310 {offsets = [0, 2], sizes = [8, 16], strides = [1, 1]} : vector<8x18xf32> to vector<8x16xf32>
    %c49_410 = arith.constant 49 : index
    %1314 = memref.load %arg7[%c49_410] : memref<144xf32, #tpu.memory_space<smem>>
    %1315 = vector.broadcast %1314 : f32 to vector<8x16xf32>
    %1316 = arith.mulf %1307, %1315 : vector<8x16xf32>
    %1317 = arith.addf %1223, %1316 : vector<8x16xf32>
    %c51_411 = arith.constant 51 : index
    %1318 = memref.load %arg7[%c51_411] : memref<144xf32, #tpu.memory_space<smem>>
    %1319 = vector.broadcast %1318 : f32 to vector<8x16xf32>
    %1320 = arith.mulf %1306, %1319 : vector<8x16xf32>
    %1321 = arith.addf %1317, %1320 : vector<8x16xf32>
    %c57_412 = arith.constant 57 : index
    %1322 = memref.load %arg7[%c57_412] : memref<144xf32, #tpu.memory_space<smem>>
    %1323 = vector.broadcast %1322 : f32 to vector<8x16xf32>
    %1324 = arith.mulf %1312, %1323 : vector<8x16xf32>
    %1325 = arith.addf %1321, %1324 : vector<8x16xf32>
    %c59_413 = arith.constant 59 : index
    %1326 = memref.load %arg7[%c59_413] : memref<144xf32, #tpu.memory_space<smem>>
    %1327 = vector.broadcast %1326 : f32 to vector<8x16xf32>
    %1328 = arith.mulf %1311, %1327 : vector<8x16xf32>
    %1329 = arith.addf %1325, %1328 : vector<8x16xf32>
    %c48_414 = arith.constant 48 : index
    %1330 = memref.load %arg7[%c48_414] : memref<144xf32, #tpu.memory_space<smem>>
    %1331 = vector.broadcast %1330 : f32 to vector<8x16xf32>
    %1332 = arith.mulf %1308, %1331 : vector<8x16xf32>
    %1333 = arith.addf %1239, %1332 : vector<8x16xf32>
    %c50_415 = arith.constant 50 : index
    %1334 = memref.load %arg7[%c50_415] : memref<144xf32, #tpu.memory_space<smem>>
    %1335 = vector.broadcast %1334 : f32 to vector<8x16xf32>
    %1336 = arith.mulf %1307, %1335 : vector<8x16xf32>
    %1337 = arith.addf %1333, %1336 : vector<8x16xf32>
    %c56_416 = arith.constant 56 : index
    %1338 = memref.load %arg7[%c56_416] : memref<144xf32, #tpu.memory_space<smem>>
    %1339 = vector.broadcast %1338 : f32 to vector<8x16xf32>
    %1340 = arith.mulf %1313, %1339 : vector<8x16xf32>
    %1341 = arith.addf %1337, %1340 : vector<8x16xf32>
    %c58_417 = arith.constant 58 : index
    %1342 = memref.load %arg7[%c58_417] : memref<144xf32, #tpu.memory_space<smem>>
    %1343 = vector.broadcast %1342 : f32 to vector<8x16xf32>
    %1344 = arith.mulf %1312, %1343 : vector<8x16xf32>
    %1345 = arith.addf %1341, %1344 : vector<8x16xf32>
    %c65_418 = arith.constant 65 : index
    %1346 = memref.load %arg7[%c65_418] : memref<144xf32, #tpu.memory_space<smem>>
    %1347 = vector.broadcast %1346 : f32 to vector<8x16xf32>
    %1348 = arith.mulf %1307, %1347 : vector<8x16xf32>
    %1349 = arith.addf %1255, %1348 : vector<8x16xf32>
    %c67_419 = arith.constant 67 : index
    %1350 = memref.load %arg7[%c67_419] : memref<144xf32, #tpu.memory_space<smem>>
    %1351 = vector.broadcast %1350 : f32 to vector<8x16xf32>
    %1352 = arith.mulf %1306, %1351 : vector<8x16xf32>
    %1353 = arith.addf %1349, %1352 : vector<8x16xf32>
    %c73_420 = arith.constant 73 : index
    %1354 = memref.load %arg7[%c73_420] : memref<144xf32, #tpu.memory_space<smem>>
    %1355 = vector.broadcast %1354 : f32 to vector<8x16xf32>
    %1356 = arith.mulf %1312, %1355 : vector<8x16xf32>
    %1357 = arith.addf %1353, %1356 : vector<8x16xf32>
    %c75_421 = arith.constant 75 : index
    %1358 = memref.load %arg7[%c75_421] : memref<144xf32, #tpu.memory_space<smem>>
    %1359 = vector.broadcast %1358 : f32 to vector<8x16xf32>
    %1360 = arith.mulf %1311, %1359 : vector<8x16xf32>
    %1361 = arith.addf %1357, %1360 : vector<8x16xf32>
    %c64_422 = arith.constant 64 : index
    %1362 = memref.load %arg7[%c64_422] : memref<144xf32, #tpu.memory_space<smem>>
    %1363 = vector.broadcast %1362 : f32 to vector<8x16xf32>
    %1364 = arith.mulf %1308, %1363 : vector<8x16xf32>
    %1365 = arith.addf %1271, %1364 : vector<8x16xf32>
    %c66_423 = arith.constant 66 : index
    %1366 = memref.load %arg7[%c66_423] : memref<144xf32, #tpu.memory_space<smem>>
    %1367 = vector.broadcast %1366 : f32 to vector<8x16xf32>
    %1368 = arith.mulf %1307, %1367 : vector<8x16xf32>
    %1369 = arith.addf %1365, %1368 : vector<8x16xf32>
    %c72_424 = arith.constant 72 : index
    %1370 = memref.load %arg7[%c72_424] : memref<144xf32, #tpu.memory_space<smem>>
    %1371 = vector.broadcast %1370 : f32 to vector<8x16xf32>
    %1372 = arith.mulf %1313, %1371 : vector<8x16xf32>
    %1373 = arith.addf %1369, %1372 : vector<8x16xf32>
    %c74_425 = arith.constant 74 : index
    %1374 = memref.load %arg7[%c74_425] : memref<144xf32, #tpu.memory_space<smem>>
    %1375 = vector.broadcast %1374 : f32 to vector<8x16xf32>
    %1376 = arith.mulf %1312, %1375 : vector<8x16xf32>
    %1377 = arith.addf %1373, %1376 : vector<8x16xf32>
    %c81_426 = arith.constant 81 : index
    %1378 = memref.load %arg7[%c81_426] : memref<144xf32, #tpu.memory_space<smem>>
    %1379 = vector.broadcast %1378 : f32 to vector<8x16xf32>
    %1380 = arith.mulf %1307, %1379 : vector<8x16xf32>
    %1381 = arith.addf %1287, %1380 : vector<8x16xf32>
    %c83_427 = arith.constant 83 : index
    %1382 = memref.load %arg7[%c83_427] : memref<144xf32, #tpu.memory_space<smem>>
    %1383 = vector.broadcast %1382 : f32 to vector<8x16xf32>
    %1384 = arith.mulf %1306, %1383 : vector<8x16xf32>
    %1385 = arith.addf %1381, %1384 : vector<8x16xf32>
    %c89_428 = arith.constant 89 : index
    %1386 = memref.load %arg7[%c89_428] : memref<144xf32, #tpu.memory_space<smem>>
    %1387 = vector.broadcast %1386 : f32 to vector<8x16xf32>
    %1388 = arith.mulf %1312, %1387 : vector<8x16xf32>
    %1389 = arith.addf %1385, %1388 : vector<8x16xf32>
    %c91_429 = arith.constant 91 : index
    %1390 = memref.load %arg7[%c91_429] : memref<144xf32, #tpu.memory_space<smem>>
    %1391 = vector.broadcast %1390 : f32 to vector<8x16xf32>
    %1392 = arith.mulf %1311, %1391 : vector<8x16xf32>
    %1393 = arith.addf %1389, %1392 : vector<8x16xf32>
    %c80_430 = arith.constant 80 : index
    %1394 = memref.load %arg7[%c80_430] : memref<144xf32, #tpu.memory_space<smem>>
    %1395 = vector.broadcast %1394 : f32 to vector<8x16xf32>
    %1396 = arith.mulf %1308, %1395 : vector<8x16xf32>
    %1397 = arith.addf %1303, %1396 : vector<8x16xf32>
    %c82_431 = arith.constant 82 : index
    %1398 = memref.load %arg7[%c82_431] : memref<144xf32, #tpu.memory_space<smem>>
    %1399 = vector.broadcast %1398 : f32 to vector<8x16xf32>
    %1400 = arith.mulf %1307, %1399 : vector<8x16xf32>
    %1401 = arith.addf %1397, %1400 : vector<8x16xf32>
    %c88_432 = arith.constant 88 : index
    %1402 = memref.load %arg7[%c88_432] : memref<144xf32, #tpu.memory_space<smem>>
    %1403 = vector.broadcast %1402 : f32 to vector<8x16xf32>
    %1404 = arith.mulf %1313, %1403 : vector<8x16xf32>
    %1405 = arith.addf %1401, %1404 : vector<8x16xf32>
    %c90_433 = arith.constant 90 : index
    %1406 = memref.load %arg7[%c90_433] : memref<144xf32, #tpu.memory_space<smem>>
    %1407 = vector.broadcast %1406 : f32 to vector<8x16xf32>
    %1408 = arith.mulf %1312, %1407 : vector<8x16xf32>
    %1409 = arith.addf %1405, %1408 : vector<8x16xf32>
    %c2_434 = arith.constant 2 : index
    %c10_435 = arith.constant 10 : index
    %c0_436 = arith.constant 0 : index
    %1410 = vector.load %arg10[%c2_434, %c10_435, %c0_436] : memref<3x18x18xf32, #tpu.memory_space<vmem>>, vector<1x8x18xf32>
    %1411 = vector.shape_cast %1410 : vector<1x8x18xf32> to vector<8x18xf32>
    %1412 = vector.extract_strided_slice %1411 {offsets = [0, 0], sizes = [8, 16], strides = [1, 1]} : vector<8x18xf32> to vector<8x16xf32>
    %1413 = vector.extract_strided_slice %1411 {offsets = [0, 1], sizes = [8, 16], strides = [1, 1]} : vector<8x18xf32> to vector<8x16xf32>
    %1414 = vector.extract_strided_slice %1411 {offsets = [0, 2], sizes = [8, 16], strides = [1, 1]} : vector<8x18xf32> to vector<8x16xf32>
    %c2_437 = arith.constant 2 : index
    %c9_438 = arith.constant 9 : index
    %c0_439 = arith.constant 0 : index
    %1415 = vector.load %arg10[%c2_437, %c9_438, %c0_439] : memref<3x18x18xf32, #tpu.memory_space<vmem>>, vector<1x8x18xf32>
    %1416 = vector.shape_cast %1415 : vector<1x8x18xf32> to vector<8x18xf32>
    %1417 = vector.extract_strided_slice %1416 {offsets = [0, 0], sizes = [8, 16], strides = [1, 1]} : vector<8x18xf32> to vector<8x16xf32>
    %1418 = vector.extract_strided_slice %1416 {offsets = [0, 1], sizes = [8, 16], strides = [1, 1]} : vector<8x18xf32> to vector<8x16xf32>
    %1419 = vector.extract_strided_slice %1416 {offsets = [0, 2], sizes = [8, 16], strides = [1, 1]} : vector<8x18xf32> to vector<8x16xf32>
    %c97_440 = arith.constant 97 : index
    %1420 = memref.load %arg7[%c97_440] : memref<144xf32, #tpu.memory_space<smem>>
    %1421 = vector.broadcast %1420 : f32 to vector<8x16xf32>
    %1422 = arith.mulf %1413, %1421 : vector<8x16xf32>
    %1423 = arith.addf %1329, %1422 : vector<8x16xf32>
    %c99_441 = arith.constant 99 : index
    %1424 = memref.load %arg7[%c99_441] : memref<144xf32, #tpu.memory_space<smem>>
    %1425 = vector.broadcast %1424 : f32 to vector<8x16xf32>
    %1426 = arith.mulf %1412, %1425 : vector<8x16xf32>
    %1427 = arith.addf %1423, %1426 : vector<8x16xf32>
    %c105_442 = arith.constant 105 : index
    %1428 = memref.load %arg7[%c105_442] : memref<144xf32, #tpu.memory_space<smem>>
    %1429 = vector.broadcast %1428 : f32 to vector<8x16xf32>
    %1430 = arith.mulf %1418, %1429 : vector<8x16xf32>
    %1431 = arith.addf %1427, %1430 : vector<8x16xf32>
    %c107_443 = arith.constant 107 : index
    %1432 = memref.load %arg7[%c107_443] : memref<144xf32, #tpu.memory_space<smem>>
    %1433 = vector.broadcast %1432 : f32 to vector<8x16xf32>
    %1434 = arith.mulf %1417, %1433 : vector<8x16xf32>
    %1435 = arith.addf %1431, %1434 : vector<8x16xf32>
    %c96_444 = arith.constant 96 : index
    %1436 = memref.load %arg7[%c96_444] : memref<144xf32, #tpu.memory_space<smem>>
    %1437 = vector.broadcast %1436 : f32 to vector<8x16xf32>
    %1438 = arith.mulf %1414, %1437 : vector<8x16xf32>
    %1439 = arith.addf %1345, %1438 : vector<8x16xf32>
    %c98_445 = arith.constant 98 : index
    %1440 = memref.load %arg7[%c98_445] : memref<144xf32, #tpu.memory_space<smem>>
    %1441 = vector.broadcast %1440 : f32 to vector<8x16xf32>
    %1442 = arith.mulf %1413, %1441 : vector<8x16xf32>
    %1443 = arith.addf %1439, %1442 : vector<8x16xf32>
    %c104_446 = arith.constant 104 : index
    %1444 = memref.load %arg7[%c104_446] : memref<144xf32, #tpu.memory_space<smem>>
    %1445 = vector.broadcast %1444 : f32 to vector<8x16xf32>
    %1446 = arith.mulf %1419, %1445 : vector<8x16xf32>
    %1447 = arith.addf %1443, %1446 : vector<8x16xf32>
    %c106_447 = arith.constant 106 : index
    %1448 = memref.load %arg7[%c106_447] : memref<144xf32, #tpu.memory_space<smem>>
    %1449 = vector.broadcast %1448 : f32 to vector<8x16xf32>
    %1450 = arith.mulf %1418, %1449 : vector<8x16xf32>
    %1451 = arith.addf %1447, %1450 : vector<8x16xf32>
    %c113_448 = arith.constant 113 : index
    %1452 = memref.load %arg7[%c113_448] : memref<144xf32, #tpu.memory_space<smem>>
    %1453 = vector.broadcast %1452 : f32 to vector<8x16xf32>
    %1454 = arith.mulf %1413, %1453 : vector<8x16xf32>
    %1455 = arith.addf %1361, %1454 : vector<8x16xf32>
    %c115_449 = arith.constant 115 : index
    %1456 = memref.load %arg7[%c115_449] : memref<144xf32, #tpu.memory_space<smem>>
    %1457 = vector.broadcast %1456 : f32 to vector<8x16xf32>
    %1458 = arith.mulf %1412, %1457 : vector<8x16xf32>
    %1459 = arith.addf %1455, %1458 : vector<8x16xf32>
    %c121_450 = arith.constant 121 : index
    %1460 = memref.load %arg7[%c121_450] : memref<144xf32, #tpu.memory_space<smem>>
    %1461 = vector.broadcast %1460 : f32 to vector<8x16xf32>
    %1462 = arith.mulf %1418, %1461 : vector<8x16xf32>
    %1463 = arith.addf %1459, %1462 : vector<8x16xf32>
    %c123_451 = arith.constant 123 : index
    %1464 = memref.load %arg7[%c123_451] : memref<144xf32, #tpu.memory_space<smem>>
    %1465 = vector.broadcast %1464 : f32 to vector<8x16xf32>
    %1466 = arith.mulf %1417, %1465 : vector<8x16xf32>
    %1467 = arith.addf %1463, %1466 : vector<8x16xf32>
    %c112_452 = arith.constant 112 : index
    %1468 = memref.load %arg7[%c112_452] : memref<144xf32, #tpu.memory_space<smem>>
    %1469 = vector.broadcast %1468 : f32 to vector<8x16xf32>
    %1470 = arith.mulf %1414, %1469 : vector<8x16xf32>
    %1471 = arith.addf %1377, %1470 : vector<8x16xf32>
    %c114_453 = arith.constant 114 : index
    %1472 = memref.load %arg7[%c114_453] : memref<144xf32, #tpu.memory_space<smem>>
    %1473 = vector.broadcast %1472 : f32 to vector<8x16xf32>
    %1474 = arith.mulf %1413, %1473 : vector<8x16xf32>
    %1475 = arith.addf %1471, %1474 : vector<8x16xf32>
    %c120_454 = arith.constant 120 : index
    %1476 = memref.load %arg7[%c120_454] : memref<144xf32, #tpu.memory_space<smem>>
    %1477 = vector.broadcast %1476 : f32 to vector<8x16xf32>
    %1478 = arith.mulf %1419, %1477 : vector<8x16xf32>
    %1479 = arith.addf %1475, %1478 : vector<8x16xf32>
    %c122_455 = arith.constant 122 : index
    %1480 = memref.load %arg7[%c122_455] : memref<144xf32, #tpu.memory_space<smem>>
    %1481 = vector.broadcast %1480 : f32 to vector<8x16xf32>
    %1482 = arith.mulf %1418, %1481 : vector<8x16xf32>
    %1483 = arith.addf %1479, %1482 : vector<8x16xf32>
    %c129_456 = arith.constant 129 : index
    %1484 = memref.load %arg7[%c129_456] : memref<144xf32, #tpu.memory_space<smem>>
    %1485 = vector.broadcast %1484 : f32 to vector<8x16xf32>
    %1486 = arith.mulf %1413, %1485 : vector<8x16xf32>
    %1487 = arith.addf %1393, %1486 : vector<8x16xf32>
    %c131_457 = arith.constant 131 : index
    %1488 = memref.load %arg7[%c131_457] : memref<144xf32, #tpu.memory_space<smem>>
    %1489 = vector.broadcast %1488 : f32 to vector<8x16xf32>
    %1490 = arith.mulf %1412, %1489 : vector<8x16xf32>
    %1491 = arith.addf %1487, %1490 : vector<8x16xf32>
    %c137_458 = arith.constant 137 : index
    %1492 = memref.load %arg7[%c137_458] : memref<144xf32, #tpu.memory_space<smem>>
    %1493 = vector.broadcast %1492 : f32 to vector<8x16xf32>
    %1494 = arith.mulf %1418, %1493 : vector<8x16xf32>
    %1495 = arith.addf %1491, %1494 : vector<8x16xf32>
    %c139_459 = arith.constant 139 : index
    %1496 = memref.load %arg7[%c139_459] : memref<144xf32, #tpu.memory_space<smem>>
    %1497 = vector.broadcast %1496 : f32 to vector<8x16xf32>
    %1498 = arith.mulf %1417, %1497 : vector<8x16xf32>
    %1499 = arith.addf %1495, %1498 : vector<8x16xf32>
    %c128_460 = arith.constant 128 : index
    %1500 = memref.load %arg7[%c128_460] : memref<144xf32, #tpu.memory_space<smem>>
    %1501 = vector.broadcast %1500 : f32 to vector<8x16xf32>
    %1502 = arith.mulf %1414, %1501 : vector<8x16xf32>
    %1503 = arith.addf %1409, %1502 : vector<8x16xf32>
    %c130_461 = arith.constant 130 : index
    %1504 = memref.load %arg7[%c130_461] : memref<144xf32, #tpu.memory_space<smem>>
    %1505 = vector.broadcast %1504 : f32 to vector<8x16xf32>
    %1506 = arith.mulf %1413, %1505 : vector<8x16xf32>
    %1507 = arith.addf %1503, %1506 : vector<8x16xf32>
    %c136_462 = arith.constant 136 : index
    %1508 = memref.load %arg7[%c136_462] : memref<144xf32, #tpu.memory_space<smem>>
    %1509 = vector.broadcast %1508 : f32 to vector<8x16xf32>
    %1510 = arith.mulf %1419, %1509 : vector<8x16xf32>
    %1511 = arith.addf %1507, %1510 : vector<8x16xf32>
    %c138_463 = arith.constant 138 : index
    %1512 = memref.load %arg7[%c138_463] : memref<144xf32, #tpu.memory_space<smem>>
    %1513 = vector.broadcast %1512 : f32 to vector<8x16xf32>
    %1514 = arith.mulf %1418, %1513 : vector<8x16xf32>
    %1515 = arith.addf %1511, %1514 : vector<8x16xf32>
    %c0_464 = arith.constant 0 : index
    %c0_465 = arith.constant 0 : index
    %c2_466 = arith.constant 2 : index
    %c8_467 = arith.constant 8 : index
    %c0_468 = arith.constant 0 : index
    %1516 = vector.load %arg9[%c0_464, %c0_465, %c2_466, %c8_467, %c0_468] : memref<1x3x4x16x16xf32, #tpu.memory_space<vmem>>, vector<1x1x1x8x16xf32>
    %1517 = vector.shape_cast %1516 : vector<1x1x1x8x16xf32> to vector<8x16xf32>
    %1518 = vector.shape_cast %1435 : vector<8x16xf32> to vector<1x1x1x8x16xf32>
    tpu.vector_store %arg9[%c0_464, %c0_465, %c2_466, %c8_467, %c0_468], %1518 {strides = array<i32>} : memref<1x3x4x16x16xf32, #tpu.memory_space<vmem>>, vector<1x1x1x8x16xf32>,
    %c0_469 = arith.constant 0 : index
    %c0_470 = arith.constant 0 : index
    %c3_471 = arith.constant 3 : index
    %c8_472 = arith.constant 8 : index
    %c0_473 = arith.constant 0 : index
    %1519 = vector.load %arg9[%c0_469, %c0_470, %c3_471, %c8_472, %c0_473] : memref<1x3x4x16x16xf32, #tpu.memory_space<vmem>>, vector<1x1x1x8x16xf32>
    %1520 = vector.shape_cast %1519 : vector<1x1x1x8x16xf32> to vector<8x16xf32>
    %1521 = vector.shape_cast %1451 : vector<8x16xf32> to vector<1x1x1x8x16xf32>
    tpu.vector_store %arg9[%c0_469, %c0_470, %c3_471, %c8_472, %c0_473], %1521 {strides = array<i32>} : memref<1x3x4x16x16xf32, #tpu.memory_space<vmem>>, vector<1x1x1x8x16xf32>,
    %c0_474 = arith.constant 0 : index
    %c1_475 = arith.constant 1 : index
    %c2_476 = arith.constant 2 : index
    %c8_477 = arith.constant 8 : index
    %c0_478 = arith.constant 0 : index
    %1522 = vector.load %arg9[%c0_474, %c1_475, %c2_476, %c8_477, %c0_478] : memref<1x3x4x16x16xf32, #tpu.memory_space<vmem>>, vector<1x1x1x8x16xf32>
    %1523 = vector.shape_cast %1522 : vector<1x1x1x8x16xf32> to vector<8x16xf32>
    %1524 = vector.shape_cast %1467 : vector<8x16xf32> to vector<1x1x1x8x16xf32>
    tpu.vector_store %arg9[%c0_474, %c1_475, %c2_476, %c8_477, %c0_478], %1524 {strides = array<i32>} : memref<1x3x4x16x16xf32, #tpu.memory_space<vmem>>, vector<1x1x1x8x16xf32>,
    %c0_479 = arith.constant 0 : index
    %c1_480 = arith.constant 1 : index
    %c3_481 = arith.constant 3 : index
    %c8_482 = arith.constant 8 : index
    %c0_483 = arith.constant 0 : index
    %1525 = vector.load %arg9[%c0_479, %c1_480, %c3_481, %c8_482, %c0_483] : memref<1x3x4x16x16xf32, #tpu.memory_space<vmem>>, vector<1x1x1x8x16xf32>
    %1526 = vector.shape_cast %1525 : vector<1x1x1x8x16xf32> to vector<8x16xf32>
    %1527 = vector.shape_cast %1483 : vector<8x16xf32> to vector<1x1x1x8x16xf32>
    tpu.vector_store %arg9[%c0_479, %c1_480, %c3_481, %c8_482, %c0_483], %1527 {strides = array<i32>} : memref<1x3x4x16x16xf32, #tpu.memory_space<vmem>>, vector<1x1x1x8x16xf32>,
    %c0_484 = arith.constant 0 : index
    %c2_485 = arith.constant 2 : index
    %c2_486 = arith.constant 2 : index
    %c8_487 = arith.constant 8 : index
    %c0_488 = arith.constant 0 : index
    %1528 = vector.load %arg9[%c0_484, %c2_485, %c2_486, %c8_487, %c0_488] : memref<1x3x4x16x16xf32, #tpu.memory_space<vmem>>, vector<1x1x1x8x16xf32>
    %1529 = vector.shape_cast %1528 : vector<1x1x1x8x16xf32> to vector<8x16xf32>
    %1530 = vector.shape_cast %1499 : vector<8x16xf32> to vector<1x1x1x8x16xf32>
    tpu.vector_store %arg9[%c0_484, %c2_485, %c2_486, %c8_487, %c0_488], %1530 {strides = array<i32>} : memref<1x3x4x16x16xf32, #tpu.memory_space<vmem>>, vector<1x1x1x8x16xf32>,
    %c0_489 = arith.constant 0 : index
    %c2_490 = arith.constant 2 : index
    %c3_491 = arith.constant 3 : index
    %c8_492 = arith.constant 8 : index
    %c0_493 = arith.constant 0 : index
    %1531 = vector.load %arg9[%c0_489, %c2_490, %c3_491, %c8_492, %c0_493] : memref<1x3x4x16x16xf32, #tpu.memory_space<vmem>>, vector<1x1x1x8x16xf32>
    %1532 = vector.shape_cast %1531 : vector<1x1x1x8x16xf32> to vector<8x16xf32>
    %1533 = vector.shape_cast %1515 : vector<8x16xf32> to vector<1x1x1x8x16xf32>
    tpu.vector_store %arg9[%c0_489, %c2_490, %c3_491, %c8_492, %c0_493], %1533 {strides = array<i32>} : memref<1x3x4x16x16xf32, #tpu.memory_space<vmem>>, vector<1x1x1x8x16xf32>,
    return
  }
  func.func @transform_0(%arg0: i32, %arg1: i32) -> (i32, i32, i32, i32) {
    %c0_i32 = arith.constant 0 : i32
    %c0_i32_0 = arith.constant 0 : i32
    %c0_i32_1 = arith.constant 0 : i32
    return %arg0, %c0_i32, %arg1, %c0_i32_0 : i32, i32, i32, i32
  }
  func.func @transform_1(%arg0: i32, %arg1: i32) -> (i32, i32, i32, i32) {
    %c2_i32 = arith.constant 2 : i32
    %0 = arith.muli %arg1, %c2_i32 : i32
    %c1_i32 = arith.constant 1 : i32
    %1 = arith.subi %0, %c1_i32 : i32
    %c0_i32 = arith.constant 0 : i32
    %2 = arith.maxsi %1, %c0_i32 : i32
    %c0_i32_0 = arith.constant 0 : i32
    %c0_i32_1 = arith.constant 0 : i32
    %c0_i32_2 = arith.constant 0 : i32
    return %arg0, %c0_i32_0, %2, %c0_i32_1 : i32, i32, i32, i32
  }
  func.func @transform_2(%arg0: i32, %arg1: i32) -> (i32, i32, i32, i32) {
    %c2_i32 = arith.constant 2 : i32
    %0 = arith.muli %arg1, %c2_i32 : i32
    %c2_i32_0 = arith.constant 2 : i32
    %1 = arith.addi %0, %c2_i32_0 : i32
    %c1_i32 = arith.constant 1 : i32
    %2 = arith.minsi %1, %c1_i32 : i32
    %c0_i32 = arith.constant 0 : i32
    %c0_i32_1 = arith.constant 0 : i32
    %c0_i32_2 = arith.constant 0 : i32
    return %arg0, %c0_i32, %2, %c0_i32_1 : i32, i32, i32, i32
  }
  func.func @transform_3(%arg0: i32, %arg1: i32) -> i32 {
    %c0_i32 = arith.constant 0 : i32
    %c0_i32_0 = arith.constant 0 : i32
    return %c0_i32 : i32
  }
  func.func @transform_4(%arg0: i32, %arg1: i32) -> i32 {
    %c0_i32 = arith.constant 0 : i32
    %c0_i32_0 = arith.constant 0 : i32
    return %c0_i32 : i32
  }
  func.func @transform_5(%arg0: i32, %arg1: i32) -> i32 {
    %c0_i32 = arith.constant 0 : i32
    %c0_i32_0 = arith.constant 0 : i32
    return %c0_i32 : i32
  }
  func.func @transform_6(%arg0: i32, %arg1: i32) -> i32 {
    %c0_i32 = arith.constant 0 : i32
    %c0_i32_0 = arith.constant 0 : i32
    return %c0_i32 : i32
  }
  func.func @transform_7(%arg0: i32, %arg1: i32) -> (i32, i32, i32, i32, i32) {
    %c0_i32 = arith.constant 0 : i32
    %c0_i32_0 = arith.constant 0 : i32
    %c0_i32_1 = arith.constant 0 : i32
    %c0_i32_2 = arith.constant 0 : i32
    return %arg0, %c0_i32, %c0_i32_0, %arg1, %c0_i32_1 : i32, i32, i32, i32, i32
  }
}

</mosaic_0001>

<bundles_post_ra>
// kernel: sideoutput2_forward.1
= control target key start
LH: loop header
LB: loop body
LE: loop exit
PB: predicated region body
PF: predicated region fallthrough
CT: control target
= control target key end

     0   :  { %s5774_s0 = inlined_call_operand.hbm [shape: f32[2,4,16,16], index: 0, kind: input, shape index: {}, may-alias: {0,1,2}]   ;;  %s5775_s1 = inlined_call_operand.hbm [shape: f32[2,4,16,16], index: 1, kind: input, shape index: {}, may-alias: {0,1,2}]   ;;  %s5776_s2 = inlined_call_operand.hbm [shape: f32[2,4,16,16], index: 2, kind: input, shape index: {}, may-alias: {0,1,2}]   ;;  %s5777_s3 = inlined_call_operand.vmem [shape: f32[12], index: 3, kind: input, shape index: {}]   ;;  %s5778_s4 = inlined_call_operand.hbm [shape: f32[3], index: 4, kind: input, shape index: {}]   ;;  %s5779_s5 = inlined_call_operand.vmem [shape: f32[144], index: 5, kind: input, shape index: {}]   ;;  %s5780_s6 = inlined_call_operand.hbm [shape: f32[3], index: 6, kind: input, shape index: {}]   ;;  %s5781_s7 = inlined_call_operand.vmem [shape: f32[2,3,4,16,16], index: 7, kind: output, shape index: {}]  }
   0x1   :  { %5886 = sst [smem:[#allocation72_spill]] %s5774_s0 }
   0x2   :  { %5887 = sst [smem:[#allocation73_spill]] %s5775_s1 }
   0x3   :  { %5888 = sst [smem:[#allocation74_spill]] %s5776_s2 }
   0x4   :  { %5889 = sst [smem:[#allocation75_spill]] %s5777_s3 }
   0x5   :  { %5890 = sst [smem:[#allocation76_spill]] %s5778_s4 }
   0x6   :  { %5891 = sst [smem:[#allocation77_spill]] %s5779_s5 }
   0x7   :  { %5892 = sst [smem:[#allocation78_spill]] %s5780_s6 }
   0x8   :  { %5893 = sst [smem:[#allocation79_spill]] %s5781_s7 }
   0x9   :  { %12 = vsyncpa [#allocation4], 0 }
   0xa   :  { %14 = vsyncpa [#allocation4 + $0x1], 0 }
   0xb   :  { %15 = vsyncpa [#allocation8], 0 }
   0xc   :  { %17 = vsyncpa [#allocation8 + $0x1], 0 }
   0xd   :  { %18 = vsyncpa [#allocation6], 0 }
   0xe   :  { %19 = vsyncpa [#allocation5], 0 }
   0xf   :  { %20 = vsyncpa [#allocation13], 0 }
  0x10   :  { %21 = vsyncpa [#allocation15], 0  ;;  %s3761_s24 = smov 0   ;;  %s3763_s25 = smov 0  }
  0x11   :  { %s3765_s26 = smov 0   ;;  %s3767_s27 = smov 0  }
  0x12   :  { %s3769_s28 = smov 0   ;;  %s3771_s29 = smov 0  }
  0x13 LB: > { %5894 = sst [smem:[#allocation22_spill]] %s3689_s25  ;;  %s39_s30 = sadd.s32 1, %s3701_s28  ;;  %s3705_s29 = sphi %s3771_s29, %s27_s29   ;;  %s3701_s28 = sphi %s3769_s28, %s6066_s28   ;;  %s3697_s27 = sphi %s3767_s27, %s6065_s27   ;;  %s3693_s26 = sphi %s3765_s26, %s6064_s26   ;;  %s3689_s25 = sphi %s3763_s25, %s6063_s25   ;;  %s3685_s24 = sphi %s3761_s24, %s6062_s24  }
  0x14   : > { %5895 = sst [smem:[#allocation23_spill]] %s3693_s26  ;;  %s48_s8 = sadd.s32 1, %s3693_s26 }
  0x15   : > { %5896 = sst [smem:[#allocation24_spill]] %s3697_s27  ;;  %p41_p0 = scmp.ge.s32.totalorder %s39_s30, 2 }
  0x16   : > { %5897 = sst [smem:[#allocation25_spill]] %s3701_s28  ;;  %p55_p1 = scmp.ne.s32.totalorder %s3693_s26, %s3689_s25 }
  0x17   : > { %5898 = sst [smem:[#allocation26_spill]] %s3705_s29  ;;  %p56_p2 = scmp.eq.s32.totalorder %s3705_s29, 0 }
  0x18   : > { %s6068_s30 = smov (%p41_p0, %s39_s30), 0  ;;  %p3423_p4 = scmp.lt.s32.totalorder %s3705_s29, 2 }
  0x19   : > { %5899 = sst [smem:[#allocation27_spill]] %s6068_s30  ;;  %p57_p3 = por %p56_p2, %p55_p1 }
  0x1a   : > { %s43_s9 = ssub.s32 %s3701_s28, %s6068_s30  ;;  %s3802_s10 = sand.u32 1, %s3693_s26  }
  0x1b   : > { %p46_p5 = scmp.eq.s32.totalorder %s43_s9, 0  ;;  %s3805_s11 = sshll.u32 %s3701_s28, 10 }
  0x1c   : > { %p3807_p6 = pnand %p3423_p4, %p57_p3  ;;  %s332_s14 = sand.u32 1, %s3705_s29  }
  0x1d   : > { %s3812_s13 = scalar_select %p46_p5, %s3693_s26, %s48_s8  }
  0x1e   : > { %s2955_s15 = sshll.u32 %s3802_s10, 5  ;;  %s5902_s1 = sld [smem:[#allocation73_spill]] }
  0x1f   : > { %5901 = sst [smem:[#allocation28_spill]] %s3812_s13  ;;  %s336_s19 = scalar_lea.vmem [#allocation7], %s2955_s15 }
  0x20   : > { %s348_s20 = sshll.u32 %s336_s19, 4  ;;  %s3820_s21 = scalar_lea.sflag [#allocation8], %s332_s14  ;;  %s349_s20 = int_to_ptr.vmem [resolvable:$true] %s348_s20 }
  0x21   : > { %p5788_p7 = pneg %p3807_p6  ;;  %s3512_s22 = scalar_lea.vmem %s349_s20, 512 }
  0x22   : > { %p3513_p8 = scmp.ne.s32.totalorder %s349_s20, %s3512_s22  ;;  %s3707_s23 = smov [#allocation7]  }
  0x23   : > { %s3517_s8 = sshll.u32 %s3707_s23, 4  ;;  %s3518_s8 = int_to_ptr.vmem [resolvable:$false] %s3517_s8 }
  0x24   : > { %s347_s18 = scalar_lea.hbm %s5902_s1, %s3805_s11  ;;  %p3515_p9 = pnand %p3513_p8, %p5788_p7 }
  0x25   : > { %s3519_s9 = scalar_lea.vmem %s3518_s8, 1024  ;;  %p3520_p11 = scmp.lt.s32.totalorder %s349_s20, %s3518_s8 }
  0x26   : > { %p3516_p10 = pneg %p3515_p9  ;;  %p3521_p12 = scmp.lt.s32.totalorder %s3519_s9, %s3512_s22 }
  0x28   : > { %p3522_p13 = por %p3521_p12, %p3520_p11 }
  0x2a   : > { %p3523_p0 = pnand %p3522_p13, %p3516_p10 }
  0x2c   : > { %3526 = shalt.err (!%p3523_p0)
}
  0x2d   : > { %s5783_s16 = smov 256   ;;  %s5784_s14 = smov 128  }
  0x2e   : > { %s5786_s17 = smov 8   ;;  %s362_s19 = scalar_lea.vmem [#allocation9], %s2955_s15 }
  0x2f   : > { %3415 = dma.hbm_to_vmem [thread:$0]  (!%p3807_p6), %s347_s18, 512, %s349_s20, %s3820_s21, %s5783_s16, %s5784_s14, %s5786_s17  }
  0x30   : > { %s374_s22 = sshll.u32 %s362_s19, 4  ;;  %s5782_s23 = sadd.s32 4294967295, %s3705_s29   ;;  %s3833_s22 = int_to_ptr.vmem [resolvable:$true] %s374_s22 }
  0x31   : > { %p61_p1 = scmp.ne.s32.totalorder %s3689_s25, %s3685_s24  ;;  %p3840_p2 = scmp.eq.s32.totalorder %s5782_s23, 0 }
  0x32   : > { %p2946_p3 = scmp.ge.s32.totalorder %s3705_s29, 1  ;;  %p256_p4 = scmp.lt.s32.totalorder %s3705_s29, 3 }
  0x33   : > { %p3848_p5 = por %p3840_p2, %p61_p1  ;;  %s5906_s3 = sld [smem:[#allocation75_spill]] }
  0x34   : > { %p3852_p8 = pnand %p2946_p3, %p256_p4  ;;  %s5907_s5 = sld [smem:[#allocation77_spill]] }
  0x36   : > { %p3396_p9 = pneg %p3852_p8 }
  0x38   : > { %p3866_p10 = pnand %p3396_p9, %p3840_p2 }
  0x39   : > { %s269_s20 = sshll.u32 %s5906_s3, 4  ;;  %s270_s20 = int_to_ptr.vmem [resolvable:$true] %s269_s20 }
  0x3a   : > { %s289_s16 = sshll.u32 %s5907_s5, 4  ;;  %s3527_s1 = scalar_lea.vmem %s270_s20, 16  ;;  %s290_s16 = int_to_ptr.vmem [resolvable:$true] %s289_s16 }
  0x3b   : > { %p3528_p11 = scmp.ne.s32.totalorder %s270_s20, %s3527_s1  ;;  %p3529_p12 = pneg %p3866_p10 }
  0x3c   : > { %p3535_p1 = scmp.lt.s32.totalorder %s270_s20, %s270_s20  ;;  %p3536_p3 = scmp.lt.s32.totalorder %s3527_s1, %s3527_s1 }
  0x3d   : > { %p3530_p13 = pnand %p3529_p12, %p3528_p11 }
  0x3e   : > { %p3537_p4 = por %p3536_p3, %p3535_p1 }
  0x3f   : > { %p3531_p0 = pneg %p3530_p13 }
  0x41   : > { %p3538_p7 = pnand %p3537_p4, %p3531_p0 }
  0x43   : > { %3541 = shalt.err (!%p3538_p7)
}
  0x44   : > { %s3711_s23 = smov [#allocation10]   ;;  %s3712_s18 = smov [#allocation11]  }
  0x45   : > { %3399 = dma.vmem_to_smem (!%p3866_p10), %s270_s20, 16, %s3711_s23, [#allocation6]  }
  0x46   : > { %s5909_s4 = sld [smem:[#allocation76_spill]]  ;;  %s3553_s17 = scalar_lea.vmem %s290_s16, 32 }
  0x47   : > { %p3554_p9 = scmp.ne.s32.totalorder %s290_s16, %s3553_s17  ;;  %p3561_p0 = scmp.lt.s32.totalorder %s290_s16, %s290_s16 }
  0x48   : > { %p3562_p7 = scmp.lt.s32.totalorder %s3553_s17, %s3553_s17 }
  0x49   : > { %p3556_p11 = pnand %p3554_p9, %p3529_p12 }
  0x4a   : > { %p3563_p1 = por %p3562_p7, %p3561_p0 }
  0x4b   : > { %p3557_p13 = pneg %p3556_p11 }
  0x4c   : > { %3402 = dma.hbm_to_smem (!%p3866_p10), %s5909_s4, 16, %s3712_s18, [#allocation5]  }
  0x4d   : > { %p3564_p3 = pnand %p3563_p1, %p3557_p13 }
  0x4f   : > { %3567 = shalt.err (!%p3564_p3)
}
  0x50   : > { %s3713_s1 = smov [#allocation12]   ;;  %s3714_s20 = smov [#allocation14]  }
  0x51   : > { %3405 = dma.vmem_to_smem (!%p3866_p10), %s290_s16, 32, %s3713_s1, [#allocation13]  }
  0x52   : > { %s5910_s6 = sld [smem:[#allocation78_spill]]  ;;  %s5912_s3 = sshll.u32 %s3802_s10, 6 }
  0x53   : > { %s5911_s0 = sld [smem:[#allocation72_spill]]  ;;  %s313_s4 = scalar_lea.vmem [#allocation3], %s5912_s3 }
  0x54   : > { %s322_s5 = sshll.u32 %s313_s4, 4  ;;  %s3371_s30 = sadd.s32 128, %s3805_s11  ;;  %s323_s5 = int_to_ptr.vmem [resolvable:$true] %s322_s5 }
  0x55   : > { %s5913_s2 = sld [smem:[#allocation74_spill]]  ;;  %s310_s16 = scalar_lea.sflag [#allocation4], %s3802_s10 }
  0x56   : > { %s3592_s14 = scalar_lea.vmem %s323_s5, 1024  ;;  %p5914_p4 = pneg %p3807_p6 }
  0x57   : > { %p3593_p12 = scmp.ne.s32.totalorder %s323_s5, %s3592_s14  ;;  %s3715_s1 = smov [#allocation3]  }
  0x58   : > { %3408 = dma.hbm_to_smem (!%p3866_p10), %s5910_s6, 16, %s3714_s20, [#allocation15]  }
  0x59   : > { %s321_s19 = scalar_lea.hbm %s5911_s0, %s3805_s11  ;;  %p3595_p10 = pnand %p3593_p12, %p5914_p4 }
  0x5a   : > { %s3597_s20 = sshll.u32 %s3715_s1, 4  ;;  %s3598_s20 = int_to_ptr.vmem [resolvable:$false] %s3597_s20 }
  0x5b   : > { %s3903_s26 = scalar_lea.hbm %s5913_s2, %s3371_s30  ;;  %p3596_p9 = pneg %p3595_p10 }
  0x5c   : > { %s3599_s23 = scalar_lea.vmem %s3598_s20, 2048  ;;  %p3600_p11 = scmp.lt.s32.totalorder %s323_s5, %s3598_s20 }
  0x5d   : > { %p3601_p13 = scmp.lt.s32.totalorder %s3599_s23, %s3592_s14 }
  0x5f   : > { %p3602_p0 = por %p3601_p13, %p3600_p11 }
  0x61   : > { %p3603_p7 = pnand %p3602_p0, %p3596_p9 }
  0x63   : > { %3606 = shalt.err (!%p3603_p7)
}
  0x64   : > { %s5915_s3 = smov 8   ;;  %s5916_s4 = smov 128  }
  0x65   : > { %3412 = dma.hbm_to_vmem [thread:$0]  (!%p3807_p6), %s321_s19, 1024, %s323_s5, %s310_s16, %s5916_s4, %s5916_s4, %s5915_s3  }
  0x66   : > { %s3620_s28 = scalar_lea.vmem %s3833_s22, 512  ;;  %p5917_p3 = pmov %p5914_p4 }
  0x67   : > { %p3621_p1 = scmp.ne.s32.totalorder %s3833_s22, %s3620_s28  ;;  %s3716_s30 = smov [#allocation9]  }
  0x68   : > { %s3625_s10 = sshll.u32 %s3716_s30, 4  ;;  %s3626_s10 = int_to_ptr.vmem [resolvable:$false] %s3625_s10 }
  0x69   : > { %p3623_p12 = pnand %p3621_p1, %p5917_p3  ;;  %s3627_s11 = scalar_lea.vmem %s3626_s10, 1024 }
  0x6a   : > { %p3628_p10 = scmp.lt.s32.totalorder %s3833_s22, %s3626_s10  ;;  %p3629_p9 = scmp.lt.s32.totalorder %s3627_s11, %s3620_s28 }
  0x6b   : > { %p3624_p4 = pneg %p3623_p12 }
  0x6c   : > { %p3630_p11 = por %p3629_p9, %p3628_p10 }
  0x6e   : > { %p3631_p13 = pnand %p3630_p11, %p3624_p4 }
  0x70   : > { %3634 = shalt.err (!%p3631_p13)
}
  0x71   : > { %s5918_s5 = smov 256   ;;  %386 = sbr.rel (%p3852_p8) target bundleno = 826 (0x33a), region = 48 }
  0x72   : > { %3418 = dma.hbm_to_vmem [thread:$0]  (!%p3807_p6), %s3903_s26, 512, %s3833_s22, %s3820_s21, %s5918_s5, %s5916_s4, %s5915_s3  }
  0x76   : > { %s388_s13 = sand.u32 1, %s3689_s25  }
  0x77   : > { %s2962_s18 = sshll.u32 %s388_s13, 6  ;;  %s389_s17 = scalar_lea.sflag [#allocation4], %s388_s13 }
  0x78   : > { %s3931_s24 = scalar_lea.vmem [#allocation3], %s2962_s18 }
  0x79   : > { %3660 = dma.done.wait (%p3848_p5), %s389_s17, 1024  }
  0x7a   : > { %3662 = vsyncadd (%p3848_p5), %s389_s17, 4294966272  ;;  %s5919_s12 = sadd.s32 4294967295, %s3705_s29  }
  0x7b   : > { %s397_s19 = sand.u32 1, %s5919_s12  }
  0x7c   : > { %s398_s26 = scalar_lea.sflag [#allocation8], %s397_s19 }
  0x7d   : > { %3664 = dma.done.wait (%p3848_p5), %s398_s26, 1024  }
  0x7e   : > { %3666 = vsyncadd (%p3848_p5), %s398_s26, 4294966272 }
  0x7f   : > { %3668 = dma.done.wait (%p3840_p2), [#allocation6], 16  }
  0x80   : > { %3670 = vsyncadd (%p3840_p2), [#allocation6], 4294967280 }
  0x81   : > { %3672 = dma.done.wait (%p3840_p2), [#allocation5], 16  }
  0x82   : > { %3674 = vsyncadd (%p3840_p2), [#allocation5], 4294967280 }
  0x83   : > { %3676 = dma.done.wait (%p3840_p2), [#allocation13], 32  }
  0x84   : > { %3678 = vsyncadd (%p3840_p2), [#allocation13], 4294967264 }
  0x85   : > { %3680 = dma.done.wait (%p3840_p2), [#allocation15], 16  }
  0x86   : > { %3682 = vsyncadd (%p3840_p2), [#allocation15], 4294967280 }
  0x87   : > { %431 = sfence }
  0x88   : > { %s3959_s21 = sld [smem:[#allocation11 + $0x2]]  ;;  %vm679_vm0 = vcmask 131080   ;;  %vm491_vm1 = vcmask 7168   ;;  %vm502_vm2 = vcmask 146568   ;;  %v3970_v0 = vld [vmem:[%s3931_s24] sm:$0xff]  ;;  %v3717_v1 = vmov 0.0  }
  0x89   : > { %s3961_s22 = sld [smem:[#allocation10 + $0x8]]  ;;  %499 = vst.msk [vmem:[#allocation2 + $0x30] sm:$0xff] %vm491_vm1, %v3717_v1  ;;  %500 = vst.msk [vmem:[#allocation2 + $0x38] sm:$0xff] %vm491_vm1, %v3717_v1  ;;  %v3981_v2 = vld [vmem:[%s3931_s24 + $0x10] sm:$0xff]  ;;  %v4000_v5 = vld [vmem:[%s3931_s24 + $0x20] sm:$0xff]  ;;  %vm494_vm3 = vcmask 1024  }
  0x8a   : > { %s3963_s9 = sld [smem:[#allocation10 + $0x9]]  ;;  %492 = vst.msk [vmem:[#allocation2] sm:$0xff] %vm491_vm1, %v3717_v1  ;;  %493 = vst.msk [vmem:[#allocation2 + $0x8] sm:$0xff] %vm491_vm1, %v3717_v1  ;;  %v4003_v6 = vld [vmem:[%s3931_s24 + $0x8] sm:$0xff]  ;;  %v4016_v9 = vld [vmem:[%s3931_s24 + $0x30] sm:$0xff]  ;;  %vm505_vm4 = vcmask 140424  }
  0x8b   : > { %s3965_s15 = sld [smem:[#allocation10 + $0xa]]  ;;  %496 = vst.msk [vmem:[#allocation2 + $0x18] sm:$0xff] %vm491_vm1, %v3717_v1  ;;  %497 = vst.msk [vmem:[#allocation2 + $0x20] sm:$0xff] %vm491_vm1, %v3717_v1  ;;  %v4022_v11 = vld [vmem:[%s3931_s24 + $0x18] sm:$0xff]  ;;  %v4032_v19 = vld [vmem:[%s3931_s24 + $0x28] sm:$0xff]  ;;  %s5804_s11 = smov 1  }
  0x8c   : > { %s3967_s16 = sld [smem:[#allocation10 + $0xb]]  ;;  %510 = vst.msk [vmem:[#allocation2 + $0x30] sm:$0xff] %vm502_vm2, %v3717_v1  ;;  %511 = vst.msk [vmem:[#allocation2 + $0x38] sm:$0xff] %vm502_vm2, %v3717_v1  ;;  %v4035_v20 = vld [vmem:[%s3931_s24 + $0x38] sm:$0xff]  ;;  %vm546_vm5 = vcmask 138248   ;;  %vm1316_vm6 = vcmask 130048  }
  0x8d   : > { %s3972_s8 = sld [smem:[#allocation11]]  ;;  %503 = vst.msk [vmem:[#allocation2] sm:$0xff] %vm502_vm2, %v3717_v1  ;;  %504 = vst.msk [vmem:[#allocation2 + $0x8] sm:$0xff] %vm502_vm2, %v3717_v1 }
  0x8e   : > { %s3983_s14 = sld [smem:[#allocation10]]  ;;  %507 = vst.msk [vmem:[#allocation2 + $0x18] sm:$0xff] %vm502_vm2, %v3717_v1  ;;  %508 = vst.msk [vmem:[#allocation2 + $0x20] sm:$0xff] %vm502_vm2, %v3717_v1  ;;  %v518_v3 = vstv %s3959_s21 }
  0x8f   : > { %v576_v4 = vstv %s3961_s22  ;;  %s4005_s1 = sld [smem:[#allocation10 + $0x1]]  ;;  %682 = vst.msk [vmem:[#allocation2 + $0x30] sm:$0x1] %vm679_vm0, %v3717_v1  ;;  %680 = vst.msk [vmem:[#allocation2] sm:$0x1] %vm679_vm0, %v3717_v1 }
  0x90   : > { %681 = vst.msk [vmem:[#allocation2 + $0x18] sm:$0x1] %vm679_vm0, %v3717_v1  ;;  %v577_v7 = vmul.f32 %v576_v4, %v3970_v0  ;;  %v581_v8 = vstv %s3963_s9  ;;  %v653_v10 = vmul.f32 %v4003_v6, %v576_v4  ;;  %s4019_s20 = sld [smem:[#allocation10 + $0x2]] }
  0x91   : > { %v582_v12 = vmul.f32 %v3981_v2, %v581_v8  ;;  %v586_v13 = vstv %s3965_s15  ;;  %s4026_s23 = sld [smem:[#allocation10 + $0x3]]  ;;  %v658_v14 = vmul.f32 %v4022_v11, %v581_v8  ;;  %495 = vst.msk [vmem:[#allocation2 + $0x10] sm:$0x3] %vm494_vm3, %v3717_v1  ;;  %498 = vst.msk [vmem:[#allocation2 + $0x28] sm:$0x3] %vm494_vm3, %v3717_v1 }
  0x92   : > { %v578_v15 = vadd.f32 %v577_v7, %v518_v3  ;;  %v587_v16 = vmul.f32 %v4000_v5, %v586_v13  ;;  %v591_v17 = vstv %s3967_s16  ;;  %v654_v18 = vadd.f32 %v653_v10, %v518_v3  ;;  %s4037_s3 = sld [smem:[#allocation11 + $0x1]]  ;;  %501 = vst.msk [vmem:[#allocation2 + $0x40] sm:$0x3] %vm494_vm3, %v3717_v1 }
  0x93   : > { %v592_v21 = vmul.f32 %v4016_v9, %v591_v17  ;;  %v514_v22 = vstv %s3972_s8  ;;  %s4041_s4 = sld [smem:[#allocation10 + $0x4]]  ;;  %v663_v23 = vmul.f32 %v4032_v19, %v586_v13  ;;  %v668_v24 = vmul.f32 %v4035_v20, %v591_v17  ;;  %506 = vst.msk [vmem:[#allocation2 + $0x10] sm:$0x3] %vm505_vm4, %v3717_v1  ;;  %509 = vst.msk [vmem:[#allocation2 + $0x28] sm:$0x3] %vm505_vm4, %v3717_v1 }
  0x94   : > { %v583_v25 = vadd.f32 %v582_v12, %v578_v15  ;;  %v521_v26 = vstv %s3983_s14  ;;  %s4046_s28 = sld [smem:[#allocation10 + $0x5]]  ;;  %v659_v27 = vadd.f32 %v658_v14, %v654_v18  ;;  %512 = vst.msk [vmem:[#allocation2 + $0x40] sm:$0x3] %vm505_vm4, %v3717_v1 }
  0x95   : > { %v522_v28 = vmul.f32 %v3970_v0, %v521_v26  ;;  %v527_v29 = vstv %s4005_s1  ;;  %v603_v30 = vmul.f32 %v4003_v6, %v521_v26  ;;  %s4051_s30 = sld [smem:[#allocation10 + $0x6]]  ;;  %776 = vst.msk [vmem:[#allocation2 + $0x11] sm:$0x1] %vm679_vm0, %v3717_v1  ;;  %777 = vst.msk [vmem:[#allocation2 + $0x29] sm:$0x1] %vm679_vm0, %v3717_v1 }
  0x96   : > { %v588_v31 = vadd.f32 %v587_v16, %v583_v25  ;;  %v528_v32 = vmul.f32 %v3981_v2, %v527_v29  ;;  %v533_v33 = vstv %s4019_s20  ;;  %v608_v34 = vmul.f32 %v4022_v11, %v527_v29  ;;  %s4059_s10 = sld [smem:[#allocation10 + $0x7]]  ;;  %778 = vst.msk [vmem:[#allocation2 + $0x41] sm:$0x1] %vm679_vm0, %v3717_v1 }
  0x97   : > { %v523_v35 = vadd.f32 %v522_v28, %v514_v22  ;;  %v534_v36 = vmul.f32 %v4000_v5, %v533_v33  ;;  %v539_v37 = vstv %s4026_s23  ;;  %v604_v38 = vadd.f32 %v603_v30, %v514_v22  ;;  %s4095_s5 = sld [smem:[#allocation12 + $0xf]] }
  0x98   : > { %v593_v39 = vadd.f32 %v592_v21, %v588_v31  ;;  %v540_v40 = vmul.f32 %v4016_v9, %v539_v37  ;;  %v613_v41 = vmul.f32 %v4032_v19, %v533_v33  ;;  %v618_v42 = vmul.f32 %v4035_v20, %v539_v37  ;;  %s4097_s13 = sld [smem:[#allocation12 + $0x7]] }
  0x99   : > { %v529_v43 = vadd.f32 %v528_v32, %v523_v35  ;;  %v609_v44 = vadd.f32 %v608_v34, %v604_v38  ;;  %v516_v45 = vstv %s4037_s3  ;;  %v550_v46 = vstv %s4041_s4  ;;  %s4101_s18 = sld [smem:[#allocation12 + $0xe]] }
  0x9a   : > { %595 = vrot.lane.b32.xlu1 %v593_v39, %s5804_s11  ;;  %v551_v47 = vmul.f32 %v3970_v0, %v550_v46  ;;  %v555_v48 = vstv %s4046_s28  ;;  %v628_v49 = vmul.f32 %v4003_v6, %v550_v46  ;;  %v664_v50 = vadd.f32 %v663_v23, %v659_v27  ;;  %s4103_s17 = sld [smem:[#allocation12 + $0x6]] }
  0x9b   : > { %v535_v51 = vadd.f32 %v534_v36, %v529_v43  ;;  %v614_v52 = vadd.f32 %v613_v41, %v609_v44  ;;  %v556_v53 = vmul.f32 %v3981_v2, %v555_v48  ;;  %v560_v54 = vstv %s4051_s30  ;;  %s4105_s24 = sld [smem:[#allocation12 + $0x1f]] }
  0x9c   : > { %v552_v55 = vadd.f32 %v551_v47, %v516_v45  ;;  %v561_v56 = vmul.f32 %v4000_v5, %v560_v54  ;;  %v565_v57 = vstv %s4059_s10  ;;  %v629_v58 = vadd.f32 %v628_v49, %v516_v45  ;;  %s4110_s12 = sld [smem:[#allocation12 + $0x17]] }
  0x9d   : > { %v541_v59 = vadd.f32 %v540_v40, %v535_v51  ;;  %v619_v60 = vadd.f32 %v618_v42, %v614_v52  ;;  %v633_v61 = vmul.f32 %v4022_v11, %v555_v48  ;;  %v566_v63 = vmul.f32 %v4016_v9, %v565_v57  ;;  %s4123_s19 = sld [smem:[#allocation12 + $0x1e]] }
  0x9e   : > { %v557_v62 = vadd.f32 %v556_v53, %v552_v55  ;;  %v638_v0 = vmul.f32 %v4032_v19, %v560_v54  ;;  %v669_v2 = vadd.f32 %v668_v24, %v664_v50  ;;  %v643_v4 = vmul.f32 %v4035_v20, %v565_v57  ;;  %s4127_s26 = sld [smem:[#allocation12 + $0x16]] }
  0x9f   : > { %543 = vrot.lane.b32.xlu0 %v541_v59, %s5804_s11  ;;  %621 = vrot.lane.b32.xlu1 %v619_v60, %s5804_s11  ;;  %v634_v1 = vadd.f32 %v633_v61, %v629_v58  ;;  %v5885_v13 = vstv %s4095_s5  ;;  %v5884_v14 = vstv %s4097_s13  ;;  %s4138_s21 = sld [smem:[#allocation12 + $0x2f]] }
  0xa0   : > { %v562_v3 = vadd.f32 %v561_v56, %v557_v62  ;;  %v5883_v20 = vstv %s4101_s18  ;;  %v5882_v21 = vstv %s4103_s17  ;;  %s4142_s22 = sld [smem:[#allocation12 + $0x27]] }
  0xa1   : > { %v639_v5 = vadd.f32 %v638_v0, %v634_v1  ;;  %v5881_v24 = vstv %s4105_s24  ;;  %s4152_s9 = sld [smem:[#allocation12 + $0x2e]] }
  0xa2   : > { %v567_v6 = vadd.f32 %v566_v63, %v562_v3  ;;  %v5880_v25 = vstv %s4110_s12  ;;  %s4156_s15 = sld [smem:[#allocation12 + $0x26]] }
  0xa3   : > { %671 = vrot.lane.b32.xlu1 %v669_v2, %s5804_s11  ;;  %v644_v7 = vadd.f32 %v643_v4, %v639_v5  ;;  %v5879_v28 = vstv %s4123_s19  ;;  %s4160_s16 = sld [smem:[#allocation12 + $0x3f]] }
  0xa4   : > { %569 = vrot.lane.b32.xlu0 %v567_v6, %s5804_s11  ;;  %5920 = sst [smem:[#allocation29_spill]] %s4127_s26  ;;  %v5878_v29 = vstv %s4127_s26 }
  0xa5   : > { %5921 = sst [smem:[#allocation30_spill]] %s4138_s21  ;;  %v5876_v32 = vstv %s4138_s21 }
  0xa6   : > { %5922 = sst [smem:[#allocation31_spill]] %s4142_s22  ;;  %v5875_v33 = vstv %s4142_s22 }
  0xa7   : > { %5923 = sst [smem:[#allocation32_spill]] %s4152_s9  ;;  %v5874_v36 = vstv %s4152_s9 }
  0xa8   : > { %646 = vrot.lane.b32.xlu0 %v644_v7, %s5804_s11  ;;  %5924 = sst [smem:[#allocation33_spill]] %s4156_s15  ;;  %v5873_v37 = vstv %s4156_s15 }
  0xa9   : > { %5925 = sst [smem:[#allocation34_spill]] %s4160_s16  ;;  %v5872_v40 = vstv %s4160_s16 }
  0xaa   : > { %s4162_s8 = sld [smem:[#allocation12 + $0x37]] }
  0xab   : > { %s3089_s14 = sld [smem:[#allocation12 + $0x3e]] }
  0xac   : > { %s4182_s1 = sld [smem:[#allocation12 + $0x36]] }
  0xad   : > { %s3093_s20 = sld [smem:[#allocation12 + $0x4f]] }
  0xae   : > { %s3091_s23 = sld [smem:[#allocation12 + $0x47]] }
  0xaf   : > { %s3097_s3 = sld [smem:[#allocation12 + $0x4e]] }
  0xb0   : > { %5926 = sst [smem:[#allocation35_spill]] %s4162_s8  ;;  %v5871_v41 = vstv %s4162_s8 }
  0xb1   : > { %v1063_v46 = vstv %s3089_s14  ;;  %s3095_s4 = sld [smem:[#allocation12 + $0x46]] }
  0xb2   : > { %5927 = sst [smem:[#allocation36_spill]] %s4182_s1  ;;  %v5869_v47 = vstv %s4182_s1 }
  0xb3   : > { %s4209_s28 = sld [smem:[#allocation12 + $0xb]]  ;;  %v1087_v50 = vstv %s3093_s20 }
  0xb4   : > { %s3101_s30 = sld [smem:[#allocation12 + $0x5f]]  ;;  %v1075_v51 = vstv %s3091_s23 }
  0xb5   : > { %s3099_s10 = sld [smem:[#allocation12 + $0x57]]  ;;  %v1111_v54 = vstv %s3097_s3 }
  0xb6   : > { %s4217_s14 = sld [smem:[#allocation12 + $0x3]] }
  0xb7   : > { %s4219_s0 = sld [smem:[#allocation12 + $0xa]]  ;;  %v1099_v55 = vstv %s3095_s4 }
  0xb8   : > { %s4223_s2 = sld [smem:[#allocation12 + $0x5e]] }
  0xb9   : > { %5928 = sst [smem:[#allocation37_spill]] %s4209_s28 }
  0xba   : > { %s3103_s6 = sld [smem:[#allocation12 + $0x56]]  ;;  %v1135_v58 = vstv %s3101_s30 }
  0xbb   : > { %s4227_s20 = sld [smem:[#allocation12 + $0x6f]]  ;;  %v1123_v59 = vstv %s3099_s10 }
  0xbc   : > { %s4229_s23 = sld [smem:[#allocation12 + $0x67]] }
  0xbd   : > { %5929 = sst [smem:[#allocation38_spill]] %s4219_s0 }
  0xbe   : > { %s4233_s25 = sld [smem:[#allocation12 + $0x2]]  ;;  %v1159_v62 = vstv %s4223_s2 }
  0xbf   : > { %s4235_s3 = sld [smem:[#allocation12 + $0x1b]] }
  0xc0   : > { %s4239_s4 = sld [smem:[#allocation12 + $0x13]]  ;;  %v1147_v63 = vstv %s3103_s6 }
  0xc1   : > { %s4241_s29 = sld [smem:[#allocation14]]  ;;  %v1185_v2 = vstv %s4227_s20 }
  0xc2   : > { %s3113_s7 = sld [smem:[#allocation12 + $0x6e]]  ;;  %v1173_v3 = vstv %s4229_s23 }
  0xc3   : > { %s3111_s30 = sld [smem:[#allocation12 + $0x66]] }
  0xc4   : > { %s4248_s10 = sld [smem:[#allocation12 + $0x7f]] }
  0xc5   : > { %5930 = sst [smem:[#allocation39_spill]] %s4235_s3 }
  0xc6   : > { %s4256_s27 = sld [smem:[#allocation12 + $0x77]] }
  0xc7   : > { %s4260_s2 = sld [smem:[#allocation12 + $0x7e]] }
  0xc8   : > { %s4262_s6 = sld [smem:[#allocation12 + $0x76]] }
  0xc9   : > { %s4268_s20 = sld [smem:[#allocation12 + $0x8f]] }
  0xca   : > { %s4270_s23 = sld [smem:[#allocation12 + $0x87]] }
  0xcb   : > { %s4272_s1 = sld [smem:[#allocation12 + $0x8e]] }
  0xcc   : > { %s3212_s8 = sld [smem:[#allocation12 + $0x5]] }
  0xcd   : > { %s3216_s16 = sld [smem:[#allocation12 + $0x4]] }
  0xce   : > { %s4276_s15 = sld [smem:[#allocation12 + $0x15]] }
  0xcf   : > { %s4280_s9 = sld [smem:[#allocation14 + $0x1]] }
  0xd0   : > { %s4292_s22 = sld [smem:[#allocation12 + $0x25]] }
  0xd1   : > { %s4304_s21 = sld [smem:[#allocation12 + $0x1a]] }
  0xd2   : > { %s4308_s26 = sld [smem:[#allocation12 + $0x12]] }
  0xd7   : > { %5931 = sst [smem:[#allocation40_spill]] %s4304_s21 }
 0x10c   : > { %v596_v8 = vpop.permute.xlu1 %595 }
 0x10d   : > { %599 = vst.msk [vmem:[#allocation2 + $0x31] sm:$0xff] %vm546_vm5, %v596_v8  ;;  %v1209_v8 = vstv %s3113_s7  ;;  %s4284_s7 = sld [smem:[#allocation12 + $0x14]] }
 0x111   : > { %v544_v9 = vpop.permute.xlu0 %543  ;;  %v622_v10 = vpop.permute.xlu1 %621 }
 0x112   : > { %547 = vst.msk [vmem:[#allocation2 + $0x1] sm:$0xff] %vm546_vm5, %v544_v9  ;;  %624 = vst.msk [vmem:[#allocation2 + $0x9] sm:$0xff] %vm546_vm5, %v622_v10  ;;  %v1197_v9 = vstv %s3111_s30  ;;  %s4288_s30 = sld [smem:[#allocation12 + $0x86]] }
 0x114   : > { %v4250_v0 = vld [vmem:[#allocation2 + $0x31] sm:$0xff] }
 0x115   : > { %v672_v11 = vpop.permute.xlu1 %671  ;;  %v4252_v1 = vld [vmem:[#allocation2 + $0x30] sm:$0xff]  ;;  %v1174_v7 = vmul.f32 %v1173_v3, %v4250_v0 }
 0x116   : > { %v570_v12 = vpop.permute.xlu0 %569  ;;  %674 = vst.msk [vmem:[#allocation2 + $0x39] sm:$0xff] %vm546_vm5, %v672_v11  ;;  %v1186_v6 = vmul.f32 %v1185_v2, %v4252_v1  ;;  %v1210_v10 = vmul.f32 %v1209_v8, %v4252_v1  ;;  %v1198_v11 = vmul.f32 %v1197_v9, %v4250_v0  ;;  %v5870_v9 = vstv %s4217_s14 }
 0x117   : > { %573 = vst.msk [vmem:[#allocation2 + $0x19] sm:$0xff] %vm546_vm5, %v570_v12  ;;  %v1233_v12 = vstv %s4248_s10  ;;  %s4300_s10 = sld [smem:[#allocation12 + $0x24]] }
 0x119   : > { %v4113_v15 = vld [vmem:[#allocation2 + $0x1] sm:$0xff]  ;;  %v4367_v3 = vld [vmem:[#allocation2 + $0xa] sm:$0xff] }
 0x11a   : > { %v4115_v16 = vld [vmem:[#allocation2] sm:$0xff]  ;;  %v882_v18 = vmul.f32 %v5884_v14, %v4113_v15  ;;  %v647_v19 = vpop.permute.xlu0 %646  ;;  %v906_v23 = vmul.f32 %v5882_v21, %v4113_v15  ;;  %v930_v27 = vmul.f32 %v5880_v25, %v4113_v15  ;;  %v954_v31 = vmul.f32 %v5878_v29, %v4113_v15 }
 0x11b   : > { %v894_v17 = vmul.f32 %v5885_v13, %v4115_v16  ;;  %649 = vst.msk [vmem:[#allocation2 + $0x21] sm:$0xff] %vm546_vm5, %v647_v19  ;;  %v918_v22 = vmul.f32 %v5883_v20, %v4115_v16  ;;  %v942_v26 = vmul.f32 %v5881_v24, %v4115_v16  ;;  %v966_v30 = vmul.f32 %v5879_v28, %v4115_v16  ;;  %v4377_v8 = vld [vmem:[#allocation2 + $0x2] sm:$0xff] }
 0x11c   : > { %884 = vrot.lane.b32.xlu0 %v882_v18, %s5804_s11  ;;  %v990_v34 = vmul.f32 %v5876_v32, %v4115_v16  ;;  %v978_v35 = vmul.f32 %v5875_v33, %v4113_v15  ;;  %v1014_v42 = vmul.f32 %v5874_v36, %v4115_v16  ;;  %v1002_v43 = vmul.f32 %v5873_v37, %v4113_v15  ;;  %v4290_v18 = vld [vmem:[#allocation2 + $0x9] sm:$0xff] }
 0x11d   : > { %896 = vrot.lane.b32.xlu1 %v894_v17, %s5804_s11  ;;  %v1221_v17 = vstv %s4256_s27  ;;  %v1234_v19 = vmul.f32 %v1233_v12, %v4252_v1  ;;  %s4296_s27 = sld [smem:[#allocation14 + $0x2]] }
 0x11e   : > { %v4186_v38 = vld [vmem:[#allocation2 + $0x19] sm:$0xff] }
 0x11f   : > { %v4188_v39 = vld [vmem:[#allocation2 + $0x18] sm:$0xff]  ;;  %v1028_v45 = vmul.f32 %v5871_v41, %v4186_v38  ;;  %v1052_v49 = vmul.f32 %v5869_v47, %v4186_v38  ;;  %v1076_v53 = vmul.f32 %v1075_v51, %v4186_v38  ;;  %v1100_v57 = vmul.f32 %v1099_v55, %v4186_v38 }
 0x120   : > { %908 = vrot.lane.b32.xlu0 %v906_v23, %s5804_s11  ;;  %v1040_v44 = vmul.f32 %v5872_v40, %v4188_v39  ;;  %v1064_v48 = vmul.f32 %v1063_v46, %v4188_v39  ;;  %v1088_v52 = vmul.f32 %v1087_v50, %v4188_v39  ;;  %v1112_v56 = vmul.f32 %v1111_v54, %v4188_v39 }
 0x121   : > { %920 = vrot.lane.b32.xlu1 %v918_v22, %s5804_s11  ;;  %v1136_v60 = vmul.f32 %v1135_v58, %v4188_v39  ;;  %v1124_v61 = vmul.f32 %v1123_v59, %v4186_v38  ;;  %v1160_v4 = vmul.f32 %v1159_v62, %v4188_v39  ;;  %v1148_v5 = vmul.f32 %v1147_v63, %v4186_v38 }
 0x122   : > { %v1222_v22 = vmul.f32 %v1221_v17, %v4250_v0  ;;  %v1257_v23 = vstv %s4260_s2  ;;  %v4325_v50 = vstv %s4280_s9  ;;  %s4341_s9 = sld [smem:[#allocation12]]  ;;  %v1921_v55 = vstv %s4292_s22 }
 0x123   : > { %v1922_v59 = vmul.f32 %v1921_v55, %v4290_v18  ;;  %v4355_v62 = vstv %s4296_s27  ;;  %s4357_s2 = sld [smem:[#allocation12 + $0x21]]  ;;  %v1945_v63 = vstv %s4300_s10 }
 0x124   : > { %932 = vrot.lane.b32.xlu0 %v930_v27, %s5804_s11  ;;  %v1825_v27 = vstv %s3212_s8  ;;  %s4317_s8 = sld [smem:[#allocation12 + $0x1]] }
 0x125   : > { %944 = vrot.lane.b32.xlu1 %v942_v26, %s5804_s11  ;;  %v1245_v26 = vstv %s4262_s6  ;;  %s4362_s22 = sld [smem:[#allocation12 + $0x23]]  ;;  %v4365_v2 = vadd.f32 %v1922_v59, %v4355_v62  ;;  %v5826_v59 = vstv %s4235_s3 }
 0x126   : > { %s4375_s6 = sld [smem:[#allocation12 + $0x20]] }
 0x127   : > { %s4415_s27 = sld [smem:[#allocation12 + $0x30]] }
 0x128   : > { %956 = vrot.lane.b32.xlu0 %v954_v31, %s5804_s11  ;;  %v1849_v31 = vstv %s3216_s16  ;;  %5934 = sst [smem:[#allocation43_spill]] %s4341_s9 }
 0x129   : > { %968 = vrot.lane.b32.xlu1 %v966_v30, %s5804_s11  ;;  %v1826_v30 = vmul.f32 %v1825_v27, %v4290_v18  ;;  %s4346_s16 = sld [smem:[#allocation12 + $0x10]]  ;;  %v1356_v27 = vmul.f32 %v5870_v9, %v4377_v8 }
 0x12a   : > { %5936 = sst [smem:[#allocation45_spill]] %s4357_s2 }
 0x12b   : > { %s4425_s10 = sld [smem:[#allocation12 + $0x41]] }
 0x12c   : > { %980 = vrot.lane.b32.xlu0 %v978_v35, %s5804_s11  ;;  %v4311_v35 = vstv %s4241_s29  ;;  %s4327_s29 = sld [smem:[#allocation12 + $0x11]]  ;;  %v5813_v55 = vstv %s4375_s6 }
 0x12d   : > { %992 = vrot.lane.b32.xlu1 %v990_v34, %s5804_s11  ;;  %v1281_v34 = vstv %s4268_s20  ;;  %v4320_v46 = vadd.f32 %v1826_v30, %v4311_v35  ;;  %5938 = sst [smem:[#allocation47_spill]] %s4375_s6  ;;  %v5827_v30 = vstv %s4341_s9 }
 0x12e   : > { %s4382_s20 = sld [smem:[#allocation12 + $0x18]] }
 0x12f   : > { %5935 = sst [smem:[#allocation44_spill]] %s4346_s16 }
 0x130   : > { %1004 = vrot.lane.b32.xlu0 %v1002_v43, %s5804_s11  ;;  %v1873_v43 = vstv %s4276_s15  ;;  %s4335_s15 = sld [smem:[#allocation12 + $0x2b]] }
 0x131   : > { %1016 = vrot.lane.b32.xlu1 %v1014_v42, %s5804_s11  ;;  %v1850_v42 = vmul.f32 %v1849_v31, %v4290_v18  ;;  %5943 = sst [smem:[#allocation52_spill]] %s4415_s27 }
 0x132   : > { %5932 = sst [smem:[#allocation41_spill]] %s4327_s29 }
 0x133   : > { %v4330_v51 = vadd.f32 %v1850_v42, %v4311_v35  ;;  %v5816_v42 = vstv %s4357_s2  ;;  %5944 = sst [smem:[#allocation53_spill]] %s4425_s10 }
 0x134   : > { %1030 = vrot.lane.b32.xlu0 %v1028_v45, %s5804_s11  ;;  %v1246_v45 = vmul.f32 %v1245_v26, %v4250_v0  ;;  %5939 = sst [smem:[#allocation48_spill]] %s4382_s20 }
 0x135   : > { %1042 = vrot.lane.b32.xlu1 %v1040_v44, %s5804_s11  ;;  %v1258_v44 = vmul.f32 %v1257_v23, %v4252_v1  ;;  %v5840_v23 = vstv %s4233_s25  ;;  %s4456_s2 = sld [smem:[#allocation12 + $0x50]] }
 0x136   : > { %5933 = sst [smem:[#allocation42_spill]] %s4335_s15 }
 0x137   : > { %s4467_s9 = sld [smem:[#allocation12 + $0x22]] }
 0x138   : > { %1054 = vrot.lane.b32.xlu0 %v1052_v49, %s5804_s11  ;;  %v1269_v49 = vstv %s4270_s23  ;;  %s4389_s23 = sld [smem:[#allocation12 + $0x29]] }
 0x139   : > { %1066 = vrot.lane.b32.xlu1 %v1064_v48, %s5804_s11  ;;  %v1874_v48 = vmul.f32 %v1873_v43, %v4290_v18  ;;  %s4487_s6 = sld [smem:[#allocation12 + $0x70]] }
 0x13a   : > { %s4653_s3 = sld [smem:[#allocation12 + $0x1d]] }
 0x13b   : > { %5947 = sst [smem:[#allocation56_spill]] %s4456_s2 }
 0x13c   : > { %1078 = vrot.lane.b32.xlu0 %v1076_v53, %s5804_s11  ;;  %v4338_v53 = vadd.f32 %v1874_v48, %v4325_v50 }
 0x13d   : > { %1090 = vrot.lane.b32.xlu1 %v1088_v52, %s5804_s11  ;;  %v1897_v52 = vstv %s4284_s7  ;;  %s4399_s7 = sld [smem:[#allocation12 + $0x28]] }
 0x13e   : > { %v1898_v54 = vmul.f32 %v1897_v52, %v4290_v18  ;;  %5940 = sst [smem:[#allocation49_spill]] %s4389_s23 }
 0x13f   : > { %5950 = sst [smem:[#allocation58_spill]] %s4467_s9 }
 0x140   : > { %1102 = vrot.lane.b32.xlu0 %v1100_v57, %s5804_s11  ;;  %v1270_v57 = vmul.f32 %v1269_v49, %v4250_v0  ;;  %v4349_v58 = vadd.f32 %v1898_v54, %v4325_v50  ;;  %v1380_v54 = vmul.f32 %v5840_v23, %v4377_v8  ;;  %5951 = sst [smem:[#allocation59_spill]] %s4487_s6  ;;  %v937_v32 = vstv %s4653_s3 }
 0x141   : > { %1114 = vrot.lane.b32.xlu1 %v1112_v56, %s5804_s11  ;;  %v1282_v56 = vmul.f32 %v1281_v34, %v4252_v1  ;;  %v5819_v34 = vstv %s4346_s16  ;;  %s5948_s16 = smov 1   ;;  %s4718_s3 = sld [smem:[#allocation12 + $0x72]] }
 0x142   : > { %v2366_v48 = vmul.f32 %v4367_v3, %v5819_v34 }
 0x143   : > { %5941 = sst [smem:[#allocation50_spill]] %s4399_s7 }
 0x144   : > { %1126 = vrot.lane.b32.xlu0 %v1124_v61, %s5804_s11  ;;  %v1293_v61 = vstv %s4288_s30  ;;  %s4408_s30 = sld [smem:[#allocation12 + $0x31]] }
 0x145   : > { %1138 = vrot.lane.b32.xlu1 %v1136_v60, %s5804_s11  ;;  %v1305_v60 = vstv %s4272_s1  ;;  %s4369_s1 = sld [smem:[#allocation12 + $0x19]] }
 0x148   : > { %1150 = vrot.lane.b32.xlu0 %v1148_v5, %s5804_s11  ;;  %v1306_v5 = vmul.f32 %v1305_v60, %v4252_v1  ;;  %v5842_v60 = vstv %s4239_s4 }
 0x149   : > { %1162 = vrot.lane.b32.xlu1 %v1160_v4, %s5804_s11  ;;  %v1946_v4 = vmul.f32 %v1945_v63, %v4290_v18  ;;  %v2414_v63 = vmul.f32 %v4367_v3, %v5813_v55  ;;  %v5822_v55 = vstv %s4399_s7  ;;  %s4541_s7 = sld [smem:[#allocation12 + $0x33]] }
 0x14a   : > { %5942 = sst [smem:[#allocation51_spill]] %s4408_s30 }
 0x14b   : > { %5937 = sst [smem:[#allocation46_spill]] %s4369_s1  ;;  %v4385_v12 = vadd.f32 %v1946_v4, %v4355_v62  ;;  %v5838_v4 = vstv %s4308_s26 }
 0x14c   : > { %1176 = vrot.lane.b32.xlu0 %v1174_v7, %s5804_s11  ;;  %v5834_v7 = vstv %s4209_s28  ;;  %s4687_s28 = sld [smem:[#allocation12 + $0x34]] }
 0x14d   : > { %1188 = vrot.lane.b32.xlu1 %v1186_v6, %s5804_s11  ;;  %v1294_v6 = vmul.f32 %v1293_v61, %v4250_v0  ;;  %v1368_v26 = vmul.f32 %v5834_v7, %v4113_v15  ;;  %v5820_v61 = vstv %s4304_s21  ;;  %v5843_v7 = vstv %s4487_s6  ;;  %s4600_s6 = sld [smem:[#allocation12 + $0x43]] }
 0x14e   : > { %s4637_s21 = sld [smem:[#allocation12 + $0xc]] }
 0x14f   : > { %5954 = sst [smem:[#allocation62_spill]] %s4541_s7 }
 0x150   : > { %1200 = vrot.lane.b32.xlu0 %v1198_v11, %s5804_s11  ;;  %v5821_v11 = vstv %s4327_s29  ;;  %s4436_s29 = sld [smem:[#allocation12 + $0x40]] }
 0x151   : > { %1212 = vrot.lane.b32.xlu1 %v1210_v10, %s5804_s11  ;;  %v5836_v10 = vstv %s4317_s8 }
 0x152   : > { %v2294_v17 = vmul.f32 %v4367_v3, %v5836_v10 }
 0x153   : > { %5962 = sst [smem:[#allocation70_spill]] %s4600_s6 }
 0x154   : > { %1224 = vrot.lane.b32.xlu0 %v1222_v22, %s5804_s11  ;;  %v5823_v22 = vstv %s4219_s0  ;;  %v4411_v31 = vadd.f32 %v2294_v17, %v4311_v35  ;;  %s4464_s0 = sld [smem:[#allocation12 + $0x2a]]  ;;  %v5812_v17 = vstv %s4389_s23  ;;  %v913_v47 = vstv %s4637_s21 }
 0x155   : > { %1236 = vrot.lane.b32.xlu1 %v1234_v19, %s5804_s11  ;;  %v2342_v19 = vmul.f32 %v4367_v3, %v5821_v11  ;;  %v1392_v49 = vmul.f32 %v5823_v22, %v4113_v15  ;;  %s4512_s23 = sld [smem:[#allocation12 + $0x80]]  ;;  %v5839_v22 = vstv %s4362_s22 }
 0x156   : > { %5945 = sst [smem:[#allocation54_spill]] %s4436_s29  ;;  %v5831_v34 = vstv %s4436_s29 }
 0x157   : > { %v4418_v43 = vadd.f32 %v2342_v19, %v4325_v50  ;;  %v4472_v19 = vadd.f32 %v2414_v63, %v4355_v62  ;;  %v1440_v63 = vmul.f32 %v5820_v61, %v4113_v15  ;;  %s3169_s29 = sld [smem:[#allocation12 + $0x4b]] }
 0x158   : > { %1248 = vrot.lane.b32.xlu0 %v1246_v45, %s5804_s11  ;;  %v2390_v45 = vmul.f32 %v4367_v3, %v5816_v42  ;;  %v5829_v42 = vstv %s4415_s27  ;;  %s4620_s27 = sld [smem:[#allocation12 + $0x5]] }
 0x159   : > { %1260 = vrot.lane.b32.xlu1 %v1258_v44, %s5804_s11  ;;  %v2318_v44 = vmul.f32 %v4367_v3, %v5827_v30  ;;  %s4707_s21 = sld [smem:[#allocation12 + $0x7a]] }
 0x15a   : > { %5949 = sst [smem:[#allocation57_spill]] %s4464_s0 }
 0x15b   : > { %v4439_v52 = vadd.f32 %v2318_v44, %v4311_v35  ;;  %v1416_v44 = vmul.f32 %v5826_v59, %v4113_v15  ;;  %5953 = sst [smem:[#allocation61_spill]] %s4512_s23  ;;  %v5847_v10 = vstv %s4512_s23 }
 0x15c   : > { %1272 = vrot.lane.b32.xlu0 %v1270_v57, %s5804_s11  ;;  %v4451_v57 = vadd.f32 %v2366_v48, %v4325_v50  ;;  %v4492_v48 = vmul.f32 %v4290_v18, %v5812_v17  ;;  %v1428_v17 = vmul.f32 %v5838_v4, %v4377_v8  ;;  %s4604_s23 = sld [smem:[#allocation12 + $0x4a]] }
 0x15d   : > { %1284 = vrot.lane.b32.xlu1 %v1282_v56, %s5804_s11  ;;  %v4448_v56 = vadd.f32 %v2390_v45, %v4355_v62  ;;  %v1404_v45 = vmul.f32 %v5842_v60, %v4377_v8 }
 0x160   : > { %1296 = vrot.lane.b32.xlu0 %v1294_v6, %s5804_s11  ;;  %v5814_v6 = vstv %s4382_s20  ;;  %s4526_s20 = sld [smem:[#allocation12 + $0x3b]] }
 0x161   : > { %1308 = vrot.lane.b32.xlu1 %v1306_v5, %s5804_s11  ;;  %v5817_v5 = vstv %s4369_s1  ;;  %s4500_s1 = sld [smem:[#allocation12 + $0x81]] }
 0x164   : > { %1358 = vrot.lane.b32.xlu0 %v1356_v27, %s5804_s11  ;;  %v4479_v27 = vld [vmem:[#allocation2 + $0x22] sm:$0xff] }
 0x165   : > { %1370 = vrot.lane.b32.xlu1 %v1368_v26, %s5804_s11  ;;  %s4445_s11 = sld [smem:[#allocation12 + $0x51]]  ;;  %v4477_v26 = vmul.f32 %v4290_v18, %v5817_v5  ;;  %v5828_v5 = vstv %s4425_s10  ;;  %v4552_v30 = vmul.f32 %v4479_v27, %v5831_v34  ;;  %v1452_v34 = vmul.f32 %v5839_v22, %v4377_v8 }
 0x166   : > { %v4533_v11 = vmul.f32 %v4479_v27, %v5828_v5  ;;  %v1513_v60 = vstv %s4526_s20  ;;  %s4612_s10 = sld [smem:[#allocation12 + $0x5b]] }
 0x167   : > { %5952 = sst [smem:[#allocation60_spill]] %s4500_s1  ;;  %5956 = vst [vmem:[#allocation64_spill] sm:$0xff] %v4552_v30 }
 0x168   : > { %1382 = vrot.lane.b32.xlu0 %v1380_v54, %s5948_s16  ;;  %v5837_v54 = vstv %s4335_s15  ;;  %s4616_s20 = sld [smem:[#allocation12 + $0x53]] }
 0x169   : > { %1394 = vrot.lane.b32.xlu1 %v1392_v49, %s5948_s16  ;;  %v4497_v49 = vmul.f32 %v4290_v18, %v5814_v6  ;;  %v5825_v6 = vstv %s4408_s30  ;;  %s4635_s30 = sld [smem:[#allocation12 + $0x4]] }
 0x16a   : > { %s4651_s15 = sld [smem:[#allocation12 + $0x15]] }
 0x16b   : > { %5946 = sst [smem:[#allocation55_spill]] %s4445_s11  ;;  %v5830_v61 = vstv %s4445_s11 }
 0x16c   : > { %1406 = vrot.lane.b32.xlu0 %v1404_v45, %s5948_s16  ;;  %v4524_v45 = vmul.f32 %v4479_v27, %v5825_v6  ;;  %v5835_v6 = vstv %s4456_s2  ;;  %v4547_v59 = vmul.f32 %v4479_v27, %v5830_v61  ;;  %v1464_v61 = vmul.f32 %v5837_v54, %v4113_v15  ;;  %s4567_s11 = sld [smem:[#allocation12 + $0x3a]] }
 0x16d   : > { %1418 = vrot.lane.b32.xlu1 %v1416_v44, %s5948_s16  ;;  %v4519_v44 = vmul.f32 %v4290_v18, %v5822_v55  ;;  %v4538_v55 = vmul.f32 %v4479_v27, %v5829_v42  ;;  %v4559_v5 = vmul.f32 %v4479_v27, %v5835_v6  ;;  %v2582_v42 = vld [vmem:[#allocation2 + $0x3a] sm:$0xff]  ;;  %s4571_s2 = sld [smem:[#allocation12 + $0x32]]  ;;  %v5849_v6 = vstv %s4500_s1 }
 0x16e   : > { %5955 = vst [vmem:[#allocation63_spill] sm:$0xff] %v4547_v59  ;;  %v4580_v54 = vmul.f32 %v2582_v42, %v5843_v7  ;;  %v4584_v4 = vmul.f32 %v2582_v42, %v5847_v10  ;;  %v4588_v22 = vmul.f32 %v2582_v42, %v5849_v6  ;;  %v5853_v7 = vstv %s4541_s7  ;;  %s4606_s1 = sld [smem:[#allocation12 + $0x42]] }
 0x16f   : > { %5957 = vst [vmem:[#allocation65_spill] sm:$0xff] %v4559_v5  ;;  %v1514_v42 = vmul.f32 %v1513_v60, %v4186_v38  ;;  %s4631_s7 = sld [smem:[#allocation12 + $0x52]] }
 0x170   : > { %1430 = vrot.lane.b32.xlu0 %v1428_v17, %s5948_s16  ;;  %v5866_v17 = vstv %s4467_s9  ;;  %5959 = vst [vmem:[#allocation67_spill] sm:$0xff] %v4580_v54  ;;  %5960 = vst [vmem:[#allocation68_spill] sm:$0xff] %v4584_v4  ;;  %s4668_s9 = sld [smem:[#allocation12 + $0x35]]  ;;  %v925_v37 = vstv %s4651_s15 }
 0x171   : > { %1442 = vrot.lane.b32.xlu1 %v1440_v63, %s5948_s16  ;;  %v5850_v63 = vstv %s4464_s0  ;;  %5961 = vst [vmem:[#allocation69_spill] sm:$0xff] %v4588_v22  ;;  %s4622_s0 = sld [smem:[#allocation12 + $0xd]] }
 0x172   : > { %v1488_v23 = vmul.f32 %v5850_v63, %v4113_v15  ;;  %v1537_v6 = vstv %s4567_s11  ;;  %s4628_s11 = sld [smem:[#allocation12 + $0x5a]] }
 0x173   : > { %5958 = sst [smem:[#allocation66_spill]] %s4571_s2  ;;  %v5857_v63 = vstv %s4571_s2 }
 0x174   : > { %1454 = vrot.lane.b32.xlu0 %v1452_v34, %s5948_s16  ;;  %v1476_v34 = vmul.f32 %v5866_v17, %v4377_v8  ;;  %5963 = sst [smem:[#allocation71_spill]] %s4606_s1  ;;  %v901_v17 = vstv %s4635_s30 }
 0x175   : > { %1466 = vrot.lane.b32.xlu1 %v1464_v61, %s5948_s16  ;;  %v4596_v61 = vld [vmem:[#allocation2 + $0x1a] sm:$0xff]  ;;  %s4647_s2 = sld [smem:[#allocation12 + $0x63]] }
 0x176   : > { %v1502_v10 = vmul.f32 %v5853_v7, %v4596_v61  ;;  %v1526_v60 = vmul.f32 %v5857_v63, %v4596_v61  ;;  %v5861_v7 = vstv %s4600_s6  ;;  %v5865_v63 = vstv %s4606_s1  ;;  %s4664_s6 = sld [smem:[#allocation12 + $0x62]] }
 0x177   : > { %s4671_s1 = sld [smem:[#allocation12 + $0x14]] }
 0x178   : > { %1478 = vrot.lane.b32.xlu0 %v1476_v34, %s5948_s16  ;;  %v1561_v34 = vstv %s3169_s29  ;;  %s4643_s29 = sld [smem:[#allocation12 + $0x6b]] }
 0x179   : > { %1490 = vrot.lane.b32.xlu1 %v1488_v23, %s5948_s16  ;;  %v1538_v23 = vmul.f32 %v1537_v6, %v4186_v38  ;;  %v1550_v6 = vmul.f32 %v5861_v7, %v4596_v61  ;;  %v1609_v7 = vstv %s4612_s10  ;;  %s4682_s10 = sld [smem:[#allocation12 + $0x7b]] }
 0x17a   : > { %s4692_s30 = sld [smem:[#allocation12 + $0x73]] }
 0x17b   : > { %v1647_v33 = vstv %s4647_s2  ;;  %s4713_s15 = sld [smem:[#allocation12 + $0x45]] }
 0x17c   : > { %1504 = vrot.lane.b32.xlu0 %v1502_v10, %s5948_s16  ;;  %v1562_v10 = vmul.f32 %v1561_v34, %v4186_v38  ;;  %v877_v34 = vstv %s4620_s27  ;;  %s4678_s27 = sld [smem:[#allocation12 + $0x1c]] }
 0x17d   : > { %1516 = vrot.lane.b32.xlu1 %v1514_v42, %s5948_s16  ;;  %v1585_v42 = vstv %s4604_s23  ;;  %s4660_s23 = sld [smem:[#allocation12 + $0x6a]]  ;;  %v949_v24 = vstv %s4671_s1 }
 0x17e   : > { %v1659_v40 = vstv %s4643_s29  ;;  %s4727_s2 = sld [smem:[#allocation12 + $0x2d]] }
 0x17f   : > { %s4734_s1 = sld [smem:[#allocation12 + $0x44]] }
 0x180   : > { %1528 = vrot.lane.b32.xlu0 %v1526_v60, %s5948_s16  ;;  %v1574_v60 = vmul.f32 %v5865_v63, %v4596_v61  ;;  %s4756_s29 = sld [smem:[#allocation12 + $0x55]] }
 0x181   : > { %1540 = vrot.lane.b32.xlu1 %v1538_v23, %s5948_s16  ;;  %v1586_v23 = vmul.f32 %v1585_v42, %v4186_v38  ;;  %v1610_v42 = vmul.f32 %v1609_v7, %v4186_v38 }
 0x182   : > { %v961_v21 = vstv %s4678_s27  ;;  %s4768_s27 = sld [smem:[#allocation12 + $0x82]] }
 0x184   : > { %1552 = vrot.lane.b32.xlu0 %v1550_v6, %s5948_s16  ;;  %v878_v6 = vmul.f32 %v877_v34, %v4113_v15  ;;  %v889_v34 = vstv %s4622_s0  ;;  %s4700_s0 = sld [smem:[#allocation12 + $0x25]] }
 0x185   : > { %1564 = vrot.lane.b32.xlu1 %v1562_v10, %s5948_s16  ;;  %v5868_v10 = vstv %s4616_s20 }
 0x186   : > { %v1598_v63 = vmul.f32 %v5868_v10, %v4596_v61  ;;  %v879_v7 = vadd.f32 %v878_v6, %v4311_v35  ;;  %v902_v10 = vmul.f32 %v901_v17, %v4113_v15  ;;  %v4702_v6 = vld [vmem:[#allocation2 + $0x32] sm:$0xff]  ;;  %v890_v17 = vmul.f32 %v889_v34, %v4115_v16 }
 0x187   : > { %v926_v34 = vmul.f32 %v925_v37, %v4113_v15 }
 0x188   : > { %1576 = vrot.lane.b32.xlu0 %v1574_v60, %s5948_s16  ;;  %v5877_v60 = vstv %s4631_s7  ;;  %v903_v28 = vadd.f32 %v902_v10, %v4311_v35 }
 0x189   : > { %1588 = vrot.lane.b32.xlu1 %v1586_v23, %s5948_s16  ;;  %v1633_v23 = vstv %s4628_s11  ;;  %v927_v14 = vadd.f32 %v926_v34, %v4325_v50  ;;  %v938_v34 = vmul.f32 %v937_v32, %v4115_v16  ;;  %s4749_s11 = sld [smem:[#allocation12 + $0x2c]] }
 0x18c   : > { %1600 = vrot.lane.b32.xlu0 %v1598_v63, %s5948_s16  ;;  %v1622_v63 = vmul.f32 %v5877_v60, %v4596_v61  ;;  %v1023_v60 = vstv %s4668_s9  ;;  %s4724_s9 = sld [smem:[#allocation12 + $0x24]] }
 0x18d   : > { %1612 = vrot.lane.b32.xlu1 %v1610_v42, %s5948_s16  ;;  %v1634_v42 = vmul.f32 %v1633_v23, %v4186_v38  ;;  %v1683_v23 = vstv %s4660_s23  ;;  %v1024_v37 = vmul.f32 %v1023_v60, %v4186_v38  ;;  %s4760_s23 = sld [smem:[#allocation12 + $0x8a]] }
 0x18e   : > { %v885_v41 = vpop.permute.xlu0 %884 }
 0x18f   : > { %v897_v9 = vpop.permute.xlu1 %896  ;;  %v887_v36 = vadd.f32 %v885_v41, %v879_v7  ;;  %v1671_v41 = vstv %s4664_s6  ;;  %s4738_s6 = sld [smem:[#allocation12 + $0x8b]] }
 0x190   : > { %1624 = vrot.lane.b32.xlu0 %v1622_v63, %s5948_s16  ;;  %v1648_v63 = vmul.f32 %v1647_v33, %v4702_v6  ;;  %v1047_v33 = vstv %s4687_s28  ;;  %v1672_v60 = vmul.f32 %v1671_v41, %v4702_v6  ;;  %s4746_s28 = sld [smem:[#allocation12 + $0x83]]  ;;  %v1071_v41 = vstv %s4713_s15 }
 0x191   : > { %1636 = vrot.lane.b32.xlu1 %v1634_v42, %s5948_s16  ;;  %v891_v29 = vadd.f32 %v890_v17, %v887_v36  ;;  %v1660_v42 = vmul.f32 %v1659_v40, %v4250_v0  ;;  %v914_v36 = vmul.f32 %v913_v47, %v4115_v16  ;;  %v1707_v40 = vstv %s4682_s10  ;;  %s4771_s10 = sld [smem:[#allocation12 + $0x3d]] }
 0x192   : > { %v909_v25 = vpop.permute.xlu0 %908  ;;  %s4806_s15 = sld [smem:[#allocation12 + $0x4d]] }
 0x193   : > { %v921_v7 = vpop.permute.xlu1 %920  ;;  %v911_v10 = vadd.f32 %v909_v25, %v903_v28  ;;  %v899_v17 = vadd.f32 %v897_v9, %v891_v29  ;;  %v950_v25 = vmul.f32 %v949_v24, %v4113_v15  ;;  %v1684_v9 = vmul.f32 %v1683_v23, %v4250_v0 }
 0x194   : > { %1650 = vrot.lane.b32.xlu0 %v1648_v63, %s5948_s16  ;;  %v973_v63 = vstv %s4700_s0  ;;  %v1731_v23 = vstv %s4707_s21  ;;  %s4789_s0 = sld [smem:[#allocation12 + $0x3c]] }
 0x195   : > { %1662 = vrot.lane.b32.xlu1 %v1660_v42, %s5948_s16  ;;  %v915_v20 = vadd.f32 %v914_v36, %v911_v10  ;;  %v4740_v28 = vadd.f32 %v1024_v37, %v899_v17  ;;  %v1695_v42 = vstv %s4692_s30  ;;  %v1048_v10 = vmul.f32 %v1047_v33, %v4186_v38  ;;  %s4778_s30 = sld [smem:[#allocation12 + $0x54]] }
 0x196   : > { %v933_v47 = vpop.permute.xlu0 %932  ;;  %v951_v17 = vadd.f32 %v950_v25, %v4325_v50  ;;  %v1708_v33 = vmul.f32 %v1707_v40, %v4250_v0  ;;  %v962_v25 = vmul.f32 %v961_v21, %v4115_v16  ;;  %v985_v40 = vstv %s4727_s2  ;;  %s4796_s21 = sld [smem:[#allocation12 + $0x65]] }
 0x197   : > { %v945_v29 = vpop.permute.xlu1 %944  ;;  %v935_v36 = vadd.f32 %v933_v47, %v927_v14  ;;  %v923_v24 = vadd.f32 %v921_v7, %v915_v20  ;;  %v974_v14 = vmul.f32 %v973_v63, %v4113_v15  ;;  %v1696_v47 = vmul.f32 %v1695_v42, %v4702_v6  ;;  %s4830_s2 = sld [smem:[#allocation12 + $0x75]] }
 0x198   : > { %1674 = vrot.lane.b32.xlu0 %v1672_v60, %s5948_s16  ;;  %v997_v60 = vstv %s4724_s9  ;;  %v1095_v42 = vstv %s4734_s1  ;;  %v986_v13 = vmul.f32 %v985_v40, %v4115_v16  ;;  %s4823_s9 = sld [smem:[#allocation12 + $0x4c]] }
 0x199   : > { %1686 = vrot.lane.b32.xlu1 %v1684_v9, %s5948_s16  ;;  %v939_v37 = vadd.f32 %v938_v34, %v935_v36  ;;  %v4762_v20 = vadd.f32 %v1048_v10, %v923_v24  ;;  %v1719_v9 = vstv %s4718_s3  ;;  %v1072_v36 = vmul.f32 %v1071_v41, %v4186_v38  ;;  %s4813_s3 = sld [smem:[#allocation12 + $0x64]] }
 0x19a   : > { %v957_v7 = vpop.permute.xlu0 %956  ;;  %v975_v10 = vadd.f32 %v974_v14, %v4355_v62  ;;  %v998_v21 = vmul.f32 %v997_v60, %v4113_v15  ;;  %v1732_v41 = vmul.f32 %v1731_v23, %v4250_v0  ;;  %v1096_v15 = vmul.f32 %v1095_v42, %v4186_v38  ;;  %s4842_s1 = sld [smem:[#allocation12 + $0x5d]] }
 0x19b   : > { %v969_v32 = vpop.permute.xlu1 %968  ;;  %v959_v34 = vadd.f32 %v957_v7, %v951_v17  ;;  %v947_v63 = vadd.f32 %v945_v29, %v939_v37  ;;  %v1720_v7 = vmul.f32 %v1719_v9, %v4702_v6  ;;  %v1009_v60 = vstv %s4749_s11  ;;  %s5977_s11 = sld [smem:[#allocation32_spill]] }
 0x19c   : > { %1698 = vrot.lane.b32.xlu0 %v1696_v47, %s5948_s16  ;;  %v1743_v47 = vstv %s4746_s28  ;;  %v1119_v23 = vstv %s4756_s29  ;;  %v1779_v42 = vstv %s4760_s23  ;;  %s5974_s28 = sld [smem:[#allocation31_spill]] }
 0x19d   : > { %1710 = vrot.lane.b32.xlu1 %v1708_v33, %s5948_s16  ;;  %v963_v24 = vadd.f32 %v962_v25, %v959_v34  ;;  %v4782_v17 = vadd.f32 %v1072_v36, %v947_v63  ;;  %v1755_v33 = vstv %s4738_s6  ;;  %v999_v25 = vadd.f32 %v998_v21, %v4355_v62  ;;  %s4880_s6 = sld [smem:[#allocation12 + $0x6d]] }
 0x19e   : > { %v981_v37 = vpop.permute.xlu0 %980  ;;  %v1744_v40 = vmul.f32 %v1743_v47, %v4702_v6  ;;  %v1035_v21 = vstv %s4771_s10  ;;  %s5978_s29 = sld [smem:[#allocation33_spill]] }
 0x19f   : > { %v993_v29 = vpop.permute.xlu1 %992  ;;  %v983_v22 = vadd.f32 %v981_v37, %v975_v10  ;;  %v971_v14 = vadd.f32 %v969_v32, %v963_v24  ;;  %v1756_v32 = vmul.f32 %v1755_v33, %v4250_v0  ;;  %v1767_v24 = vstv %s4768_s27  ;;  %s4917_s23 = sld [smem:[#allocation12 + $0x7d]] }
 0x1a0   : > { %1722 = vrot.lane.b32.xlu0 %v1720_v7, %s5948_s16  ;;  %v1010_v10 = vmul.f32 %v1009_v60, %v4115_v16  ;;  %v1036_v60 = vmul.f32 %v1035_v21, %v4188_v39  ;;  %s5981_s27 = sld [smem:[#allocation34_spill]] }
 0x1a1   : > { %1734 = vrot.lane.b32.xlu1 %v1732_v41, %s5948_s16  ;;  %v987_v9 = vadd.f32 %v986_v13, %v983_v22  ;;  %v4799_v34 = vadd.f32 %v1096_v15, %v971_v14  ;;  %v1120_v22 = vmul.f32 %v1119_v23, %v4186_v38  ;;  %v1143_v41 = vstv %s4778_s30  ;;  %v4819_v15 = vld [vmem:[#allocation2 + $0x8] sm:$0xff]  ;;  %s5982_s10 = sld [smem:[#allocation35_spill]] }
 0x1a2   : > { %v1005_v36 = vpop.permute.xlu0 %1004  ;;  %v1780_v14 = vmul.f32 %v1779_v42, %v4250_v0  ;;  %s3120_s30 = sld [smem:[#allocation12 + $0x7c]] }
 0x1a3   : > { %v1017_v63 = vpop.permute.xlu1 %1016  ;;  %v1007_v37 = vadd.f32 %v1005_v36, %v999_v25  ;;  %v995_v13 = vadd.f32 %v993_v29, %v987_v9  ;;  %v1768_v29 = vmul.f32 %v1767_v24, %v4702_v6  ;;  %v1144_v25 = vmul.f32 %v1143_v41, %v4186_v38 }
 0x1a4   : > { %1746 = vrot.lane.b32.xlu0 %v1744_v40, %s5948_s16  ;;  %v1059_v36 = vstv %s4789_s0  ;;  %s5983_s0 = sld [smem:[#allocation36_spill]] }
 0x1a5   : > { %1758 = vrot.lane.b32.xlu1 %v1756_v32, %s5948_s16  ;;  %v1011_v7 = vadd.f32 %v1010_v10, %v1007_v37  ;;  %v4815_v33 = vadd.f32 %v1120_v22, %v995_v13  ;;  %v1169_v32 = vstv %s4796_s21  ;;  %v5964_v10 = vstv %s4095_s5  ;;  %s4849_s5 = sld [smem:[#allocation12 + $0x74]] }
 0x1a6   : > { %v1031_v47 = vpop.permute.xlu0 %1030  ;;  %v5965_v37 = vstv %s4097_s13  ;;  %v1060_v13 = vmul.f32 %v1059_v36, %v4188_v39  ;;  %v1170_v21 = vmul.f32 %v1169_v32, %v4250_v0  ;;  %s4861_s13 = sld [smem:[#allocation12 + $0x5c]] }
 0x1a7   : > { %v1043_v16 = vpop.permute.xlu1 %1042  ;;  %v1033_v23 = vadd.f32 %v1031_v47, %v4740_v28  ;;  %v1019_v9 = vadd.f32 %v1017_v63, %v1011_v7  ;;  %v1842_v63 = vmul.f32 %v4819_v15, %v5964_v10  ;;  %v1830_v38 = vmul.f32 %v4290_v18, %v5965_v37  ;;  %s3124_s21 = sld [smem:[#allocation12 + $0x8d]] }
 0x1a8   : > { %1770 = vrot.lane.b32.xlu0 %v1768_v29, %s5948_s16  ;;  %v1083_v7 = vstv %s4806_s15  ;;  %v1193_v47 = vstv %s4813_s3  ;;  %v1107_v10 = vstv %s4823_s9  ;;  %s4967_s15 = sld [smem:[#allocation12 + $0x8c]] }
 0x1a9   : > { %1782 = vrot.lane.b32.xlu1 %v1780_v14, %s5948_s16  ;;  %v1037_v40 = vadd.f32 %v1036_v60, %v1033_v23  ;;  %v4832_v42 = vadd.f32 %v1144_v25, %v1019_v9  ;;  %v5966_v23 = vstv %s4101_s18  ;;  %v5967_v25 = vstv %s4103_s17  ;;  %s4868_s18 = sld [smem:[#allocation12 + $0x85]] }
 0x1aa   : > { %v1055_v28 = vpop.permute.xlu0 %1054  ;;  %v1866_v9 = vmul.f32 %v4819_v15, %v5966_v23  ;;  %v1084_v36 = vmul.f32 %v1083_v7, %v4188_v39  ;;  %s5970_s17 = sld [smem:[#allocation29_spill]]  ;;  %v1108_v7 = vmul.f32 %v1107_v10, %v4188_v39  ;;  %v1131_v23 = vstv %s4842_s1 }
 0x1ab   : > { %v1067_v24 = vpop.permute.xlu1 %1066  ;;  %v1057_v22 = vadd.f32 %v1055_v28, %v4762_v20  ;;  %v1045_v41 = vadd.f32 %v1043_v16, %v1037_v40  ;;  %v1854_v16 = vmul.f32 %v4290_v18, %v5967_v25  ;;  %v1194_v28 = vmul.f32 %v1193_v47, %v4250_v0  ;;  %s5990_s3 = sld [smem:[#allocation37_spill]] }
 0x1ac   : > { %1832 = vrot.lane.b32.xlu0 %v1830_v38, %s5948_s16  ;;  %v1132_v10 = vmul.f32 %v1131_v23, %v4188_v39  ;;  %s4996_s9 = sld [smem:[#allocation12 + $0x8]] }
 0x1ad   : > { %1844 = vrot.lane.b32.xlu1 %v1842_v63, %s5948_s16  ;;  %v1061_v14 = vadd.f32 %v1060_v13, %v1057_v22  ;;  %v4851_v29 = vadd.f32 %v1170_v21, %v1045_v41  ;;  %v1217_v63 = vstv %s4830_s2  ;;  %v5968_v22 = vstv %s4105_s24  ;;  %s4887_s24 = sld [smem:[#allocation12 + $0x84]] }
 0x1ae   : > { %v1079_v20 = vpop.permute.xlu0 %1078  ;;  %v5969_v21 = vstv %s4110_s12  ;;  %s5972_s12 = sld [smem:[#allocation30_spill]] }
 0x1af   : > { %v1091_v60 = vpop.permute.xlu1 %1090  ;;  %v1081_v32 = vadd.f32 %v1079_v20, %v4782_v17  ;;  %v1069_v40 = vadd.f32 %v1067_v24, %v1061_v14  ;;  %v1890_v24 = vmul.f32 %v4819_v15, %v5968_v22  ;;  %v1878_v41 = vmul.f32 %v4290_v18, %v5969_v21  ;;  %s5011_s2 = sld [smem:[#allocation12 + $0x47]] }
 0x1b0   : > { %1856 = vrot.lane.b32.xlu0 %v1854_v16, %s5948_s16  ;;  %v1218_v20 = vmul.f32 %v1217_v63, %v4250_v0  ;;  %v1155_v22 = vstv %s4861_s13  ;;  %s5022_s1 = sld [smem:[#allocation12 + $0x57]] }
 0x1b1   : > { %1868 = vrot.lane.b32.xlu1 %v1866_v9, %s5948_s16  ;;  %v1085_v37 = vadd.f32 %v1084_v36, %v1081_v32  ;;  %v4870_v38 = vadd.f32 %v1194_v28, %v1069_v40  ;;  %v1241_v9 = vstv %s4849_s5  ;;  %v5971_v32 = vstv %s4123_s19  ;;  %s4903_s19 = sld [smem:[#allocation12 + $0x6c]] }
 0x1b2   : > { %v1103_v17 = vpop.permute.xlu0 %1102  ;;  %v5973_v40 = vstv %s5970_s17  ;;  %s6002_s5 = sld [smem:[#allocation42_spill]] }
 0x1b3   : > { %v1115_v13 = vpop.permute.xlu1 %1114  ;;  %v1105_v47 = vadd.f32 %v1103_v17, %v4799_v34  ;;  %v1093_v14 = vadd.f32 %v1091_v60, %v1085_v37  ;;  %v1914_v60 = vmul.f32 %v4819_v15, %v5971_v32  ;;  %v1902_v28 = vmul.f32 %v4290_v18, %v5973_v40  ;;  %s6004_s13 = sld [smem:[#allocation40_spill]] }
 0x1b4   : > { %1880 = vrot.lane.b32.xlu0 %v1878_v41, %s5948_s16  ;;  %v1242_v17 = vmul.f32 %v1241_v9, %v4250_v0  ;;  %v5975_v39 = vstv %s5972_s12  ;;  %v1181_v32 = vstv %s4880_s6  ;;  %s6006_s17 = sld [smem:[#allocation51_spill]] }
 0x1b5   : > { %1892 = vrot.lane.b32.xlu1 %v1890_v24, %s5948_s16  ;;  %v1109_v25 = vadd.f32 %v1108_v7, %v1105_v47  ;;  %v4889_v16 = vadd.f32 %v1218_v20, %v1093_v14  ;;  %v1265_v24 = vstv %s4868_s18  ;;  %v3487_v20 = vld [vmem:[#allocation2 + $0x18] sm:$0xff]  ;;  %s5032_s18 = sld [smem:[#allocation12 + $0x46]] }
 0x1b6   : > { %v1127_v34 = vpop.permute.xlu0 %1126  ;;  %v1156_v23 = vmul.f32 %v3487_v20, %v1155_v22  ;;  %v4928_v22 = vld [vmem:[#allocation2 + $0x21] sm:$0xff]  ;;  %s6008_s6 = sld [smem:[#allocation44_spill]] }
 0x1b7   : > { %v1139_v36 = vpop.permute.xlu1 %1138  ;;  %v1129_v63 = vadd.f32 %v1127_v34, %v4815_v33  ;;  %v1117_v37 = vadd.f32 %v1115_v13, %v1109_v25  ;;  %v1938_v33 = vmul.f32 %v4819_v15, %v5975_v39  ;;  %v5976_v13 = vstv %s5974_s28  ;;  %s5051_s12 = sld [smem:[#allocation12 + $0x56]] }
 0x1b8   : > { %1904 = vrot.lane.b32.xlu0 %v1902_v28, %s5948_s16  ;;  %v1926_v14 = vmul.f32 %v4290_v18, %v5976_v13  ;;  %v1266_v34 = vmul.f32 %v1265_v24, %v4250_v0  ;;  %v4930_v24 = vld [vmem:[#allocation2 + $0x20] sm:$0xff]  ;;  %v1205_v13 = vstv %s4903_s19  ;;  %v6009_v4 = vstv %s6002_s5  ;;  %s6012_s28 = sld [smem:[#allocation46_spill]] }
 0x1b9   : > { %1916 = vrot.lane.b32.xlu1 %v1914_v60, %s5948_s16  ;;  %v1133_v21 = vadd.f32 %v1132_v10, %v1129_v63  ;;  %v1243_v41 = vadd.f32 %v1242_v17, %v1117_v37  ;;  %v1289_v60 = vstv %s4887_s24  ;;  %v5979_v37 = vstv %s5977_s11  ;;  %s6011_s24 = sld [smem:[#allocation57_spill]] }
 0x1ba   : > { %v1151_v47 = vpop.permute.xlu0 %1150  ;;  %s6014_s19 = sld [smem:[#allocation52_spill]] }
 0x1bb   : > { %v1163_v7 = vpop.permute.xlu1 %1162  ;;  %v1153_v9 = vadd.f32 %v1151_v47, %v4832_v42  ;;  %v1141_v25 = vadd.f32 %v1139_v36, %v1133_v21  ;;  %v1962_v42 = vmul.f32 %v4819_v15, %v5979_v37  ;;  %v5980_v36 = vstv %s5978_s29  ;;  %s6016_s11 = sld [smem:[#allocation45_spill]] }
 0x1bc   : > { %1928 = vrot.lane.b32.xlu0 %v1926_v14, %s5948_s16  ;;  %v1950_v17 = vmul.f32 %v4290_v18, %v5980_v36  ;;  %v1182_v21 = vmul.f32 %v1181_v32, %v4252_v1  ;;  %s6019_s29 = sld [smem:[#allocation48_spill]] }
 0x1bd   : > { %1940 = vrot.lane.b32.xlu1 %v1938_v33, %s5948_s16  ;;  %v1157_v40 = vadd.f32 %v1156_v23, %v1153_v9  ;;  %v1267_v28 = vadd.f32 %v1266_v34, %v1141_v25  ;;  %v1290_v33 = vmul.f32 %v1289_v60, %v4250_v0  ;;  %v5984_v25 = vstv %s5981_s27  ;;  %s6023_s27 = sld [smem:[#allocation47_spill]] }
 0x1be   : > { %v1177_v63 = vpop.permute.xlu0 %1176  ;;  %v1206_v34 = vmul.f32 %v1205_v13, %v4252_v1  ;;  %v1229_v60 = vstv %s4917_s23  ;;  %s6021_s23 = sld [smem:[#allocation53_spill]] }
 0x1bf   : > { %v4920_v10 = vpop.permute.xlu1 %1188  ;;  %v1179_v47 = vadd.f32 %v1177_v63, %v4851_v29  ;;  %v1165_v39 = vadd.f32 %v1163_v7, %v1157_v40  ;;  %v1988_v29 = vmul.f32 %v4930_v24, %v5984_v25  ;;  %v5985_v7 = vstv %s5982_s10  ;;  %s6024_s10 = sld [smem:[#allocation62_spill]] }
 0x1c0   : > { %1952 = vrot.lane.b32.xlu0 %v1950_v17, %s5948_s16  ;;  %v1976_v0 = vmul.f32 %v4928_v22, %v5985_v7  ;;  %v5987_v17 = vstv %s5983_s0  ;;  %v5988_v25 = vstv %s4239_s4  ;;  %v3488_v7 = vld [vmem:[#allocation2 + $0x30] sm:$0xff]  ;;  %s5991_s4 = sld [smem:[#allocation58_spill]] }
 0x1c1   : > { %1964 = vrot.lane.b32.xlu1 %v1962_v42, %s5948_s16  ;;  %v4938_v14 = vadd.f32 %v1182_v21, %v1179_v47  ;;  %v1291_v20 = vadd.f32 %v1290_v33, %v1165_v39  ;;  %v5986_v42 = vstv %s4217_s14  ;;  %v2000_v21 = vmul.f32 %v4928_v22, %v5987_v17  ;;  %s4981_s14 = sld [smem:[#allocation12 + $0x9]] }
 0x1c2   : > { %v1201_v9 = vpop.permute.xlu0 %1200  ;;  %v2298_v36 = vmul.f32 %v4367_v3, %v5986_v42  ;;  %v1253_v39 = vstv %s3120_s30  ;;  %s5088_s30 = sld [smem:[#allocation12 + $0x39]] }
 0x1c3   : > { %v4940_v23 = vpop.permute.xlu1 %1212  ;;  %v1203_v32 = vadd.f32 %v1201_v9, %v4870_v38  ;;  %v1230_v38 = vmul.f32 %v1229_v60, %v4252_v1  ;;  %v5989_v1 = vstv %s4233_s25  ;;  %s5994_s25 = sld [smem:[#allocation43_spill]] }
 0x1c4   : > { %1978 = vrot.lane.b32.xlu0 %v1976_v0, %s5948_s16  ;;  %v1254_v0 = vmul.f32 %v3488_v7, %v1253_v39  ;;  %v1301_v39 = vstv %s4967_s15  ;;  %s6026_s0 = sld [smem:[#allocation49_spill]] }
 0x1c5   : > { %1990 = vrot.lane.b32.xlu1 %v1988_v29, %s5948_s16  ;;  %v4953_v40 = vadd.f32 %v1206_v34, %v1203_v32  ;;  %v2346_v29 = vmul.f32 %v4367_v3, %v5988_v25  ;;  %v1277_v32 = vstv %s3124_s21  ;;  %v5995_v25 = vstv %s4317_s8  ;;  %s6001_s8 = sld [smem:[#allocation41_spill]] }
 0x1c6   : > { %v1225_v37 = vpop.permute.xlu0 %1224  ;;  %s6028_s21 = sld [smem:[#allocation54_spill]] }
 0x1c7   : > { %v4955_v63 = vpop.permute.xlu1 %1236  ;;  %v1227_v47 = vadd.f32 %v1225_v37, %v4889_v16  ;;  %v2322_v16 = vmul.f32 %v4367_v3, %v5989_v1  ;;  %s6031_s15 = sld [smem:[#allocation70_spill]] }
 0x1c8   : > { %2002 = vrot.lane.b32.xlu0 %v2000_v21, %s5948_s16  ;;  %v5993_v21 = vstv %s4308_s26  ;;  %s5997_s26 = sld [smem:[#allocation39_spill]] }
 0x1c9   : > { %2300 = vrot.lane.b32.xlu1 %v2298_v36, %s5948_s16  ;;  %v4969_v33 = vadd.f32 %v1230_v38, %v1227_v47  ;;  %v5992_v36 = vstv %s4362_s22  ;;  %v1278_v38 = vmul.f32 %v3488_v7, %v1277_v32  ;;  %s5999_s22 = sld [smem:[#allocation38_spill]] }
 0x1ca   : > { %v1249_v9 = vpop.permute.xlu0 %1248  ;;  %v2394_v17 = vmul.f32 %v4367_v3, %v5992_v36  ;;  %s5145_s5 = sld [smem:[#allocation12 + $0x60]] }
 0x1cb   : > { %v4971_v13 = vpop.permute.xlu1 %1260  ;;  %v1251_v34 = vadd.f32 %v1249_v9, %v1243_v41  ;;  %v2370_v41 = vmul.f32 %v4367_v3, %v5993_v21 }
 0x1cc   : > { %2324 = vrot.lane.b32.xlu0 %v2322_v16, %s5948_s16 }
 0x1cd   : > { %2348 = vrot.lane.b32.xlu1 %v2346_v29, %s5948_s16  ;;  %v4983_v60 = vadd.f32 %v1254_v0, %v1251_v34  ;;  %v1352_v29 = vmul.f32 %v5995_v25, %v4377_v8  ;;  %v5996_v0 = vstv %s5990_s3  ;;  %v5998_v34 = vstv %s5991_s4  ;;  %s6033_s3 = sld [smem:[#allocation66_spill]] }
 0x1ce   : > { %v1273_v42 = vpop.permute.xlu0 %1272  ;;  %v2418_v32 = vmul.f32 %v4367_v3, %v5998_v34  ;;  %v1387_v34 = vstv %s4996_s9  ;;  %s5112_s4 = sld [smem:[#allocation12 + $0x3e]] }
 0x1cf   : > { %v4985_v37 = vpop.permute.xlu1 %1284  ;;  %v1275_v47 = vadd.f32 %v1273_v42, %v1267_v28  ;;  %v2310_v28 = vmul.f32 %v4290_v18, %v5996_v0  ;;  %v1302_v42 = vmul.f32 %v3488_v7, %v1301_v39  ;;  %v6000_v18 = vstv %s5994_s25  ;;  %s6034_s25 = sld [smem:[#allocation50_spill]] }
 0x1d0   : > { %2372 = vrot.lane.b32.xlu0 %v2370_v41, %s5948_s16  ;;  %v1353_v41 = vadd.f32 %v1352_v29, %v4311_v35  ;;  %v6003_v7 = vstv %s5997_s26  ;;  %v6005_v25 = vstv %s5999_s22  ;;  %v5034_v29 = vld [vmem:[#allocation2 + $0x1] sm:$0xff]  ;;  %s6036_s9 = sld [smem:[#allocation55_spill]] }
 0x1d1   : > { %2396 = vrot.lane.b32.xlu1 %v2394_v17, %s5948_s16  ;;  %v4998_v9 = vadd.f32 %v1278_v38, %v1275_v47  ;;  %v1363_v17 = vstv %s4981_s14  ;;  %v1376_v38 = vmul.f32 %v6000_v18, %v4377_v8  ;;  %s5107_s14 = sld [smem:[#allocation12 + $0x38]] }
 0x1d2   : > { %v1297_v16 = vpop.permute.xlu0 %1296  ;;  %v1364_v0 = vmul.f32 %v5034_v29, %v1363_v17  ;;  %v6010_v17 = vstv %s6004_s13  ;;  %s5119_s26 = sld [smem:[#allocation12 + $0x61]] }
 0x1d3   : > { %v5003_v1 = vpop.permute.xlu1 %1308  ;;  %v1299_v36 = vadd.f32 %v1297_v16, %v1291_v20  ;;  %v5024_v20 = vld [vmem:[#allocation2 + $0x9] sm:$0xff]  ;;  %s5122_s22 = sld [smem:[#allocation12 + $0x49]] }
 0x1d4   : > { %2420 = vrot.lane.b32.xlu0 %v2418_v32, %s5948_s16  ;;  %v2358_v39 = vmul.f32 %v5024_v20, %v6003_v7  ;;  %v2334_v16 = vmul.f32 %v5024_v20, %v6005_v25  ;;  %v2406_v54 = vmul.f32 %v5024_v20, %v6009_v4  ;;  %s6042_s13 = sld [smem:[#allocation56_spill]] }
 0x1d5   : > { %2312 = vrot.lane.b32.xlu1 %v2310_v28, %s5948_s16  ;;  %v5016_v21 = vadd.f32 %v1302_v42, %v1299_v36  ;;  %v1377_v42 = vadd.f32 %v1376_v38, %v4311_v35  ;;  %v6007_v36 = vstv %s6001_s8  ;;  %v1388_v35 = vmul.f32 %v5034_v29, %v1387_v34  ;;  %s6040_s8 = sld [smem:[#allocation71_spill]] }
 0x1d6   : > { %v1359_v47 = vpop.permute.xlu0 %1358  ;;  %v1400_v18 = vmul.f32 %v6007_v36, %v4377_v8  ;;  %v6015_v36 = vstv %s6008_s6  ;;  %s5165_s6 = sld [smem:[#allocation12 + $0x5f]] }
 0x1d7   : > { %v1371_v3 = vpop.permute.xlu1 %1370  ;;  %v1361_v28 = vadd.f32 %v1359_v47, %v1353_v41  ;;  %v2382_v41 = vmul.f32 %v5024_v20, %v6010_v17  ;;  %v2023_v47 = vstv %s5011_s2  ;;  %v1424_v17 = vmul.f32 %v6015_v36, %v4377_v8  ;;  %s5133_s2 = sld [smem:[#allocation12 + $0x4e]] }
 0x1d8   : > { %2336 = vrot.lane.b32.xlu0 %v2334_v16, %s5948_s16  ;;  %v6013_v16 = vstv %s6006_s17  ;;  %v6020_v36 = vstv %s6014_s19  ;;  %s5161_s17 = sld [smem:[#allocation12 + $0x5e]] }
 0x1d9   : > { %2360 = vrot.lane.b32.xlu1 %v2358_v39, %s5948_s16  ;;  %v1365_v32 = vadd.f32 %v1364_v0, %v1361_v28  ;;  %v1498_v0 = vmul.f32 %v6013_v16, %v4596_v61  ;;  %v1401_v28 = vadd.f32 %v1400_v18, %v4325_v50  ;;  %v2071_v16 = vstv %s5022_s1  ;;  %s5138_s1 = sld [smem:[#allocation12 + $0x4f]] }
 0x1da   : > { %v1383_v25 = vpop.permute.xlu0 %1382  ;;  %s5204_s19 = sld [smem:[#allocation12 + $0x4a]] }
 0x1db   : > { %v1395_v7 = vpop.permute.xlu1 %1394  ;;  %v1385_v38 = vadd.f32 %v1383_v25, %v1377_v42  ;;  %v1373_v39 = vadd.f32 %v1371_v3, %v1365_v32  ;;  %v2024_v3 = vmul.f32 %v2023_v47, %v4928_v22  ;;  %v6017_v32 = vstv %s6011_s24  ;;  %s5177_s24 = sld [smem:[#allocation12 + $0x59]] }
 0x1dc   : > { %2384 = vrot.lane.b32.xlu0 %v2382_v41, %s5948_s16  ;;  %v2430_v25 = vmul.f32 %v5024_v20, %v6017_v32  ;;  %v6018_v41 = vstv %s6012_s28  ;;  %v6022_v32 = vstv %s6016_s11  ;;  %s5196_s28 = sld [smem:[#allocation12 + $0x58]] }
 0x1dd   : > { %2408 = vrot.lane.b32.xlu1 %v2406_v54, %s5948_s16  ;;  %v1389_v4 = vadd.f32 %v1388_v35, %v1385_v38  ;;  %v5063_v5 = vadd.f32 %v1498_v0, %v1373_v39  ;;  %v2047_v54 = vstv %s5032_s18  ;;  %v1412_v35 = vmul.f32 %v5034_v29, %v6018_v41  ;;  %s5147_s18 = sld [smem:[#allocation12 + $0x48]] }
 0x1de   : > { %v1407_v42 = vpop.permute.xlu0 %1406  ;;  %v1522_v39 = vmul.f32 %v6020_v36, %v4596_v61  ;;  %v1425_v0 = vadd.f32 %v1424_v17, %v4325_v50  ;;  %v1448_v30 = vmul.f32 %v6022_v32, %v4377_v8  ;;  %v6027_v8 = vstv %s6021_s23  ;;  %s5208_s11 = sld [smem:[#allocation12 + $0x4b]] }
 0x1df   : > { %v1419_v34 = vpop.permute.xlu1 %1418  ;;  %v1409_v18 = vadd.f32 %v1407_v42, %v1401_v28  ;;  %v1397_v38 = vadd.f32 %v1395_v7, %v1389_v4  ;;  %v2072_v7 = vmul.f32 %v2071_v16, %v4928_v22  ;;  %v2048_v4 = vmul.f32 %v2047_v54, %v4928_v22  ;;  %s5223_s23 = sld [smem:[#allocation12 + $0x5a]] }
 0x1e0   : > { %2432 = vrot.lane.b32.xlu0 %v2430_v25, %s5948_s16  ;;  %v2095_v42 = vstv %s5051_s12  ;;  %v1449_v54 = vadd.f32 %v1448_v30, %v4355_v62  ;;  %s5185_s12 = sld [smem:[#allocation12 + $0x3a]] }
 0x1e1   : > { %2026 = vrot.lane.b32.xlu1 %v2024_v3, %s5948_s16  ;;  %v1413_v47 = vadd.f32 %v1412_v35, %v1409_v18  ;;  %v5083_v59 = vadd.f32 %v1522_v39, %v1397_v38  ;;  %v6025_v3 = vstv %s6019_s29  ;;  %v1546_v35 = vmul.f32 %v6027_v8, %v4596_v61  ;;  %v3491_v18 = vld [vmem:[#allocation2 + $0x2] sm:$0xff]  ;;  %s5215_s29 = sld [smem:[#allocation12 + $0x69]] }
 0x1e2   : > { %v1431_v28 = vpop.permute.xlu0 %1430  ;;  %v1436_v25 = vmul.f32 %v5034_v29, %v6025_v3  ;;  %v6029_v38 = vstv %s6023_s27  ;;  %s5227_s27 = sld [smem:[#allocation12 + $0x5b]] }
 0x1e3   : > { %v1443_v41 = vpop.permute.xlu1 %1442  ;;  %v1433_v50 = vadd.f32 %v1431_v28, %v1425_v0  ;;  %v1421_v17 = vadd.f32 %v1419_v34, %v1413_v47  ;;  %v1472_v36 = vmul.f32 %v3491_v18, %v6029_v38  ;;  %v6030_v0 = vstv %s6024_s10  ;;  %s6047_s10 = sld [smem:[#allocation59_spill]] }
 0x1e4   : > { %2050 = vrot.lane.b32.xlu0 %v2048_v4, %s5948_s16  ;;  %v2444_v34 = vmul.f32 %v4479_v27, %v6030_v0  ;;  %v2096_v47 = vmul.f32 %v2095_v42, %v4928_v22  ;;  %v6032_v28 = vstv %s6026_s0  ;;  %v6038_v18 = vstv %s6033_s3  ;;  %s5245_s0 = sld [smem:[#allocation12 + $0x67]] }
 0x1e5   : > { %2074 = vrot.lane.b32.xlu1 %v2072_v7, %s5948_s16  ;;  %v1437_v16 = vadd.f32 %v1436_v25, %v1433_v50  ;;  %v5101_v39 = vadd.f32 %v1546_v35, %v1421_v17  ;;  %v1460_v7 = vmul.f32 %v5034_v29, %v6032_v28  ;;  %v6035_v25 = vstv %s6028_s21  ;;  %s6049_s21 = sld [smem:[#allocation60_spill]] }
 0x1e6   : > { %v1455_v3 = vpop.permute.xlu0 %1454  ;;  %v1570_v50 = vmul.f32 %v6035_v25, %v4596_v61  ;;  %v1473_v17 = vadd.f32 %v1472_v36, %v4355_v62  ;;  %v2468_v38 = vmul.f32 %v4479_v27, %v6038_v18  ;;  %v6039_v0 = vstv %s6034_s25  ;;  %s5270_s3 = sld [smem:[#allocation12 + $0x79]] }
 0x1e7   : > { %v1467_v32 = vpop.permute.xlu1 %1466  ;;  %v1457_v30 = vadd.f32 %v1455_v3, %v1449_v54  ;;  %v1445_v4 = vadd.f32 %v1443_v41, %v1437_v16  ;;  %v6037_v41 = vstv %s6031_s15  ;;  %v1509_v3 = vstv %s5088_s30  ;;  %s5241_s30 = sld [smem:[#allocation12 + $0x66]] }
 0x1e8   : > { %2098 = vrot.lane.b32.xlu0 %v2096_v47, %s5948_s16  ;;  %v2492_v16 = vmul.f32 %v4479_v27, %v6037_v41  ;;  %v6041_v47 = vstv %s6036_s9  ;;  %v1533_v41 = vstv %s5107_s14  ;;  %v2011_v18 = vstv %s5112_s4  ;;  %s5252_s15 = sld [smem:[#allocation12 + $0x68]]  ;;  %s3719_s9 = smov 126  }
 0x1e9   : > { %2446 = vrot.lane.b32.xlu1 %v2444_v34, %s5948_s16  ;;  %v1461_v42 = vadd.f32 %v1460_v7, %v1457_v30  ;;  %v5124_v8 = vadd.f32 %v1570_v50, %v1445_v4  ;;  %v1484_v34 = vmul.f32 %v5034_v29, %v6039_v0  ;;  %v1594_v28 = vmul.f32 %v6041_v47, %v4596_v61  ;;  %v5151_v4 = vld [vmem:[#allocation2 + $0x19] sm:$0xff]  ;;  %s6051_s14 = sld [smem:[#allocation61_spill]] }
 0x1ea   : > { %v1479_v54 = vpop.permute.xlu0 %1478  ;;  %v6043_v50 = vstv %s4616_s20  ;;  %s5173_s20 = sld [smem:[#allocation12 + $0x71]] }
 0x1eb   : > { %v1491_v35 = vpop.permute.xlu1 %1490  ;;  %v1481_v62 = vadd.f32 %v1479_v54, %v1473_v17  ;;  %v1469_v36 = vadd.f32 %v1467_v32, %v1461_v42  ;;  %v1510_v32 = vmul.f32 %v5151_v4, %v1509_v3  ;;  %v2540_v42 = vmul.f32 %v4479_v27, %v6043_v50  ;;  %s5290_s4 = sld [smem:[#allocation12 + $0x78]] }
 0x1ec   : > { %2470 = vrot.lane.b32.xlu0 %v2468_v38, %s5948_s16  ;;  %v6044_v17 = vstv %s6040_s8  ;;  %v6045_v3 = vstv %s6042_s13  ;;  %v2059_v50 = vstv %s5133_s2  ;;  %s3200_s25 = sld [smem:[#allocation12 + $0x89]] }
 0x1ed   : > { %2494 = vrot.lane.b32.xlu1 %v2492_v16, %s5948_s16  ;;  %v1485_v7 = vadd.f32 %v1484_v34, %v1481_v62  ;;  %v5149_v29 = vadd.f32 %v1594_v28, %v1469_v36  ;;  %v2516_v54 = vmul.f32 %v4479_v27, %v6044_v17  ;;  %v1618_v0 = vmul.f32 %v6045_v3, %v4596_v61  ;;  %v3493_v62 = vld [vmem:[#allocation2 + $0x22] sm:$0xff]  ;;  %s5316_s2 = sld [smem:[#allocation12 + $0xd]] }
 0x1ee   : > { %v1505_v25 = vpop.permute.xlu0 %1504  ;;  %v1643_v27 = vstv %s5119_s26  ;;  %v1534_v61 = vmul.f32 %v5151_v4, %v1533_v41  ;;  %v1667_v41 = vstv %s5145_s5  ;;  %s3720_s26 = smov 127   ;;  %s5323_s8 = sld [smem:[#allocation12 + $0xc]] }
 0x1ef   : > { %v1517_v30 = vpop.permute.xlu1 %1516  ;;  %v1507_v16 = vadd.f32 %v1505_v25, %v5063_v5  ;;  %v1493_v38 = vadd.f32 %v1491_v35, %v1485_v7  ;;  %v6046_v5 = vstv %s4631_s7  ;;  %v2012_v7 = vmul.f32 %v2011_v18, %v4930_v24  ;;  %s5189_s7 = sld [smem:[#allocation12 + $0x3b]] }
 0x1f0   : > { %2518 = vrot.lane.b32.xlu0 %v2516_v54, %s5948_s16  ;;  %v2564_v36 = vmul.f32 %v3493_v62, %v6046_v5  ;;  %v1557_v25 = vstv %s5122_s22  ;;  %v1644_v54 = vmul.f32 %v1643_v27, %v4702_v6  ;;  %v1581_v27 = vstv %s5147_s18  ;;  %s3204_s22 = sld [smem:[#allocation12 + $0x88]] }
 0x1f1   : > { %2542 = vrot.lane.b32.xlu1 %v2540_v42, %s5948_s16  ;;  %v1511_v34 = vadd.f32 %v1510_v32, %v1507_v16  ;;  %v5179_v35 = vadd.f32 %v1618_v0, %v1493_v38  ;;  %v2035_v42 = vstv %s5138_s1  ;;  %v1558_v18 = vmul.f32 %v5151_v4, %v1557_v25  ;;  %s5327_s1 = sld [smem:[#allocation12 + $0x1d]] }
 0x1f2   : > { %v1529_v28 = vpop.permute.xlu0 %1528  ;;  %v2036_v0 = vmul.f32 %v2035_v42, %v4930_v24  ;;  %v2083_v5 = vstv %s5165_s6  ;;  %v1582_v25 = vmul.f32 %v5151_v4, %v1581_v27  ;;  %s5330_s5 = sld [smem:[#allocation12 + $0x76]] }
 0x1f3   : > { %v1541_v47 = vpop.permute.xlu1 %1540  ;;  %v1531_v32 = vadd.f32 %v1529_v28, %v5083_v59  ;;  %v1519_v17 = vadd.f32 %v1517_v30, %v1511_v34  ;;  %v2060_v30 = vmul.f32 %v2059_v50, %v4930_v24  ;;  %v2107_v34 = vstv %s5161_s17  ;;  %s5333_s13 = sld [smem:[#allocation12 + $0x77]] }
 0x1f4   : > { %2566 = vrot.lane.b32.xlu0 %v2564_v36, %s5948_s16  ;;  %v1691_v28 = vstv %s5173_s20  ;;  %v2084_v42 = vmul.f32 %v2083_v5, %v4930_v24  ;;  %v1629_v5 = vstv %s5196_s28  ;;  %s5338_s18 = sld [smem:[#allocation12 + $0x1c]] }
 0x1f5   : > { %2014 = vrot.lane.b32.xlu1 %v2012_v7, %s5948_s16  ;;  %v1535_v16 = vadd.f32 %v1534_v61, %v1531_v32  ;;  %v5198_v59 = vadd.f32 %v1644_v54, %v1519_v17  ;;  %v1668_v61 = vmul.f32 %v1667_v41, %v4702_v6  ;;  %v1605_v17 = vstv %s5177_s24  ;;  %s5340_s17 = sld [smem:[#allocation12 + $0x86]] }
 0x1f6   : > { %v1553_v3 = vpop.permute.xlu0 %1552  ;;  %v2479_v54 = vstv %s5185_s12  ;;  %s5345_s6 = sld [smem:[#allocation12 + $0x87]] }
 0x1f7   : > { %v1565_v38 = vpop.permute.xlu1 %1564  ;;  %v1555_v62 = vadd.f32 %v1553_v3, %v5101_v39  ;;  %v1543_v36 = vadd.f32 %v1541_v47, %v1535_v16  ;;  %v2108_v47 = vmul.f32 %v2107_v34, %v4930_v24  ;;  %v2455_v16 = vstv %s5189_s7  ;;  %s5349_s20 = sld [smem:[#allocation12 + $0x2d]] }
 0x1f8   : > { %2038 = vrot.lane.b32.xlu0 %v2036_v0, %s5948_s16  ;;  %v1692_v3 = vmul.f32 %v1691_v28, %v4702_v6  ;;  %v1606_v0 = vmul.f32 %v5151_v4, %v1605_v17  ;;  %v2503_v28 = vstv %s5208_s11  ;;  %s5353_s12 = sld [smem:[#allocation12 + $0x62]] }
 0x1f9   : > { %2062 = vrot.lane.b32.xlu1 %v2060_v30, %s5948_s16  ;;  %v1559_v7 = vadd.f32 %v1558_v18, %v1555_v62  ;;  %v5217_v39 = vadd.f32 %v1668_v61, %v1543_v36  ;;  %v2480_v62 = vmul.f32 %v2479_v54, %v4928_v22  ;;  %v2527_v36 = vstv %s5204_s19  ;;  %s5358_s7 = sld [smem:[#allocation12 + $0x63]] }
 0x1fa   : > { %v1577_v32 = vpop.permute.xlu0 %1576  ;;  %s5364_s19 = sld [smem:[#allocation12 + $0x2c]] }
 0x1fb   : > { %v1589_v50 = vpop.permute.xlu1 %1588  ;;  %v1579_v41 = vadd.f32 %v1577_v32, %v5124_v8  ;;  %v1567_v18 = vadd.f32 %v1565_v38, %v1559_v7  ;;  %v2456_v38 = vmul.f32 %v2455_v16, %v4928_v22  ;;  %v2504_v16 = vmul.f32 %v2503_v28, %v4928_v22  ;;  %v5274_v28 = vld [vmem:[#allocation2 + $0x31] sm:$0xff]  ;;  %s5366_s11 = sld [smem:[#allocation12 + $0x72]] }
 0x1fc   : > { %2086 = vrot.lane.b32.xlu0 %v2084_v42, %s5948_s16  ;;  %s5598_s24 = sld [smem:[#allocation12 + $0x60]] }
 0x1fd   : > { %2110 = vrot.lane.b32.xlu1 %v2108_v47, %s5948_s16  ;;  %v1583_v30 = vadd.f32 %v1582_v25, %v1579_v41  ;;  %v5235_v27 = vadd.f32 %v1692_v3, %v1567_v18  ;;  %v6048_v25 = vstv %s6047_s10  ;;  %v1655_v18 = vstv %s5215_s29  ;;  %s5372_s29 = sld [smem:[#allocation12 + $0x73]] }
 0x1fe   : > { %v1601_v8 = vpop.permute.xlu0 %1600  ;;  %v1716_v32 = vmul.f32 %v6048_v25, %v4702_v6  ;;  %v2575_v3 = vstv %s5223_s23  ;;  %s5377_s23 = sld [smem:[#allocation12 + $0x35]] }
 0x1ff   : > { %v1613_v34 = vpop.permute.xlu1 %1612  ;;  %v1603_v61 = vadd.f32 %v1601_v8, %v5149_v29  ;;  %v1591_v7 = vadd.f32 %v1589_v50, %v1583_v30  ;;  %v1630_v29 = vmul.f32 %v5151_v4, %v1629_v5  ;;  %v2528_v50 = vmul.f32 %v2527_v36, %v4928_v22  ;;  %s5385_s10 = sld [smem:[#allocation12 + $0x82]] }
 0x200   : > { %2458 = vrot.lane.b32.xlu0 %v2456_v38, %s5948_s16  ;;  %v2551_v8 = vstv %s5227_s27  ;;  %s5383_s27 = sld [smem:[#allocation12 + $0x3d]] }
 0x201   : > { %2482 = vrot.lane.b32.xlu1 %v2480_v62, %s5948_s16  ;;  %v1607_v47 = vadd.f32 %v1606_v0, %v1603_v61  ;;  %v5257_v42 = vadd.f32 %v1716_v32, %v1591_v7  ;;  %v6050_v0 = vstv %s6049_s21  ;;  %v2576_v7 = vmul.f32 %v2575_v3, %v4928_v22  ;;  %s5402_s21 = sld [smem:[#allocation12 + $0x6e]] }
 0x202   : > { %v1625_v41 = vpop.permute.xlu0 %1624  ;;  %v1740_v38 = vmul.f32 %v6050_v0, %v4702_v6  ;;  %v2552_v25 = vmul.f32 %v2551_v8, %v4928_v22  ;;  %v2145_v32 = vstv %s5241_s30  ;;  %s5391_s30 = sld [smem:[#allocation12 + $0x83]] }
 0x203   : > { %v1637_v54 = vpop.permute.xlu1 %1636  ;;  %v1627_v30 = vadd.f32 %v1625_v41, %v5179_v35  ;;  %v1615_v62 = vadd.f32 %v1613_v34, %v1607_v47  ;;  %v1656_v35 = vmul.f32 %v5274_v28, %v1655_v18  ;;  %v5280_v47 = vld [vmem:[#allocation2 + $0x39] sm:$0xff]  ;;  %v1679_v18 = vstv %s5252_s15  ;;  %s5405_s15 = sld [smem:[#allocation12 + $0x6f]] }
 0x204   : > { %2506 = vrot.lane.b32.xlu0 %v2504_v16, %s5948_s16  ;;  %v6052_v16 = vstv %s6051_s14  ;;  %s5413_s14 = sld [smem:[#allocation12 + $0x9]] }
 0x205   : > { %2530 = vrot.lane.b32.xlu1 %v2528_v50, %s5948_s16  ;;  %v1631_v4 = vadd.f32 %v1630_v29, %v1627_v30  ;;  %v1741_v36 = vadd.f32 %v1740_v38, %v1615_v62  ;;  %v2121_v50 = vstv %s5245_s0  ;;  %v1764_v30 = vmul.f32 %v6052_v16, %v4702_v6  ;;  %s5396_s0 = sld [smem:[#allocation12 + $0x34]] }
 0x206   : > { %v1651_v34 = vpop.permute.xlu0 %1650  ;;  %v2146_v38 = vmul.f32 %v2145_v32, %v5280_v47  ;;  %v1703_v6 = vstv %s5270_s3  ;;  %s5420_s3 = sld [smem:[#allocation12 + $0x3c]] }
 0x207   : > { %v5272_v61 = vpop.permute.xlu1 %1662  ;;  %v1653_v41 = vadd.f32 %v1651_v34, %v5198_v59  ;;  %v1639_v29 = vadd.f32 %v1637_v54, %v1631_v4  ;;  %v2122_v59 = vmul.f32 %v2121_v50, %v5280_v47  ;;  %v1680_v54 = vmul.f32 %v5274_v28, %v1679_v18  ;;  %s5612_s28 = sld [smem:[#allocation12 + $0x71]] }
 0x208   : > { %2554 = vrot.lane.b32.xlu0 %v2552_v25, %s5948_s16  ;;  %v1727_v50 = vstv %s5290_s4  ;;  %s5424_s4 = sld [smem:[#allocation12 + $0x65]] }
 0x209   : > { %2578 = vrot.lane.b32.xlu1 %v2576_v7, %s5948_s16  ;;  %v1657_v3 = vadd.f32 %v1656_v35, %v1653_v41  ;;  %v1765_v8 = vadd.f32 %v1764_v30, %v1639_v29  ;;  %v1191_v35 = vadd.f32 %v4920_v10, %v4938_v14  ;;  %v1215_v7 = vadd.f32 %v4940_v23, %v4953_v40 }
 0x20a   : > { %v1675_v0 = vpop.permute.xlu0 %1674  ;;  %v1704_v41 = vmul.f32 %v5274_v28, %v1703_v6  ;;  %v1239_v10 = vadd.f32 %v4955_v63, %v4969_v33  ;;  %v1263_v14 = vadd.f32 %v4971_v13, %v4983_v60  ;;  %v1728_v16 = vmul.f32 %v5274_v28, %v1727_v50 }
 0x20b   : > { %v1687_v62 = vpop.permute.xlu1 %1686  ;;  %v1677_v4 = vadd.f32 %v1675_v0, %v5217_v39  ;;  %v1751_v30 = vstv %s3200_s25  ;;  %v1287_v63 = vadd.f32 %v4985_v37, %v4998_v9  ;;  %v1311_v33 = vadd.f32 %v5003_v1, %v5016_v21  ;;  %s5427_s25 = sld [smem:[#allocation12 + $0x7e]] }
 0x20c   : > { %2124 = vrot.lane.b32.xlu0 %v2122_v59, %s5948_s16  ;;  %v1752_v0 = vmul.f32 %v5274_v28, %v1751_v30  ;;  %v1665_v37 = vadd.f32 %v5272_v61, %v1657_v3 }
 0x20d   : > { %2148 = vrot.lane.b32.xlu1 %v2146_v38, %s5948_s16  ;;  %v1681_v34 = vadd.f32 %v1680_v54, %v1677_v4  ;;  %v1837_v4 = vstv %s5316_s2  ;;  %s5442_s2 = sld [smem:[#allocation12 + $0x8]] }
 0x20e   : > { %v1699_v32 = vpop.permute.xlu0 %1698 }
 0x20f   : > { %v1711_v25 = vpop.permute.xlu1 %1710  ;;  %v1701_v39 = vadd.f32 %v1699_v32, %v5235_v27  ;;  %v1689_v9 = vadd.f32 %v1687_v62, %v1681_v34 }
 0x210   : > { %1313 = vrot.lane.b32.xlu0 %v1191_v35, %s3720_s26  ;;  %v1861_v35 = vstv %s5323_s8  ;;  %s5453_s8 = sld [smem:[#allocation12 + $0x8e]] }
 0x211   : > { %1319 = vrot.lane.b32.xlu1 %v1215_v7, %s3719_s9  ;;  %v1705_v29 = vadd.f32 %v1704_v41, %v1701_v39  ;;  %v1862_v39 = vmul.f32 %v1861_v35, %v4819_v15  ;;  %v2661_v35 = vstv %s5366_s11  ;;  %s5525_s11 = sld [smem:[#allocation12 + $0x4d]] }
 0x212   : > { %v1723_v40 = vpop.permute.xlu0 %1722 }
 0x213   : > { %v1735_v23 = vpop.permute.xlu1 %1734  ;;  %v1725_v27 = vadd.f32 %v1723_v40, %v5257_v42  ;;  %v1775_v42 = vstv %s3204_s22  ;;  %v1713_v61 = vadd.f32 %v1711_v25, %v1705_v29  ;;  %v1885_v29 = vstv %s5327_s1  ;;  %s5433_s22 = sld [smem:[#allocation12 + $0x7f]] }
 0x214   : > { %1325 = vrot.lane.b32.xlu0 %v1239_v10, %s3720_s26  ;;  %v2193_v10 = vstv %s5330_s5  ;;  %s5455_s1 = sld [smem:[#allocation12 + $0x8f]] }
 0x215   : > { %1331 = vrot.lane.b32.xlu1 %v1263_v14, %s3719_s9  ;;  %v1729_v18 = vadd.f32 %v1728_v16, %v1725_v27  ;;  %v2169_v14 = vstv %s5333_s13  ;;  %v2194_v30 = vmul.f32 %v2193_v10, %v5280_v47  ;;  %s5470_s5 = sld [smem:[#allocation12 + $0x6a]] }
 0x216   : > { %v1747_v60 = vpop.permute.xlu0 %1746  ;;  %s5474_s13 = sld [smem:[#allocation12 + $0x6b]] }
 0x217   : > { %v1759_v13 = vpop.permute.xlu1 %1758  ;;  %v1749_v38 = vadd.f32 %v1747_v60, %v1741_v36  ;;  %v1776_v36 = vmul.f32 %v5274_v28, %v1775_v42  ;;  %v1737_v3 = vadd.f32 %v1735_v23, %v1729_v18  ;;  %v1838_v28 = vmul.f32 %v1837_v4, %v4819_v15 }
 0x218   : > { %1337 = vrot.lane.b32.xlu0 %v1287_v63, %s3720_s26  ;;  %v2170_v18 = vmul.f32 %v2169_v14, %v5280_v47  ;;  %v1909_v63 = vstv %s5338_s18  ;;  %v2217_v60 = vstv %s5345_s6  ;;  %s5487_s18 = sld [smem:[#allocation12 + $0x7a]] }
 0x219   : > { %1343 = vrot.lane.b32.xlu1 %v1311_v33, %s3719_s9  ;;  %v1753_v59 = vadd.f32 %v1752_v0, %v1749_v38  ;;  %s5498_s6 = sld [smem:[#allocation12 + $0x8a]] }
 0x21a   : > { %v1771_v21 = vpop.permute.xlu0 %1770 }
 0x21b   : > { %v1783_v1 = vpop.permute.xlu1 %1782  ;;  %v1773_v54 = vadd.f32 %v1771_v21, %v1765_v8  ;;  %v1761_v25 = vadd.f32 %v1759_v13, %v1753_v59  ;;  %v2241_v13 = vstv %s5340_s17  ;;  %s5493_s17 = sld [smem:[#allocation12 + $0x7b]] }
 0x21c   : > { %1787 = vrot.lane.b32.xlu0 %v1665_v37, %s3720_s26  ;;  %v2242_v37 = vmul.f32 %v2241_v13, %v5280_v47 }
 0x21d   : > { %1793 = vrot.lane.b32.xlu1 %v1689_v9, %s3719_s9  ;;  %v1777_v6 = vadd.f32 %v1776_v36, %v1773_v54  ;;  %v2218_v9 = vmul.f32 %v2217_v60, %v5280_v47  ;;  %v2613_v36 = vstv %s5353_s12  ;;  %v2589_v54 = vstv %s5358_s7  ;;  %v5447_v60 = vld [vmem:[#allocation2 + $0x38] sm:$0xff]  ;;  %s5508_s12 = sld [smem:[#allocation12 + $0x45]] }
 0x21e   : > { %v1833_v34 = vpop.permute.xlu0 %1832  ;;  %s5516_s7 = sld [smem:[#allocation12 + $0x55]] }
 0x21f   : > { %v1845_v62 = vpop.permute.xlu1 %1844  ;;  %v1835_v8 = vadd.f32 %v1833_v34, %v4320_v46  ;;  %v1785_v32 = vadd.f32 %v1783_v1, %v1777_v6  ;;  %v1933_v1 = vstv %s5349_s20  ;;  %s5502_s20 = sld [smem:[#allocation12 + $0x8b]] }
 0x220   : > { %1799 = vrot.lane.b32.xlu0 %v1713_v61, %s3720_s26  ;;  %v1934_v61 = vmul.f32 %v1933_v1, %v4819_v15  ;;  %v2305_v1 = vstv %s5413_s14  ;;  %s5583_s14 = sld [smem:[#allocation12 + $0x84]] }
 0x221   : > { %1805 = vrot.lane.b32.xlu1 %v1737_v3, %s3719_s9  ;;  %v1839_v7 = vadd.f32 %v1838_v28, %v1835_v8  ;;  %v1957_v8 = vstv %s5364_s19  ;;  %s5521_s19 = sld [smem:[#allocation12 + $0x44]] }
 0x222   : > { %v1857_v50 = vpop.permute.xlu0 %1856 }
 0x223   : > { %v1869_v41 = vpop.permute.xlu1 %1868  ;;  %v1859_v46 = vadd.f32 %v1857_v50, %v4330_v51  ;;  %v5360_v23 = vadd.f32 %v1845_v62, %v1839_v7  ;;  %v1886_v51 = vmul.f32 %v1885_v29, %v4819_v15  ;;  %v5407_v62 = vld [vmem:[#allocation2 + $0x3a] sm:$0xff] }
 0x224   : > { %1811 = vrot.lane.b32.xlu0 %v1761_v25, %s3720_s26  ;;  %v2614_v34 = vmul.f32 %v5407_v62, %v2613_v36  ;;  %v2590_v28 = vmul.f32 %v5407_v62, %v2589_v54  ;;  %v2637_v25 = vstv %s5372_s29  ;;  %v2007_v36 = vstv %s5420_s3  ;;  %s5532_s29 = sld [smem:[#allocation12 + $0x54]] }
 0x225   : > { %1817 = vrot.lane.b32.xlu1 %v1785_v32, %s3719_s9  ;;  %v1863_v40 = vadd.f32 %v1862_v39, %v1859_v46  ;;  %v1971_v32 = vstv %s5377_s23  ;;  %v3496_v39 = vld [vmem:[#allocation2 + $0x8] sm:$0xff]  ;;  %v2638_v10 = vmul.f32 %v5407_v62, %v2637_v25  ;;  %v2117_v54 = vstv %s5424_s4  ;;  %s5536_s23 = sld [smem:[#allocation12 + $0x4c]] }
 0x226   : > { %v1881_v27 = vpop.permute.xlu0 %1880  ;;  %v1958_v50 = vmul.f32 %v3496_v39, %v1957_v8  ;;  %v1972_v14 = vmul.f32 %v1971_v32, %v4928_v22  ;;  %v2181_v8 = vstv %s5433_s22  ;;  %v2329_v39 = vstv %s5442_s2  ;;  %s5585_s3 = sld [smem:[#allocation12 + $0x85]] }
 0x227   : > { %v1893_v16 = vpop.permute.xlu1 %1892  ;;  %v1883_v33 = vadd.f32 %v1881_v27, %v4338_v53  ;;  %v5379_v0 = vadd.f32 %v1869_v41, %v1863_v40  ;;  %v1910_v53 = vmul.f32 %v1909_v63, %v4819_v15  ;;  %v1983_v40 = vstv %s5383_s27  ;;  %s5540_s27 = sld [smem:[#allocation12 + $0x5d]] }
 0x228   : > { %2172 = vrot.lane.b32.xlu0 %v2170_v18, %s5948_s16  ;;  %v2685_v27 = vstv %s5391_s30  ;;  %v1984_v13 = vmul.f32 %v1983_v40, %v4930_v24  ;;  %s5572_s30 = sld [smem:[#allocation12 + $0x74]] }
 0x229   : > { %2196 = vrot.lane.b32.xlu1 %v2194_v30, %s5948_s16  ;;  %v1887_v38 = vadd.f32 %v1886_v51, %v1883_v33  ;;  %v1995_v30 = vstv %s5396_s0  ;;  %v1973_v33 = vadd.f32 %v1972_v14, %v5360_v23  ;;  %v2253_v14 = vstv %s5453_s8  ;;  %s5574_s0 = sld [smem:[#allocation12 + $0x75]] }
 0x22a   : > { %v1905_v59 = vpop.permute.xlu0 %1904  ;;  %s5587_s4 = sld [smem:[#allocation12 + $0x48]] }
 0x22b   : > { %v1917_v42 = vpop.permute.xlu1 %1916  ;;  %v1907_v21 = vadd.f32 %v1905_v59, %v4349_v58  ;;  %v5398_v4 = vadd.f32 %v1893_v16, %v1887_v38  ;;  %v2709_v16 = vstv %s5385_s10  ;;  %v1996_v59 = vmul.f32 %v1995_v30, %v4928_v22  ;;  %s5554_s10 = sld [smem:[#allocation12 + $0x5c]] }
 0x22c   : > { %2220 = vrot.lane.b32.xlu0 %v2218_v9, %s5948_s16  ;;  %v2133_v9 = vstv %s5405_s15  ;;  %s5578_s15 = sld [smem:[#allocation12 + $0x39]] }
 0x22d   : > { %2244 = vrot.lane.b32.xlu1 %v2242_v37, %s5948_s16  ;;  %v1911_v6 = vadd.f32 %v1910_v53, %v1907_v21  ;;  %v2686_v53 = vmul.f32 %v5407_v62, %v2685_v27  ;;  %v2157_v37 = vstv %s5402_s21  ;;  %v1997_v22 = vadd.f32 %v1996_v59, %v5379_v0  ;;  %s5576_s21 = sld [smem:[#allocation12 + $0x38]] }
 0x22e   : > { %v1929_v3 = vpop.permute.xlu0 %1928  ;;  %v2330_v27 = vmul.f32 %v5024_v20, %v2329_v39  ;;  %s5602_s22 = sld [smem:[#allocation12 + $0x61]] }
 0x22f   : > { %v1941_v58 = vpop.permute.xlu1 %1940  ;;  %v1931_v7 = vadd.f32 %v1929_v3, %v4365_v2  ;;  %v5418_v15 = vadd.f32 %v1917_v42, %v1911_v6  ;;  %v2662_v2 = vmul.f32 %v5407_v62, %v2661_v35  ;;  %v2306_v35 = vmul.f32 %v5024_v20, %v2305_v1  ;;  %s6056_s2 = sld [smem:[#allocation24_spill]] }
 0x230   : > { %2592 = vrot.lane.b32.xlu0 %v2590_v28, %s5948_s16  ;;  %v2205_v28 = vstv %s5427_s25  ;;  %v2673_v1 = vstv %s5487_s18  ;;  %s5591_s25 = sld [smem:[#allocation12 + $0x49]] }
 0x231   : > { %2616 = vrot.lane.b32.xlu1 %v2614_v34, %s5948_s16  ;;  %v1935_v41 = vadd.f32 %v1934_v61, %v1931_v7  ;;  %v2158_v61 = vmul.f32 %v2157_v37, %v5447_v60  ;;  %v2008_v7 = vmul.f32 %v2007_v36, %v4930_v24  ;;  %v2649_v36 = vstv %s5493_s17  ;;  %s3266_s8 = sld [smem:[#allocation12 + $0x6c]] }
 0x232   : > { %v1953_v46 = vpop.permute.xlu0 %1952  ;;  %s6060_s17 = sld [smem:[#allocation79_spill]] }
 0x233   : > { %v1965_v29 = vpop.permute.xlu1 %1964  ;;  %v1955_v51 = vadd.f32 %v1953_v46, %v4385_v12  ;;  %v5438_v18 = vadd.f32 %v1941_v58, %v1935_v41  ;;  %v2710_v12 = vmul.f32 %v5407_v62, %v2709_v16  ;;  %v2134_v58 = vmul.f32 %v2133_v9, %v5447_v60 }
 0x234   : > { %2640 = vrot.lane.b32.xlu0 %v2638_v10, %s5948_s16  ;;  %v2118_v41 = vmul.f32 %v2117_v54, %v5280_v47  ;;  %v2182_v10 = vmul.f32 %v2181_v8, %v5447_v60 }
 0x235   : > { %2664 = vrot.lane.b32.xlu1 %v2662_v2, %s5948_s16  ;;  %v1959_v63 = vadd.f32 %v1958_v50, %v1955_v51  ;;  %v2229_v51 = vstv %s5455_s1  ;;  %p482_p6 = scmp.lt.s32.totalorder %s6056_s2, 1  ;;  %s3262_s1 = sld [smem:[#allocation12 + $0x6d]] }
 0x236   : > { %v1979_v42 = vpop.permute.xlu0 %1978 }
 0x237   : > { %v1991_v38 = vpop.permute.xlu1 %1990  ;;  %v1981_v23 = vadd.f32 %v1979_v42, %v1973_v33  ;;  %v5458_v21 = vadd.f32 %v1965_v29, %v1959_v63  ;;  %v2601_v42 = vstv %s5474_s13  ;;  %s6070_s2 = smov (!%p482_p6, %s6056_s2), 1 }
 0x238   : > { %2688 = vrot.lane.b32.xlu0 %v2686_v53, %s5948_s16  ;;  %v2602_v9 = vmul.f32 %v2601_v42, %v5280_v47 }
 0x239   : > { %2712 = vrot.lane.b32.xlu1 %v2710_v12, %s5948_s16  ;;  %v1985_v6 = vadd.f32 %v1984_v13, %v1981_v23  ;;  %v2230_v13 = vmul.f32 %v2229_v51, %v5447_v60 }
 0x23a   : > { %v2003_v34 = vpop.permute.xlu0 %2002 }
 0x23b   : > { %v2301_v3 = vpop.permute.xlu1 %2300  ;;  %v2005_v32 = vadd.f32 %v2003_v34, %v1997_v22  ;;  %v1993_v0 = vadd.f32 %v1991_v38, %v1985_v6  ;;  %v2625_v38 = vstv %s5470_s5  ;;  %v2650_v22 = vmul.f32 %v2649_v36, %v5280_v47  ;;  %s3373_s5 = smul.u32 192, %s6070_s2 }
 0x23c   : > { %v2303_v25 = vadd.f32 %v2301_v3, %v4411_v31  ;;  %2136 = vrot.lane.b32.xlu0 %v2134_v58, %s5948_s16  ;;  %v2206_v31 = vmul.f32 %v2205_v28, %v5447_v60  ;;  %v2697_v34 = vstv %s5502_s20  ;;  %v2019_v28 = vstv %s5508_s12  ;;  %s3274_s20 = sld [smem:[#allocation12 + $0x7c]] }
 0x23d   : > { %2160 = vrot.lane.b32.xlu1 %v2158_v61, %s5948_s16  ;;  %v5480_v2 = vadd.f32 %v2008_v7, %v2005_v32  ;;  %v5482_v29 = vadd.f32 %v2118_v41, %v1993_v0  ;;  %v2721_v61 = vstv %s5498_s6  ;;  %v5546_v32 = vld [vmem:[#allocation2 + $0x21] sm:$0xff]  ;;  %s5662_s6 = scalar_lea.vmem %s6060_s17, %s3373_s5  ;;  %s3270_s12 = sld [smem:[#allocation12 + $0x7d]] }
 0x23e   : > { %v2307_v50 = vadd.f32 %v2306_v35, %v2303_v25  ;;  %v2325_v46 = vpop.permute.xlu0 %2324  ;;  %v2722_v7 = vmul.f32 %v2721_v61, %v5280_v47  ;;  %v2698_v25 = vmul.f32 %v2697_v34, %v5280_v47  ;;  %v2020_v0 = vmul.f32 %v5546_v32, %v2019_v28 }
 0x23f   : > { %v2349_v24 = vpop.permute.xlu1 %2348  ;;  %v2327_v16 = vadd.f32 %v2325_v46, %v4439_v52  ;;  %v2254_v52 = vmul.f32 %v2253_v14, %v5447_v60  ;;  %v6053_v46 = vld [vmem:[#allocation63_spill] sm:$0xff] }
 0x240   : > { %v2351_v40 = vadd.f32 %v2349_v24, %v4418_v43  ;;  %2184 = vrot.lane.b32.xlu0 %v2182_v10, %s5948_s16  ;;  %v2043_v24 = vstv %s5521_s19  ;;  %v6054_v10 = vld [vmem:[#allocation64_spill] sm:$0xff]  ;;  %s3278_s19 = sld [smem:[#allocation12 + $0x8d]] }
 0x241   : > { %2208 = vrot.lane.b32.xlu1 %v2206_v31, %s5948_s16  ;;  %v2331_v63 = vadd.f32 %v2330_v27, %v2327_v16  ;;  %v2044_v27 = vmul.f32 %v5546_v32, %v2043_v24  ;;  %v2189_v24 = vstv %s5572_s30 }
 0x242   : > { %v2355_v30 = vadd.f32 %v4477_v26, %v2351_v40  ;;  %v2373_v43 = vpop.permute.xlu0 %2372 }
 0x243   : > { %v2397_v33 = vpop.permute.xlu1 %2396  ;;  %v2375_v12 = vadd.f32 %v2373_v43, %v4451_v57  ;;  %v3498_v43 = vld [vmem:[#allocation2 + $0x20] sm:$0xff] }
 0x244   : > { %v2399_v20 = vadd.f32 %v2397_v33, %v4448_v56  ;;  %2232 = vrot.lane.b32.xlu0 %v2230_v13, %s5948_s16  ;;  %v2626_v56 = vmul.f32 %v2625_v38, %v5280_v47  ;;  %v2091_v33 = vstv %s5532_s29  ;;  %v2055_v13 = vstv %s5536_s23  ;;  %v6055_v38 = vld [vmem:[#allocation65_spill] sm:$0xff]  ;;  %s3338_s29 = sld [smem:[#allocation12 + $0x69]] }
 0x245   : > { %2256 = vrot.lane.b32.xlu1 %v2254_v52, %s5948_s16  ;;  %v2379_v53 = vadd.f32 %v4497_v49, %v2375_v12  ;;  %v2045_v12 = vadd.f32 %v2044_v27, %v5418_v15  ;;  %v2237_v27 = vstv %s5583_s14  ;;  %s5698_s23 = sld [smem:[#allocation12 + $0x78]] }
 0x246   : > { %v2403_v26 = vadd.f32 %v4492_v48, %v2399_v20  ;;  %v2421_v37 = vpop.permute.xlu0 %2420  ;;  %v2079_v20 = vstv %s5540_s27  ;;  %s3346_s27 = sld [smem:[#allocation12 + $0x79]] }
 0x247   : > { %v2313_v59 = vpop.permute.xlu1 %2312  ;;  %v2423_v23 = vadd.f32 %v2421_v37, %v4472_v19  ;;  %v2674_v19 = vmul.f32 %v2673_v1, %v5280_v47  ;;  %v2092_v37 = vmul.f32 %v5546_v32, %v2091_v33  ;;  %v2103_v1 = vstv %s5554_s10  ;;  %s3358_s10 = sld [smem:[#allocation12 + $0x88]] }
 0x248   : > { %v2315_v57 = vadd.f32 %v2313_v59, %v2307_v50  ;;  %2604 = vrot.lane.b32.xlu0 %v2602_v9, %s5948_s16  ;;  %v2067_v50 = vstv %s5516_s7  ;;  %s3282_s7 = sld [smem:[#allocation12 + $0x8c]] }
 0x249   : > { %2628 = vrot.lane.b32.xlu1 %v2626_v56, %s5948_s16  ;;  %v2427_v48 = vadd.f32 %v4519_v44, %v2423_v23  ;;  %v2068_v51 = vmul.f32 %v5546_v32, %v2067_v50  ;;  %v2080_v23 = vmul.f32 %v3498_v43, %v2079_v20  ;;  %v2093_v36 = vadd.f32 %v2092_v37, %v5458_v21 }
 0x24a   : > { %v2441_v49 = vadd.f32 %v4524_v45, %v2315_v57  ;;  %v2337_v6 = vpop.permute.xlu0 %2336  ;;  %v2056_v57 = vmul.f32 %v3498_v43, %v2055_v13  ;;  %v2585_v37 = vstv %s5602_s22 }
 0x24b   : > { %v2361_v54 = vpop.permute.xlu1 %2360  ;;  %v2339_v3 = vadd.f32 %v2337_v6, %v2331_v63 }
 0x24c   : > { %v2363_v58 = vadd.f32 %v2361_v54, %v2355_v30  ;;  %2652 = vrot.lane.b32.xlu0 %v2650_v22, %s5948_s16  ;;  %v2104_v22 = vmul.f32 %v3498_v43, %v2103_v1 }
 0x24d   : > { %2676 = vrot.lane.b32.xlu1 %v2674_v19, %s5948_s16  ;;  %v2465_v45 = vadd.f32 %v4538_v55, %v2339_v3  ;;  %v2021_v55 = vadd.f32 %v2020_v0, %v5398_v4  ;;  %v2069_v4 = vadd.f32 %v2068_v51, %v5438_v18 }
 0x24e   : > { %v2489_v44 = vadd.f32 %v4533_v11, %v2363_v58  ;;  %v2385_v35 = vpop.permute.xlu0 %2384  ;;  %v2031_v11 = vstv %s5525_s11  ;;  %s5692_s11 = sld [smem:[#allocation12 + $0x68]] }
 0x24f   : > { %v2409_v8 = vpop.permute.xlu1 %2408  ;;  %v2387_v39 = vadd.f32 %v2385_v35, %v2379_v53  ;;  %v2032_v52 = vmul.f32 %v3498_v43, %v2031_v11  ;;  %v2165_v11 = vstv %s5574_s0 }
 0x250   : > { %v2411_v41 = vadd.f32 %v2409_v8, %v2403_v26  ;;  %2700 = vrot.lane.b32.xlu0 %v2698_v25, %s5948_s16  ;;  %v2166_v51 = vmul.f32 %v2165_v11, %v5280_v47 }
 0x251   : > { %2724 = vrot.lane.b32.xlu1 %v2722_v7, %s5948_s16  ;;  %v2513_v14 = vadd.f32 %v6054_v10, %v2387_v39  ;;  %s3264_s16 = sld [smem:[#allocation12 + $0x64]] }
 0x252   : > { %v2537_v31 = vadd.f32 %v6053_v46, %v2411_v41  ;;  %v2433_v16 = vpop.permute.xlu0 %2432 }
 0x253   : > { %v2027_v40 = vpop.permute.xlu1 %2026  ;;  %v2435_v63 = vadd.f32 %v2433_v16, %v2427_v48  ;;  %v2190_v16 = vmul.f32 %v2189_v24, %v5280_v47  ;;  %v6058_v24 = vld [vmem:[#allocation68_spill] sm:$0xff] }
 0x254   : > { %v2029_v30 = vadd.f32 %v2027_v40, %v2021_v55 }
 0x255   : > { %v2561_v42 = vadd.f32 %v6055_v38, %v2435_v63 }
 0x256   : > { %v2033_v26 = vadd.f32 %v2032_v52, %v2029_v30  ;;  %v2051_v59 = vpop.permute.xlu0 %2050  ;;  %v2213_v30 = vstv %s5585_s3 }
 0x257   : > { %v2075_v53 = vpop.permute.xlu1 %2074  ;;  %v2053_v9 = vadd.f32 %v2051_v59, %v2045_v12  ;;  %v2499_v12 = vstv %s5591_s25  ;;  %v2609_v59 = vstv %s5598_s24 }
 0x258   : > { %v2077_v56 = vadd.f32 %v2075_v53, %v2069_v4  ;;  %v2523_v4 = vstv %s5587_s4  ;;  %v2214_v53 = vmul.f32 %v2213_v30, %v5280_v47 }
 0x259   : > { %v2057_v48 = vadd.f32 %v2056_v57, %v2053_v9 }
 0x25a   : > { %v2081_v54 = vadd.f32 %v2080_v23, %v2077_v56  ;;  %v2099_v18 = vpop.permute.xlu0 %2098 }
 0x25b   : > { %v2447_v6 = vpop.permute.xlu1 %2446  ;;  %v2101_v15 = vadd.f32 %v2099_v18, %v2093_v36 }
 0x25c   : > { %v2449_v19 = vadd.f32 %v2447_v6, %v2441_v49 }
 0x25d   : > { %v2105_v61 = vadd.f32 %v2104_v22, %v2101_v15  ;;  %v2610_v15 = vmul.f32 %v5407_v62, %v2609_v59  ;;  %v2586_v22 = vmul.f32 %v5407_v62, %v2585_v37 }
 0x25e   : > { %v2471_v3 = vpop.permute.xlu0 %2470 }
 0x25f   : > { %v2495_v58 = vpop.permute.xlu1 %2494  ;;  %v2473_v28 = vadd.f32 %v2471_v3, %v2465_v45  ;;  %v2141_v45 = vstv %s3264_s16  ;;  %s3354_s16 = sld [smem:[#allocation12 + $0x89]] }
 0x260   : > { %v5570_v34 = vadd.f32 %v2495_v58, %v2489_v44  ;;  %v2548_v44 = vmul.f32 %v5546_v32, %v1605_v17  ;;  %v2572_v17 = vmul.f32 %v5546_v32, %v1629_v5  ;;  %v2142_v50 = vmul.f32 %v2141_v45, %v5280_v47  ;;  %v6057_v45 = vld [vmem:[#allocation67_spill] sm:$0xff] }
 0x262   : > { %v2519_v8 = vpop.permute.xlu0 %2518 }
 0x263   : > { %v2543_v21 = vpop.permute.xlu1 %2542  ;;  %v2521_v35 = vadd.f32 %v2519_v8, %v2513_v14  ;;  %v2451_v14 = vstv %s5578_s15 }
 0x264   : > { %v2545_v49 = vadd.f32 %v2543_v21, %v2537_v31  ;;  %v2452_v20 = vmul.f32 %v5546_v32, %v2451_v14 }
 0x266   : > { %v5589_v7 = vadd.f32 %v2548_v44, %v2545_v49  ;;  %v2567_v0 = vpop.permute.xlu0 %2566  ;;  %v2453_v9 = vadd.f32 %v2452_v20, %v2449_v19  ;;  %v2633_v19 = vstv %s5612_s28 }
 0x267   : > { %v2015_v25 = vpop.permute.xlu1 %2014  ;;  %v2569_v39 = vadd.f32 %v2567_v0, %v2561_v42  ;;  %v2634_v44 = vmul.f32 %v5407_v62, %v2633_v19 }
 0x268   : > { %v2017_v41 = vadd.f32 %v2015_v25, %v5480_v2  ;;  %v2475_v2 = vstv %s5576_s21 }
 0x269   : > { %v2573_v55 = vadd.f32 %v2572_v17, %v2569_v39  ;;  %v2476_v13 = vmul.f32 %v5546_v32, %v2475_v2  ;;  %v2153_v17 = vstv %s3266_s8 }
 0x26a   : > { %v5604_v46 = vadd.f32 %v2142_v50, %v2017_v41  ;;  %v2039_v10 = vpop.permute.xlu0 %2038  ;;  %v2129_v50 = vstv %s3262_s1 }
 0x26b   : > { %v2063_v31 = vpop.permute.xlu1 %2062  ;;  %v2041_v40 = vadd.f32 %v2039_v10, %v2033_v26  ;;  %v2238_v26 = vmul.f32 %v2237_v27, %v5280_v47  ;;  %v2477_v56 = vadd.f32 %v2476_v13, %v2473_v28 }
 0x26c   : > { %v2065_v5 = vadd.f32 %v2063_v31, %v2057_v48  ;;  %v2524_v48 = vmul.f32 %v5546_v32, %v2523_v4  ;;  %v6059_v31 = vld [vmem:[#allocation69_spill] sm:$0xff] }
 0x26d   : > { %v5616_v33 = vadd.f32 %v2166_v51, %v2041_v40  ;;  %v2154_v40 = vmul.f32 %v2153_v17, %v5447_v60 }
 0x26e   : > { %v5614_v63 = vadd.f32 %v2190_v16, %v2065_v5  ;;  %v2087_v52 = vpop.permute.xlu0 %2086 }
 0x26f   : > { %v2111_v43 = vpop.permute.xlu1 %2110  ;;  %v2089_v42 = vadd.f32 %v2087_v52, %v2081_v54  ;;  %v2500_v54 = vmul.f32 %v5546_v32, %v2499_v12 }
 0x270   : > { %v2113_v38 = vadd.f32 %v2111_v43, %v2105_v61  ;;  %v2525_v61 = vadd.f32 %v2524_v48, %v2521_v35  ;;  %v2225_v48 = vstv %s3278_s19 }
 0x271   : > { %v5628_v23 = vadd.f32 %v2214_v53, %v2089_v42  ;;  %v2501_v58 = vadd.f32 %v2500_v54, %v5570_v34  ;;  %v2201_v42 = vstv %s3274_s20  ;;  %v2226_v19 = vmul.f32 %v2225_v48, %v5447_v60 }
 0x272   : > { %v5626_v57 = vadd.f32 %v2238_v26, %v2113_v38  ;;  %v2459_v36 = vpop.permute.xlu0 %2458  ;;  %v2177_v26 = vstv %s3270_s12 }
 0x273   : > { %v2483_v1 = vpop.permute.xlu1 %2482  ;;  %v2461_v18 = vadd.f32 %v2459_v36, %v2453_v9  ;;  %v2202_v9 = vmul.f32 %v2201_v42, %v5447_v60  ;;  %v2249_v36 = vstv %s3282_s7 }
 0x274   : > { %v2485_v6 = vadd.f32 %v2483_v1, %v2477_v56  ;;  %v2178_v1 = vmul.f32 %v2177_v26, %v5447_v60 }
 0x275   : > { %v5639_v28 = vadd.f32 %v2586_v22, %v2461_v18 }
 0x276   : > { %v5637_v3 = vadd.f32 %v2610_v15, %v2485_v6  ;;  %v2507_v32 = vpop.permute.xlu0 %2506 }
 0x277   : > { %v2531_v21 = vpop.permute.xlu1 %2530  ;;  %v2509_v49 = vadd.f32 %v2507_v32, %v2501_v58  ;;  %v2597_v58 = vstv %s3338_s29 }
 0x278   : > { %v2533_v8 = vadd.f32 %v2531_v21, %v2525_v61  ;;  %v2621_v61 = vstv %s5692_s11 }
 0x279   : > { %v5646_v0 = vadd.f32 %v2634_v44, %v2509_v49 }
 0x27a   : > { %v5644_v25 = vadd.f32 %v6057_v45, %v2533_v8  ;;  %v2555_v35 = vpop.permute.xlu0 %2554 }
 0x27b   : > { %v2579_v41 = vpop.permute.xlu1 %2578  ;;  %v2557_v34 = vadd.f32 %v2555_v35, %v5589_v7  ;;  %v2645_v35 = vstv %s3346_s27 }
 0x27c   : > { %v2581_v39 = vadd.f32 %v2579_v41, %v2573_v55  ;;  %v2130_v55 = vmul.f32 %v2129_v50, %v5447_v60  ;;  %v2669_v41 = vstv %s5698_s23 }
 0x27d   : > { %v5653_v10 = vadd.f32 %v6059_v31, %v2557_v34  ;;  %v2670_v31 = vmul.f32 %v2669_v41, %v5280_v47 }
 0x27e   : > { %v5650_v11 = vadd.f32 %v6058_v24, %v2581_v39  ;;  %v2125_v2 = vpop.permute.xlu0 %2124 }
 0x27f   : > { %v2149_v62 = vpop.permute.xlu1 %2148  ;;  %v2127_v5 = vadd.f32 %v2125_v2, %v5482_v29 }
 0x280   : > { %v2151_v14 = vadd.f32 %v2149_v62, %v5604_v46  ;;  %v2717_v62 = vstv %s3358_s10 }
 0x281   : > { %v5666_v29 = vadd.f32 %v2130_v55, %v2127_v5 }
 0x282   : > { %v5664_v7 = vadd.f32 %v2154_v40, %v2151_v14  ;;  %v1314_v16 = vpop.permute.xlu0 %1313 }
 0x283   : > { %v1320_v46 = vpop.permute.xlu1 %1319  ;;  %1317 = vst.msk [vmem:[%s5662_s6] sm:$0xff] %vm1316_vm6, %v1314_v16  ;;  %v2718_v16 = vmul.f32 %v2717_v62, %v5280_v47 }
 0x284   : > { %3130 = vst.msk [vmem:[%s5662_s6 + $0x10] sm:$0xff] %vm1316_vm6, %v1320_v46 }
 0x286   : > { %v1326_v27 = vpop.permute.xlu0 %1325 }
 0x287   : > { %v1332_v51 = vpop.permute.xlu1 %1331  ;;  %3131 = vst.msk [vmem:[%s5662_s6 + $0x40] sm:$0xff] %vm1316_vm6, %v1326_v27 }
 0x288   : > { %3132 = vst.msk [vmem:[%s5662_s6 + $0x50] sm:$0xff] %vm1316_vm6, %v1332_v51 }
 0x28a   : > { %v1338_v43 = vpop.permute.xlu0 %1337 }
 0x28b   : > { %v1344_v30 = vpop.permute.xlu1 %1343  ;;  %3133 = vst.msk [vmem:[%s5662_s6 + $0x80] sm:$0xff] %vm1316_vm6, %v1338_v43 }
 0x28c   : > { %3134 = vst.msk [vmem:[%s5662_s6 + $0x90] sm:$0xff] %vm1316_vm6, %v1344_v30 }
 0x28e   : > { %v1788_v13 = vpop.permute.xlu0 %1787 }
 0x28f   : > { %v1794_v52 = vpop.permute.xlu1 %1793  ;;  %3206 = vst.msk [vmem:[%s5662_s6 + $0x20] sm:$0xff] %vm1316_vm6, %v1788_v13 }
 0x290   : > { %3207 = vst.msk [vmem:[%s5662_s6 + $0x30] sm:$0xff] %vm1316_vm6, %v1794_v52 }
 0x292   : > { %v1800_v4 = vpop.permute.xlu0 %1799 }
 0x293   : > { %v1806_v20 = vpop.permute.xlu1 %1805  ;;  %3208 = vst.msk [vmem:[%s5662_s6 + $0x60] sm:$0xff] %vm1316_vm6, %v1800_v4 }
 0x294   : > { %3209 = vst.msk [vmem:[%s5662_s6 + $0x70] sm:$0xff] %vm1316_vm6, %v1806_v20 }
 0x296   : > { %v1812_v38 = vpop.permute.xlu0 %1811 }
 0x297   : > { %v1818_v12 = vpop.permute.xlu1 %1817  ;;  %3210 = vst.msk [vmem:[%s5662_s6 + $0xa0] sm:$0xff] %vm1316_vm6, %v1812_v38 }
 0x298   : > { %3211 = vst.msk [vmem:[%s5662_s6 + $0xb0] sm:$0xff] %vm1316_vm6, %v1818_v12 }
 0x29a   : > { %v2173_v59 = vpop.permute.xlu0 %2172 }
 0x29b   : > { %v2197_v53 = vpop.permute.xlu1 %2196  ;;  %v2175_v56 = vadd.f32 %v2173_v59, %v5616_v33  ;;  %v2250_v33 = vmul.f32 %v2249_v36, %v5447_v60 }
 0x29c   : > { %v2199_v37 = vadd.f32 %v2197_v53, %v5614_v63 }
 0x29d   : > { %v2179_v6 = vadd.f32 %v2178_v1, %v2175_v56 }
 0x29e   : > { %v2203_v54 = vadd.f32 %v2202_v9, %v2199_v37  ;;  %v2221_v15 = vpop.permute.xlu0 %2220 }
 0x29f   : > { %v2245_v18 = vpop.permute.xlu1 %2244  ;;  %v2223_v63 = vadd.f32 %v2221_v15, %v5628_v23  ;;  %v2598_v23 = vmul.f32 %v2597_v58, %v5280_v47 }
 0x2a0   : > { %v2247_v22 = vadd.f32 %v2245_v18, %v5626_v57  ;;  %v2622_v57 = vmul.f32 %v2621_v61, %v5280_v47 }
 0x2a1   : > { %v2227_v32 = vadd.f32 %v2226_v19, %v2223_v63 }
 0x2a2   : > { %v2251_v21 = vadd.f32 %v2250_v33, %v2247_v22  ;;  %v2593_v49 = vpop.permute.xlu0 %2592 }
 0x2a3   : > { %v2617_v8 = vpop.permute.xlu1 %2616  ;;  %v2595_v45 = vadd.f32 %v2593_v49, %v5639_v28  ;;  %v2693_v28 = vstv %s3354_s16 }
 0x2a4   : > { %v2619_v44 = vadd.f32 %v2617_v8, %v5637_v3  ;;  %v2646_v3 = vmul.f32 %v2645_v35, %v5280_v47 }
 0x2a5   : > { %v2599_v60 = vadd.f32 %v2598_v23, %v2595_v45 }
 0x2a6   : > { %v2623_v39 = vadd.f32 %v2622_v57, %v2619_v44  ;;  %v2641_v17 = vpop.permute.xlu0 %2640 }
 0x2a7   : > { %v2665_v34 = vpop.permute.xlu1 %2664  ;;  %v2643_v24 = vadd.f32 %v2641_v17, %v5646_v0 }
 0x2a8   : > { %v2667_v50 = vadd.f32 %v2665_v34, %v5644_v25  ;;  %v2694_v25 = vmul.f32 %v2693_v28, %v5280_v47 }
 0x2a9   : > { %v2647_v14 = vadd.f32 %v2646_v3, %v2643_v24 }
 0x2aa   : > { %v2671_v2 = vadd.f32 %v2670_v31, %v2667_v50  ;;  %v2689_v40 = vpop.permute.xlu0 %2688 }
 0x2ab   : > { %v2713_v5 = vpop.permute.xlu1 %2712  ;;  %v2691_v46 = vadd.f32 %v2689_v40, %v5653_v10 }
 0x2ac   : > { %v2715_v55 = vadd.f32 %v2713_v5, %v5650_v11 }
 0x2ad   : > { %v2695_v0 = vadd.f32 %v2694_v25, %v2691_v46 }
 0x2ae   : > { %v2719_v51 = vadd.f32 %v2718_v16, %v2715_v55  ;;  %v2137_v30 = vpop.permute.xlu0 %2136 }
 0x2af   : > { %v2161_v27 = vpop.permute.xlu1 %2160  ;;  %v2139_v52 = vadd.f32 %v2137_v30, %v5666_v29 }
 0x2b0   : > { %v2163_v43 = vadd.f32 %v2161_v27, %v5664_v7 }
 0x2b1   : > { %2261 = vrot.lane.b32.xlu0 %v2139_v52, %s3720_s26 }
 0x2b2   : > { %2266 = vrot.lane.b32.xlu1 %v2163_v43, %s3719_s9  ;;  %v2185_v11 = vpop.permute.xlu0 %2184 }
 0x2b3   : > { %v2209_v13 = vpop.permute.xlu1 %2208  ;;  %v2187_v10 = vadd.f32 %v2185_v11, %v2179_v6 }
 0x2b4   : > { %v2211_v20 = vadd.f32 %v2209_v13, %v2203_v54 }
 0x2b5   : > { %2271 = vrot.lane.b32.xlu0 %v2187_v10, %s3720_s26 }
 0x2b6   : > { %2276 = vrot.lane.b32.xlu1 %v2211_v20, %s3719_s9  ;;  %v2233_v4 = vpop.permute.xlu0 %2232 }
 0x2b7   : > { %v2257_v47 = vpop.permute.xlu1 %2256  ;;  %v2235_v38 = vadd.f32 %v2233_v4, %v2227_v32 }
 0x2b8   : > { %v2259_v12 = vadd.f32 %v2257_v47, %v2251_v21 }
 0x2b9   : > { %2281 = vrot.lane.b32.xlu0 %v2235_v38, %s3720_s26 }
 0x2ba   : > { %2286 = vrot.lane.b32.xlu1 %v2259_v12, %s3719_s9  ;;  %v2605_v29 = vpop.permute.xlu0 %2604 }
 0x2bb   : > { %v2629_v7 = vpop.permute.xlu1 %2628  ;;  %v2607_v26 = vadd.f32 %v2605_v29, %v2599_v60 }
 0x2bc   : > { %v2631_v42 = vadd.f32 %v2629_v7, %v2623_v39 }
 0x2bd   : > { %2729 = vrot.lane.b32.xlu0 %v2607_v26, %s3720_s26 }
 0x2be   : > { %2734 = vrot.lane.b32.xlu1 %v2631_v42, %s3719_s9  ;;  %v2653_v59 = vpop.permute.xlu0 %2652 }
 0x2bf   : > { %v2677_v53 = vpop.permute.xlu1 %2676  ;;  %v2655_v56 = vadd.f32 %v2653_v59, %v2647_v14 }
 0x2c0   : > { %v2679_v37 = vadd.f32 %v2677_v53, %v2671_v2 }
 0x2c1   : > { %2739 = vrot.lane.b32.xlu0 %v2655_v56, %s3720_s26 }
 0x2c2   : > { %2744 = vrot.lane.b32.xlu1 %v2679_v37, %s3719_s9  ;;  %v2701_v1 = vpop.permute.xlu0 %2700 }
 0x2c3   : > { %v2725_v9 = vpop.permute.xlu1 %2724  ;;  %v2703_v48 = vadd.f32 %v2701_v1, %v2695_v0 }
 0x2c4   : > { %v2727_v36 = vadd.f32 %v2725_v9, %v2719_v51 }
 0x2c5   : > { %2749 = vrot.lane.b32.xlu0 %v2703_v48, %s3720_s26 }
 0x2c6   : > { %2754 = vrot.lane.b32.xlu1 %v2727_v36, %s3719_s9 }
 0x323   : > { %v2262_v6 = vpop.permute.xlu0 %2261 }
 0x324   : > { %v2267_v54 = vpop.permute.xlu1 %2266  ;;  %2264 = vst.msk [vmem:[%s5662_s6 + $0x8] sm:$0xff] %vm1316_vm6, %v2262_v6 }
 0x325   : > { %3284 = vst.msk [vmem:[%s5662_s6 + $0x18] sm:$0xff] %vm1316_vm6, %v2267_v54 }
 0x327   : > { %v2272_v15 = vpop.permute.xlu0 %2271 }
 0x328   : > { %v2277_v18 = vpop.permute.xlu1 %2276  ;;  %3285 = vst.msk [vmem:[%s5662_s6 + $0x48] sm:$0xff] %vm1316_vm6, %v2272_v15 }
 0x329   : > { %3286 = vst.msk [vmem:[%s5662_s6 + $0x58] sm:$0xff] %vm1316_vm6, %v2277_v18 }
 0x32b   : > { %v2282_v63 = vpop.permute.xlu0 %2281 }
 0x32c   : > { %v2287_v22 = vpop.permute.xlu1 %2286  ;;  %3287 = vst.msk [vmem:[%s5662_s6 + $0x88] sm:$0xff] %vm1316_vm6, %v2282_v63 }
 0x32d   : > { %3288 = vst.msk [vmem:[%s5662_s6 + $0x98] sm:$0xff] %vm1316_vm6, %v2287_v22 }
 0x32f   : > { %v2730_v19 = vpop.permute.xlu0 %2729 }
 0x330   : > { %v2735_v33 = vpop.permute.xlu1 %2734  ;;  %3360 = vst.msk [vmem:[%s5662_s6 + $0x28] sm:$0xff] %vm1316_vm6, %v2730_v19 }
 0x331   : > { %3361 = vst.msk [vmem:[%s5662_s6 + $0x38] sm:$0xff] %vm1316_vm6, %v2735_v33 }
 0x333   : > { %v2740_v58 = vpop.permute.xlu0 %2739 }
 0x334   : > { %v2745_v61 = vpop.permute.xlu1 %2744  ;;  %3362 = vst.msk [vmem:[%s5662_s6 + $0x68] sm:$0xff] %vm1316_vm6, %v2740_v58 }
 0x335   : > { %3363 = vst.msk [vmem:[%s5662_s6 + $0x78] sm:$0xff] %vm1316_vm6, %v2745_v61 }
 0x337   : > { %v2750_v32 = vpop.permute.xlu0 %2749 }
 0x338   : > { %v2755_v21 = vpop.permute.xlu1 %2754  ;;  %3364 = vst.msk [vmem:[%s5662_s6 + $0xa8] sm:$0xff] %vm1316_vm6, %v2750_v32 }
 0x339   : > { %3365 = vst.msk [vmem:[%s5662_s6 + $0xb8] sm:$0xff] %vm1316_vm6, %v2755_v21 }
 0x33a PF: > { %s6061_s9 = sld [smem:[#allocation26_spill]] }
 0x33b   : > { %s6062_s24 = sld [smem:[#allocation22_spill]] }
 0x33c   : > { %s6063_s25 = sld [smem:[#allocation23_spill]] }
 0x33d   : > { %s6064_s26 = sld [smem:[#allocation28_spill]] }
 0x33e   : > { %s6065_s27 = sld [smem:[#allocation25_spill]] }
 0x33f   : > { %s6066_s28 = sld [smem:[#allocation27_spill]] }
 0x340   : > { %s27_s29 = sadd.s32 1, %s6061_s9  }
 0x341   : > { %p24_p2 = scmp.ge.s32.totalorder %s27_s29, 4  }
 0x343   :  { %26 = sbr.rel (!%p24_p2) target bundleno = 19 (0x13), region = 168 }
 0x348   :  { %2788 = vsyncpa [#allocation4], 1 }
 0x349   :  { %2790 = vsyncpa [#allocation4 + $0x1], 1 }
 0x34a   :  { %2791 = vsyncpa [#allocation8], 1 }
 0x34b   :  { %2793 = vsyncpa [#allocation8 + $0x1], 1 }
 0x34c   :  { %2794 = vsyncpa [#allocation5], 1 }
 0x34d   :  { %2796 = vsyncpa [#allocation5 + $0x1], 1 }
 0x34e   :  { %2797 = vsyncpa [#allocation15], 1 }
 0x34f   :  { %2798 = vsyncpa [#allocation6], 1 }
 0x350   :  { %2800 = vsyncpa [#allocation6 + $0x1], 1 }
 0x351   :  { %2801 = vsyncpa [#allocation13], 1 }

</bundles_post_ra>
